<compile_context>
chip_gen: v7x
topology: tpu7x:2x2x1
jax: 0.10.0
libtpu: 0.0.40
codegen_flags: <defaults>
</compile_context>

<pallas_src>
import math
import jax
import jax.numpy as jnp
from jax.experimental import pallas as pl
from jax.experimental.pallas import tpu as pltpu


def _round_up(x, m):
    return ((x + m - 1) // m) * m


# ----------------------------- in-kernel math helpers -----------------------------

def _erf(x):
    # Abramowitz & Stegun 7.1.26, max abs error ~1.5e-7 (float32-exact for our purposes).
    # TODO(synk): replace with a native erf primitive if/when guaranteed in Mosaic.
    a1, a2, a3, a4, a5 = 0.254829592, -0.284496736, 1.421413741, -1.453152027, 1.061405429
    p = 0.3275911
    s = jnp.where(x >= 0.0, 1.0, -1.0)
    ax = jnp.abs(x)
    d = 1.0 + p * ax
    t = pl.reciprocal(d, approx=True)        # EUP rcp (free slot) ...
    t = t * (2.0 - d * t)                     # ... + one Newton step -> ~f32 accurate
    poly = ((((a5 * t + a4) * t + a3) * t + a2) * t + a1) * t
    return s * (1.0 - poly * jnp.exp(-ax * ax))


def _gelu(x):
    # exact GELU (PyTorch nn.GELU default, approximate='none')
    return 0.5 * x * (1.0 + _erf(x * 0.7071067811865476))


# ----------------------------- the fused Pallas kernel -----------------------------

def _make_kernel(Nb, Hout, WC):
    M = Nb * Hout

    def group_norm(z2d, w_row, b_row, eps=1e-5):
        # GroupNorm(num_groups=1): reduce PER SAMPLE over Hout*WC (not over the fused M rows).
        # Single-pass sum / sum-of-squares (documented precision caveat; fine at these scales).
        z3 = z2d.reshape(Nb, Hout, WC)
        inv_n = 1.0 / float(Hout * WC)
        s1 = jnp.sum(jnp.sum(z3, axis=2, keepdims=True), axis=1, keepdims=True)
        s2 = jnp.sum(jnp.sum(z3 * z3, axis=2, keepdims=True), axis=1, keepdims=True)
        mean = s1 * inv_n
        var = jnp.maximum(s2 * inv_n - mean * mean, 0.0)
        inv = jax.lax.rsqrt(var + eps)
        zn = ((z3 - mean) * inv).reshape(M, WC)
        return zn * w_row + b_row

    def kernel(xr_ref, bm_ref, vecs_ref, ss_ref, dwb_ref, c1m_ref, c2m_ref, out_ref):
        # ---- fused main branch (3x3 strided conv) + residual branch (avg-pool -> 1x1): ONE matmul
        acc = jnp.dot(xr_ref[...], bm_ref[...], preferred_element_type=jnp.float32)  # (M, 2*WC)
        z = acc[:, :WC] + vecs_ref[0:1, :]        # strided_conv + bias
        y = acc[:, WC:] + vecs_ref[3:4, :]        # avg_pool -> conv1d + bias
        z = group_norm(z, vecs_ref[1:2, :], vecs_ref[2:3, :])
        z = _gelu(z)

        def convnext(zin, blk):
            zb = zin.astype(jnp.bfloat16)
            # depthwise 7x7 'same' conv on the MXU: one (7M, M) block-diag row-shift matmul,
            # then 7 banded (WC, WC) width/channel-diagonal matmuls (one per row tap dy).
            shifted = jnp.dot(ss_ref[...], zb, preferred_element_type=jnp.float32)    # (7M, WC)
            shifted = shifted.astype(jnp.bfloat16)
            t = jnp.zeros((M, WC), jnp.float32)
            for dy in range(7):
                t = t + jnp.dot(shifted[dy * M:(dy + 1) * M], dwb_ref[blk, dy],
                                preferred_element_type=jnp.float32)
            t = t + vecs_ref[4 + 3 * blk:5 + 3 * blk, :]                               # dw bias
            t = group_norm(t, vecs_ref[5 + 3 * blk:6 + 3 * blk, :],
                           vecs_ref[6 + 3 * blk:7 + 3 * blk, :])                       # layer_norm
            t = jnp.dot(t.astype(jnp.bfloat16), c1m_ref[blk],
                        preferred_element_type=jnp.float32)                            # conv1 (1x1)
            t = _gelu(t)
            t = jnp.dot(t.astype(jnp.bfloat16), c2m_ref[blk],
                        preferred_element_type=jnp.float32)                            # conv2 (1x1)
            return t + zin                                                              # residual

        z = convnext(z, 0)                        # convnext_pre
        z = z + y                                 # add residual branch
        z = convnext(z, 1)                        # convnexts_post[0]
        z = convnext(z, 2)                        # convnexts_post[1]
        out_ref[...] = z.astype(out_ref.dtype)    # lane-dense (M, Wout*C) store

    return kernel


# ----------------------------- parameters (deterministic) -----------------------------

def init_params(key, in_channels, out_channels):
    ks = jax.random.split(key, 8)
    p = {}
    p["w3"] = jax.random.normal(ks[0], (out_channels, in_channels, 3, 3), jnp.float32) \
        * math.sqrt(2.0 / (in_channels * 9))
    p["b3"] = jax.random.normal(ks[1], (out_channels,), jnp.float32) * 0.05
    p["gn_w"] = jnp.ones((out_channels,), jnp.float32)
    p["gn_b"] = jnp.zeros((out_channels,), jnp.float32)
    p["w1d"] = jax.random.normal(ks[2], (out_channels, in_channels, 1, 1), jnp.float32) \
        * math.sqrt(2.0 / in_channels)
    p["b1d"] = jax.random.normal(ks[3], (out_channels,), jnp.float32) * 0.05

    dww, dwb, lnw, lnb, c1, c2 = [], [], [], [], [], []
    for i in range(3):  # convnext_pre + 2x convnexts_post
        kk = jax.random.split(ks[4 + i], 4)
        dww.append(jax.random.normal(kk[0], (out_channels, 1, 7, 7), jnp.float32)
                   * math.sqrt(2.0 / 49.0))
        dwb.append(jax.random.normal(kk[1], (out_channels,), jnp.float32) * 0.05)
        lnw.append(jnp.ones((out_channels,), jnp.float32))
        lnb.append(jnp.zeros((out_channels,), jnp.float32))
        c1.append(jax.random.normal(kk[2], (out_channels, out_channels, 1, 1), jnp.float32)
                  * math.sqrt(2.0 / out_channels))
        # NOTE: module __init__ zero-inits conv2; small random values here so the path is exercised.
        c2.append(jax.random.normal(kk[3], (out_channels, out_channels, 1, 1), jnp.float32) * 0.02)
    p["cn_dw_w"] = jnp.stack(dww)
    p["cn_dw_b"] = jnp.stack(dwb)
    p["cn_ln_w"] = jnp.stack(lnw)
    p["cn_ln_b"] = jnp.stack(lnb)
    p["cn_c1"] = jnp.stack(c1)
    p["cn_c2"] = jnp.stack(c2)
    return p


# ----------------------------- glue: banded weight matrices -----------------------------

def _build_main_band(w3, w1d, s, W, Wout, cin, cout, Kpad):
    """(Kpad, 2*Wout*cout): fused [strided 3x3 conv | 0.25*avg-pool∘1x1] banded weights.
    The three ky row-planes are concatenated along K (matching the xrows layout) and
    zero-padded up to Kpad (multiple of 128)."""
    Wp = W + 2
    WC = Wout * cout
    wi = jnp.arange(Wp)[:, None]             # padded input column
    wo = jnp.arange(Wout)[None, :]           # output column

    # strided conv taps: input col wi == s*wo + kx, kx in {0,1,2}
    kx = wi - s * wo
    cmask = ((kx >= 0) & (kx <= 2)).astype(jnp.float32)[..., None, None]
    kxc = jnp.clip(kx, 0, 2)
    w3t = jnp.transpose(w3, (2, 3, 1, 0)).astype(jnp.float32)       # (ky, kx, cin, cout)

    # pool taps: input col wi == s*wo + off + dx, dx in {0,1}; divisor 4 folded into weights
    off = 0 if s == 1 else 1
    dx = wi - (s * wo + off)
    pmask = ((dx >= 0) & (dx <= 1)).astype(jnp.float32)[..., None, None]
    w1dT = 0.25 * jnp.transpose(w1d[:, :, 0, 0]).astype(jnp.float32)  # (cin, cout)
    pool_planes = (0, 1) if s == 1 else (1, 2)

    mats = []
    for ky in range(3):
        conv = w3t[ky][kxc] * cmask                                  # (Wp, Wout, cin, cout)
        conv = jnp.transpose(conv, (0, 2, 1, 3)).reshape(Wp * cin, WC)
        if ky in pool_planes:
            pool = pmask * w1dT[None, None]
            pool = jnp.transpose(pool, (0, 2, 1, 3)).reshape(Wp * cin, WC)
        else:
            pool = jnp.zeros((Wp * cin, WC), jnp.float32)
        mats.append(jnp.concatenate([conv, pool], axis=-1))
    bm = jnp.concatenate(mats, axis=0)                               # (3*Wp*cin, 2*WC)
    return jnp.pad(bm, ((0, Kpad - bm.shape[0]), (0, 0)))


def _build_shift_stack(Hout, Nb):
    """(7*Nb*Hout, Nb*Hout): vertical stack of per-dy row-shift matrices, block-diagonal over
    the Nb samples fused into the matmul M dimension (depthwise rows never bleed across samples)."""
    ho = jnp.arange(Hout)[:, None]
    hi = jnp.arange(Hout)[None, :]
    eyeN = jnp.eye(Nb, dtype=jnp.float32)
    mats = [jnp.kron(eyeN, (hi == ho + dy - 3).astype(jnp.float32)) for dy in range(7)]
    return jnp.concatenate(mats, axis=0)


def _build_dw_band(cn_dw_w, Wout):
    """(3, 7, WC, WC): per ConvNext block & per row-tap dy, a banded width/channel-diagonal
    matrix so the depthwise 7x7 width taps + per-channel weights run on the MXU."""
    nblk, C = cn_dw_w.shape[0], cn_dw_w.shape[1]
    WC = Wout * C
    wi = jnp.arange(Wout)[:, None]
    wo = jnp.arange(Wout)[None, :]
    dx = wi - wo + 3
    mask = ((dx >= 0) & (dx <= 6)).astype(jnp.float32)
    dxc = jnp.clip(dx, 0, 6)
    eyeC = jnp.eye(C, dtype=jnp.float32)
    blocks = []
    for blk in range(nblk):
        k = cn_dw_w[blk, :, 0]                                      # (C, 7, 7)
        per_dy = []
        for dy in range(7):
            tap = jnp.transpose(k[:, dy, :][:, dxc], (1, 2, 0))     # (wi, wo, c)
            tap = tap * mask[:, :, None]
            b4 = tap[:, :, :, None] * eyeC[None, None]              # (wi, wo, ci, co)
            per_dy.append(jnp.transpose(b4, (0, 2, 1, 3)).reshape(WC, WC))
        blocks.append(jnp.stack(per_dy))
    return jnp.stack(blocks)


# ----------------------------- wrapper (glue JAX + pallas_call) -----------------------------

def residual_block_down(x_nchw, params, downsample_n=1):
    assert downsample_n in (1, 2), "this kernel supports downsample_n in {1, 2}"
    x = jnp.transpose(x_nchw, (0, 2, 3, 1)).astype(jnp.float32)     # NCHW -> NHWC
    N, H, W, cin = x.shape
    cout = params["gn_w"].shape[0]
    s = downsample_n
    if s == 2:
        assert H % 2 == 0 and W % 2 == 0, "even spatial dims required for downsample_n=2"
    Hout = (H - 1) // s + 1
    Wout = (W - 1) // s + 1
    WC = Wout * cout
    Kb = (W + 2) * cin
    Kpad = _round_up(3 * Kb, 128)

    # Batch Nb samples per grid step so matmul M = Nb*Hout approaches MXU height (~128 rows).
    # TODO(synk): on v7x with large N, cap Nb so grid >= 2 and both TensorCores get work.
    nb_target = max(1, 128 // Hout)
    Nb = 1
    for d in range(min(N, nb_target), 0, -1):
        if N % d == 0:
            Nb = d
            break
    M = Nb * Hout
    n_steps = N // Nb

    # --- glue: 3 ky row-planes of the padded input, concatenated along K, zero-padded, bf16 ---
    xpad = jnp.pad(x, ((0, 0), (1, 1), (1, 1), (0, 0)))
    planes = [xpad[:, ky:ky + s * (Hout - 1) + 1:s, :, :].reshape(N, Hout, Kb) for ky in range(3)]
    xrows = jnp.concatenate(planes, axis=-1)                        # (N, Hout, 3*Kb)
    xrows = jnp.pad(xrows, ((0, 0), (0, 0), (0, Kpad - 3 * Kb)))
    xrows = xrows.reshape(N * Hout, Kpad).astype(jnp.bfloat16)      # 2-D lane-dense slab

    # --- glue: fused banded weights, row-shift stack, depthwise bands (all bf16) ---
    bm = _build_main_band(params["w3"], params["w1d"], s, W, Wout, cin, cout, Kpad) \
        .astype(jnp.bfloat16)                                       # (Kpad, 2*WC)
    sstack = _build_shift_stack(Hout, Nb).astype(jnp.bfloat16)      # (7*M, M)
    dwb = _build_dw_band(params["cn_dw_w"], Wout).astype(jnp.bfloat16)  # (3, 7, WC, WC)

    # --- glue: per-channel vectors packed into one lane-tiled (13, WC) f32 array ---
    tile = lambda v: jnp.tile(v.astype(jnp.float32), Wout)
    rows = [tile(params["b3"]), tile(params["gn_w"]), tile(params["gn_b"]), tile(params["b1d"])]
    for blk in range(3):
        rows += [tile(params["cn_dw_b"][blk]), tile(params["cn_ln_w"][blk]),
                 tile(params["cn_ln_b"][blk])]
    vecs = jnp.stack(rows)                                          # (13, WC)

    # --- glue: 1x1 convs as block-diagonal (WC, WC) matrices (bf16) ---
    # TODO(synk): for cout >= 128 replace the kron block-diagonal with a dense (C, C) matmul on a
    #             (rows, C) layout to avoid the quadratic-in-WC VMEM footprint (v7x 64 MiB).
    eyeW = jnp.eye(Wout, dtype=jnp.float32)
    c1m = jnp.stack([jnp.kron(eyeW, params["cn_c1"][b][:, :, 0, 0].T) for b in range(3)]) \
        .astype(jnp.bfloat16)
    c2m = jnp.stack([jnp.kron(eyeW, params["cn_c2"][b][:, :, 0, 0].T) for b in range(3)]) \
        .astype(jnp.bfloat16)

    kernel = _make_kernel(Nb, Hout, WC)

    in_specs = [
        pl.BlockSpec((M, Kpad), lambda n: (n, 0)),                  # Nb samples' row-planes
        pl.BlockSpec((Kpad, 2 * WC), lambda n: (0, 0)),             # fused conv/pool banded weights
        pl.BlockSpec((13, WC), lambda n: (0, 0)),                   # packed per-channel vectors
        pl.BlockSpec((7 * M, M), lambda n: (0, 0)),                 # depthwise row-shift stack
        pl.BlockSpec((3, 7, WC, WC), lambda n: (0, 0, 0, 0)),       # depthwise width/channel bands
        pl.BlockSpec((3, WC, WC), lambda n: (0, 0, 0)),             # block-diag conv1 matrices
        pl.BlockSpec((3, WC, WC), lambda n: (0, 0, 0)),             # block-diag conv2 matrices
    ]
    out_spec = pl.BlockSpec((M, WC), lambda n: (n, 0))              # lane-dense output slab

    out_flat = pl.pallas_call(
        kernel,
        out_shape=jax.ShapeDtypeStruct((N * Hout, WC), jnp.float32),
        grid_spec=pltpu.PrefetchScalarGridSpec(
            num_scalar_prefetch=0,
            grid=(n_steps,),
            in_specs=in_specs,
            out_specs=out_spec,
        ),
        compiler_params=pltpu.CompilerParams(
            # TODO(synk): verify "parallel" shards grid steps across v7x's two TensorCores; if
            #             not, switch to pltpu.CORE_PARALLEL / a core_map over a leading axis.
            dimension_semantics=("parallel",),
        ),
    )(xrows, bm, vecs, sstack, dwb, c1m, c2m)

    # (N*Hout, Wout*C) -> NCHW
    out = out_flat.reshape(N, Hout, Wout, cout).transpose(0, 3, 1, 2)
    return out


# ----------------------------- main -----------------------------

if __name__ == "__main__":
    key = jax.random.PRNGKey(0)
    kx, kp = jax.random.split(key)

    N, Cin, Cout, H, W = 2, 4, 8, 16, 16
    x = jax.random.normal(kx, (N, Cin, H, W), jnp.float32)          # NCHW, like PyTorch
    params = init_params(kp, Cin, Cout)

    out1 = residual_block_down(x, params, downsample_n=1)           # (2, 8, 16, 16)
    out2 = residual_block_down(x, params, downsample_n=2)           # (2, 8, 8, 8)
    jax.block_until_ready(out1)
    jax.block_until_ready(out2)

    assert out1.shape == (N, Cout, H, W)
    assert out2.shape == (N, Cout, H // 2, W // 2)
    assert bool(jnp.all(jnp.isfinite(out1))) and bool(jnp.all(jnp.isfinite(out2)))
    print("KERNEL_OK")
</pallas_src>

<mosaic_0001>
module attributes {stable_mosaic.version = 11 : i64} {
  func.func @kernel(%arg0: i32, %arg1: memref<32x256xbf16, #tpu.memory_space<vmem>>, %arg2: memref<256x256xbf16, #tpu.memory_space<vmem>>, %arg3: memref<13x128xf32, #tpu.memory_space<vmem>>, %arg4: memref<224x32xbf16, #tpu.memory_space<vmem>>, %arg5: memref<3x7x128x128xbf16, #tpu.memory_space<vmem>>, %arg6: memref<3x128x128xbf16, #tpu.memory_space<vmem>>, %arg7: memref<3x128x128xbf16, #tpu.memory_space<vmem>>, %arg8: memref<32x128xf32, #tpu.memory_space<vmem>>) attributes {dimension_semantics = [#tpu.dimension_semantics<parallel>], iteration_bounds = array<i64: 1>, scalar_prefetch = 0 : i64, scratch_operands = 0 : i64, tpu.core_type = #tpu.core_type<tc>, window_params = [{transform_indices = @transform_0, window_bounds = array<i64: 32, 256>}, {pipeline_mode = #tpu.pipeline_mode<synchronous>, transform_indices = @transform_1, window_bounds = array<i64: 256, 256>}, {pipeline_mode = #tpu.pipeline_mode<synchronous>, transform_indices = @transform_2, window_bounds = array<i64: 13, 128>}, {pipeline_mode = #tpu.pipeline_mode<synchronous>, transform_indices = @transform_3, window_bounds = array<i64: 224, 32>}, {pipeline_mode = #tpu.pipeline_mode<synchronous>, transform_indices = @transform_4, window_bounds = array<i64: 3, 7, 128, 128>}, {pipeline_mode = #tpu.pipeline_mode<synchronous>, transform_indices = @transform_5, window_bounds = array<i64: 3, 128, 128>}, {pipeline_mode = #tpu.pipeline_mode<synchronous>, transform_indices = @transform_6, window_bounds = array<i64: 3, 128, 128>}, {transform_indices = @transform_7, window_bounds = array<i64: 32, 128>}]} {
    %c0 = arith.constant 0 : index
    %c0_0 = arith.constant 0 : index
    %0 = vector.load %arg1[%c0, %c0_0] : memref<32x256xbf16, #tpu.memory_space<vmem>>, vector<32x256xbf16>
    %c0_1 = arith.constant 0 : index
    %c0_2 = arith.constant 0 : index
    %1 = vector.load %arg2[%c0_1, %c0_2] : memref<256x256xbf16, #tpu.memory_space<vmem>>, vector<256x256xbf16>
    %cst = arith.constant dense<0.000000e+00> : vector<32x256xf32>
    %2 = tpu.matmul %0, %1, %cst {dimension_numbers = #tpu.dot_dimension_numbers<[1], [0], [0], [1], [0, 0, 1, 1], [], []>} : vector<32x256xbf16>, vector<256x256xbf16>, vector<32x256xf32> -> vector<32x256xf32>
    %3 = vector.extract_strided_slice %2 {offsets = [0, 0], sizes = [32, 128], strides = [1, 1]} : vector<32x256xf32> to vector<32x128xf32>
    %c0_3 = arith.constant 0 : index
    %c0_4 = arith.constant 0 : index
    %4 = vector.load %arg3[%c0_3, %c0_4] : memref<13x128xf32, #tpu.memory_space<vmem>>, vector<1x128xf32>
    %5 = vector.broadcast %4 : vector<1x128xf32> to vector<32x128xf32>
    %6 = arith.addf %3, %5 : vector<32x128xf32>
    %7 = vector.extract_strided_slice %2 {offsets = [0, 128], sizes = [32, 128], strides = [1, 1]} : vector<32x256xf32> to vector<32x128xf32>
    %c3 = arith.constant 3 : index
    %c0_5 = arith.constant 0 : index
    %8 = vector.load %arg3[%c3, %c0_5] : memref<13x128xf32, #tpu.memory_space<vmem>>, vector<1x128xf32>
    %9 = vector.broadcast %8 : vector<1x128xf32> to vector<32x128xf32>
    %10 = arith.addf %7, %9 : vector<32x128xf32>
    %c1 = arith.constant 1 : index
    %c0_6 = arith.constant 0 : index
    %11 = vector.load %arg3[%c1, %c0_6] : memref<13x128xf32, #tpu.memory_space<vmem>>, vector<1x128xf32>
    %c2 = arith.constant 2 : index
    %c0_7 = arith.constant 0 : index
    %12 = vector.load %arg3[%c2, %c0_7] : memref<13x128xf32, #tpu.memory_space<vmem>>, vector<1x128xf32>
    %13 = vector.shape_cast %6 : vector<32x128xf32> to vector<2x16x128xf32>
    %cst_8 = arith.constant dense<0.000000e+00> : vector<2x16xf32>
    %14 = vector.multi_reduction <add>, %13, %cst_8 [2] : vector<2x16x128xf32> to vector<2x16xf32>
    %15 = vector.shape_cast %14 : vector<2x16xf32> to vector<2x16x1xf32>
    %cst_9 = arith.constant dense<0.000000e+00> : vector<2x1xf32>
    %16 = vector.multi_reduction <add>, %15, %cst_9 [1] : vector<2x16x1xf32> to vector<2x1xf32>
    %17 = vector.shape_cast %16 : vector<2x1xf32> to vector<2x1x1xf32>
    %18 = arith.mulf %13, %13 : vector<2x16x128xf32>
    %cst_10 = arith.constant dense<0.000000e+00> : vector<2x16xf32>
    %19 = vector.multi_reduction <add>, %18, %cst_10 [2] : vector<2x16x128xf32> to vector<2x16xf32>
    %20 = vector.shape_cast %19 : vector<2x16xf32> to vector<2x16x1xf32>
    %cst_11 = arith.constant dense<0.000000e+00> : vector<2x1xf32>
    %21 = vector.multi_reduction <add>, %20, %cst_11 [1] : vector<2x16x1xf32> to vector<2x1xf32>
    %22 = vector.shape_cast %21 : vector<2x1xf32> to vector<2x1x1xf32>
    %cst_12 = arith.constant 4.8828125E-4 : f32
    %23 = vector.broadcast %cst_12 : f32 to vector<2x1x1xf32>
    %24 = arith.mulf %17, %23 : vector<2x1x1xf32>
    %cst_13 = arith.constant 4.8828125E-4 : f32
    %25 = vector.broadcast %cst_13 : f32 to vector<2x1x1xf32>
    %26 = arith.mulf %22, %25 : vector<2x1x1xf32>
    %27 = arith.mulf %24, %24 : vector<2x1x1xf32>
    %28 = arith.subf %26, %27 : vector<2x1x1xf32>
    %cst_14 = arith.constant 0.000000e+00 : f32
    %29 = vector.broadcast %cst_14 : f32 to vector<2x1x1xf32>
    %30 = arith.maximumf %28, %29 : vector<2x1x1xf32>
    %cst_15 = arith.constant 9.99999974E-6 : f32
    %31 = vector.broadcast %cst_15 : f32 to vector<2x1x1xf32>
    %32 = arith.addf %30, %31 : vector<2x1x1xf32>
    %33 = math.rsqrt %32 : vector<2x1x1xf32>
    %34 = vector.broadcast %24 : vector<2x1x1xf32> to vector<2x16x128xf32>
    %35 = arith.subf %13, %34 : vector<2x16x128xf32>
    %36 = vector.broadcast %33 : vector<2x1x1xf32> to vector<2x16x128xf32>
    %37 = arith.mulf %35, %36 : vector<2x16x128xf32>
    %38 = vector.shape_cast %37 : vector<2x16x128xf32> to vector<32x128xf32>
    %39 = vector.broadcast %11 : vector<1x128xf32> to vector<32x128xf32>
    %40 = arith.mulf %38, %39 : vector<32x128xf32>
    %41 = vector.broadcast %12 : vector<1x128xf32> to vector<32x128xf32>
    %42 = arith.addf %40, %41 : vector<32x128xf32>
    %cst_16 = arith.constant 5.000000e-01 : f32
    %43 = vector.broadcast %cst_16 : f32 to vector<32x128xf32>
    %44 = arith.mulf %43, %42 : vector<32x128xf32>
    %cst_17 = arith.constant 0.707106769 : f32
    %45 = vector.broadcast %cst_17 : f32 to vector<32x128xf32>
    %46 = arith.mulf %42, %45 : vector<32x128xf32>
    %cst_18 = arith.constant 0.000000e+00 : f32
    %47 = vector.broadcast %cst_18 : f32 to vector<32x128xf32>
    %48 = arith.cmpf oge, %46, %47 : vector<32x128xf32>
    %cst_19 = arith.constant 1.000000e+00 : f32
    %cst_20 = arith.constant -1.000000e+00 : f32
    %49 = vector.broadcast %cst_19 : f32 to vector<32x128xf32>
    %50 = vector.broadcast %cst_20 : f32 to vector<32x128xf32>
    %51 = arith.select %48, %49, %50 : vector<32x128xi1>, vector<32x128xf32>
    %52 = math.absf %46 : vector<32x128xf32>
    %cst_21 = arith.constant 0.327591091 : f32
    %53 = vector.broadcast %cst_21 : f32 to vector<32x128xf32>
    %54 = arith.mulf %53, %52 : vector<32x128xf32>
    %cst_22 = arith.constant 1.000000e+00 : f32
    %55 = vector.broadcast %cst_22 : f32 to vector<32x128xf32>
    %56 = arith.addf %55, %54 : vector<32x128xf32>
    %57 = tpu.reciprocal %56 {approx = true} : vector<32x128xf32> -> vector<32x128xf32>
    %58 = arith.mulf %56, %57 : vector<32x128xf32>
    %cst_23 = arith.constant 2.000000e+00 : f32
    %59 = vector.broadcast %cst_23 : f32 to vector<32x128xf32>
    %60 = arith.subf %59, %58 : vector<32x128xf32>
    %61 = arith.mulf %57, %60 : vector<32x128xf32>
    %cst_24 = arith.constant 1.06140542 : f32
    %62 = vector.broadcast %cst_24 : f32 to vector<32x128xf32>
    %63 = arith.mulf %62, %61 : vector<32x128xf32>
    %cst_25 = arith.constant -1.45315206 : f32
    %64 = vector.broadcast %cst_25 : f32 to vector<32x128xf32>
    %65 = arith.addf %63, %64 : vector<32x128xf32>
    %66 = arith.mulf %65, %61 : vector<32x128xf32>
    %cst_26 = arith.constant 1.42141378 : f32
    %67 = vector.broadcast %cst_26 : f32 to vector<32x128xf32>
    %68 = arith.addf %66, %67 : vector<32x128xf32>
    %69 = arith.mulf %68, %61 : vector<32x128xf32>
    %cst_27 = arith.constant -0.284496725 : f32
    %70 = vector.broadcast %cst_27 : f32 to vector<32x128xf32>
    %71 = arith.addf %69, %70 : vector<32x128xf32>
    %72 = arith.mulf %71, %61 : vector<32x128xf32>
    %cst_28 = arith.constant 0.254829586 : f32
    %73 = vector.broadcast %cst_28 : f32 to vector<32x128xf32>
    %74 = arith.addf %72, %73 : vector<32x128xf32>
    %75 = arith.mulf %74, %61 : vector<32x128xf32>
    %cst_29 = arith.constant 0.000000e+00 : f32
    %76 = vector.broadcast %cst_29 : f32 to vector<32x128xf32>
    %77 = arith.subf %76, %52 : vector<32x128xf32>
    %78 = arith.mulf %77, %52 : vector<32x128xf32>
    %79 = math.exp %78 : vector<32x128xf32>
    %80 = arith.mulf %75, %79 : vector<32x128xf32>
    %cst_30 = arith.constant 1.000000e+00 : f32
    %81 = vector.broadcast %cst_30 : f32 to vector<32x128xf32>
    %82 = arith.subf %81, %80 : vector<32x128xf32>
    %83 = arith.mulf %51, %82 : vector<32x128xf32>
    %cst_31 = arith.constant 1.000000e+00 : f32
    %84 = vector.broadcast %cst_31 : f32 to vector<32x128xf32>
    %85 = arith.addf %84, %83 : vector<32x128xf32>
    %86 = arith.mulf %44, %85 : vector<32x128xf32>
    %87 = arith.truncf %86 : vector<32x128xf32> to vector<32x128xbf16>
    %c0_32 = arith.constant 0 : index
    %c0_33 = arith.constant 0 : index
    %88 = vector.load %arg4[%c0_32, %c0_33] : memref<224x32xbf16, #tpu.memory_space<vmem>>, vector<224x32xbf16>
    %cst_34 = arith.constant dense<0.000000e+00> : vector<224x128xf32>
    %89 = tpu.matmul %88, %87, %cst_34 {dimension_numbers = #tpu.dot_dimension_numbers<[1], [0], [0], [1], [0, 0, 1, 1], [], []>} : vector<224x32xbf16>, vector<32x128xbf16>, vector<224x128xf32> -> vector<224x128xf32>
    %90 = arith.truncf %89 : vector<224x128xf32> to vector<224x128xbf16>
    %cst_35 = arith.constant 0.000000e+00 : f32
    %91 = vector.broadcast %cst_35 : f32 to vector<32x128xf32>
    %92 = vector.extract_strided_slice %90 {offsets = [0, 0], sizes = [32, 128], strides = [1, 1]} : vector<224x128xbf16> to vector<32x128xbf16>
    %c0_36 = arith.constant 0 : index
    %c0_37 = arith.constant 0 : index
    %c0_38 = arith.constant 0 : index
    %c0_39 = arith.constant 0 : index
    %93 = vector.load %arg5[%c0_36, %c0_37, %c0_38, %c0_39] : memref<3x7x128x128xbf16, #tpu.memory_space<vmem>>, vector<1x1x128x128xbf16>
    %94 = vector.shape_cast %93 : vector<1x1x128x128xbf16> to vector<128x128xbf16>
    %cst_40 = arith.constant dense<0.000000e+00> : vector<32x128xf32>
    %95 = tpu.matmul %92, %94, %cst_40 {dimension_numbers = #tpu.dot_dimension_numbers<[1], [0], [0], [1], [0, 0, 1, 1], [], []>} : vector<32x128xbf16>, vector<128x128xbf16>, vector<32x128xf32> -> vector<32x128xf32>
    %96 = arith.addf %91, %95 : vector<32x128xf32>
    %97 = vector.extract_strided_slice %90 {offsets = [32, 0], sizes = [32, 128], strides = [1, 1]} : vector<224x128xbf16> to vector<32x128xbf16>
    %c0_41 = arith.constant 0 : index
    %c1_42 = arith.constant 1 : index
    %c0_43 = arith.constant 0 : index
    %c0_44 = arith.constant 0 : index
    %98 = vector.load %arg5[%c0_41, %c1_42, %c0_43, %c0_44] : memref<3x7x128x128xbf16, #tpu.memory_space<vmem>>, vector<1x1x128x128xbf16>
    %99 = vector.shape_cast %98 : vector<1x1x128x128xbf16> to vector<128x128xbf16>
    %cst_45 = arith.constant dense<0.000000e+00> : vector<32x128xf32>
    %100 = tpu.matmul %97, %99, %cst_45 {dimension_numbers = #tpu.dot_dimension_numbers<[1], [0], [0], [1], [0, 0, 1, 1], [], []>} : vector<32x128xbf16>, vector<128x128xbf16>, vector<32x128xf32> -> vector<32x128xf32>
    %101 = arith.addf %96, %100 : vector<32x128xf32>
    %102 = vector.extract_strided_slice %90 {offsets = [64, 0], sizes = [32, 128], strides = [1, 1]} : vector<224x128xbf16> to vector<32x128xbf16>
    %c0_46 = arith.constant 0 : index
    %c2_47 = arith.constant 2 : index
    %c0_48 = arith.constant 0 : index
    %c0_49 = arith.constant 0 : index
    %103 = vector.load %arg5[%c0_46, %c2_47, %c0_48, %c0_49] : memref<3x7x128x128xbf16, #tpu.memory_space<vmem>>, vector<1x1x128x128xbf16>
    %104 = vector.shape_cast %103 : vector<1x1x128x128xbf16> to vector<128x128xbf16>
    %cst_50 = arith.constant dense<0.000000e+00> : vector<32x128xf32>
    %105 = tpu.matmul %102, %104, %cst_50 {dimension_numbers = #tpu.dot_dimension_numbers<[1], [0], [0], [1], [0, 0, 1, 1], [], []>} : vector<32x128xbf16>, vector<128x128xbf16>, vector<32x128xf32> -> vector<32x128xf32>
    %106 = arith.addf %101, %105 : vector<32x128xf32>
    %107 = vector.extract_strided_slice %90 {offsets = [96, 0], sizes = [32, 128], strides = [1, 1]} : vector<224x128xbf16> to vector<32x128xbf16>
    %c0_51 = arith.constant 0 : index
    %c3_52 = arith.constant 3 : index
    %c0_53 = arith.constant 0 : index
    %c0_54 = arith.constant 0 : index
    %108 = vector.load %arg5[%c0_51, %c3_52, %c0_53, %c0_54] : memref<3x7x128x128xbf16, #tpu.memory_space<vmem>>, vector<1x1x128x128xbf16>
    %109 = vector.shape_cast %108 : vector<1x1x128x128xbf16> to vector<128x128xbf16>
    %cst_55 = arith.constant dense<0.000000e+00> : vector<32x128xf32>
    %110 = tpu.matmul %107, %109, %cst_55 {dimension_numbers = #tpu.dot_dimension_numbers<[1], [0], [0], [1], [0, 0, 1, 1], [], []>} : vector<32x128xbf16>, vector<128x128xbf16>, vector<32x128xf32> -> vector<32x128xf32>
    %111 = arith.addf %106, %110 : vector<32x128xf32>
    %112 = vector.extract_strided_slice %90 {offsets = [128, 0], sizes = [32, 128], strides = [1, 1]} : vector<224x128xbf16> to vector<32x128xbf16>
    %c0_56 = arith.constant 0 : index
    %c4 = arith.constant 4 : index
    %c0_57 = arith.constant 0 : index
    %c0_58 = arith.constant 0 : index
    %113 = vector.load %arg5[%c0_56, %c4, %c0_57, %c0_58] : memref<3x7x128x128xbf16, #tpu.memory_space<vmem>>, vector<1x1x128x128xbf16>
    %114 = vector.shape_cast %113 : vector<1x1x128x128xbf16> to vector<128x128xbf16>
    %cst_59 = arith.constant dense<0.000000e+00> : vector<32x128xf32>
    %115 = tpu.matmul %112, %114, %cst_59 {dimension_numbers = #tpu.dot_dimension_numbers<[1], [0], [0], [1], [0, 0, 1, 1], [], []>} : vector<32x128xbf16>, vector<128x128xbf16>, vector<32x128xf32> -> vector<32x128xf32>
    %116 = arith.addf %111, %115 : vector<32x128xf32>
    %117 = vector.extract_strided_slice %90 {offsets = [160, 0], sizes = [32, 128], strides = [1, 1]} : vector<224x128xbf16> to vector<32x128xbf16>
    %c0_60 = arith.constant 0 : index
    %c5 = arith.constant 5 : index
    %c0_61 = arith.constant 0 : index
    %c0_62 = arith.constant 0 : index
    %118 = vector.load %arg5[%c0_60, %c5, %c0_61, %c0_62] : memref<3x7x128x128xbf16, #tpu.memory_space<vmem>>, vector<1x1x128x128xbf16>
    %119 = vector.shape_cast %118 : vector<1x1x128x128xbf16> to vector<128x128xbf16>
    %cst_63 = arith.constant dense<0.000000e+00> : vector<32x128xf32>
    %120 = tpu.matmul %117, %119, %cst_63 {dimension_numbers = #tpu.dot_dimension_numbers<[1], [0], [0], [1], [0, 0, 1, 1], [], []>} : vector<32x128xbf16>, vector<128x128xbf16>, vector<32x128xf32> -> vector<32x128xf32>
    %121 = arith.addf %116, %120 : vector<32x128xf32>
    %122 = vector.extract_strided_slice %90 {offsets = [192, 0], sizes = [32, 128], strides = [1, 1]} : vector<224x128xbf16> to vector<32x128xbf16>
    %c0_64 = arith.constant 0 : index
    %c6 = arith.constant 6 : index
    %c0_65 = arith.constant 0 : index
    %c0_66 = arith.constant 0 : index
    %123 = vector.load %arg5[%c0_64, %c6, %c0_65, %c0_66] : memref<3x7x128x128xbf16, #tpu.memory_space<vmem>>, vector<1x1x128x128xbf16>
    %124 = vector.shape_cast %123 : vector<1x1x128x128xbf16> to vector<128x128xbf16>
    %cst_67 = arith.constant dense<0.000000e+00> : vector<32x128xf32>
    %125 = tpu.matmul %122, %124, %cst_67 {dimension_numbers = #tpu.dot_dimension_numbers<[1], [0], [0], [1], [0, 0, 1, 1], [], []>} : vector<32x128xbf16>, vector<128x128xbf16>, vector<32x128xf32> -> vector<32x128xf32>
    %126 = arith.addf %121, %125 : vector<32x128xf32>
    %c4_68 = arith.constant 4 : index
    %c0_69 = arith.constant 0 : index
    %127 = vector.load %arg3[%c4_68, %c0_69] : memref<13x128xf32, #tpu.memory_space<vmem>>, vector<1x128xf32>
    %128 = vector.broadcast %127 : vector<1x128xf32> to vector<32x128xf32>
    %129 = arith.addf %126, %128 : vector<32x128xf32>
    %c5_70 = arith.constant 5 : index
    %c0_71 = arith.constant 0 : index
    %130 = vector.load %arg3[%c5_70, %c0_71] : memref<13x128xf32, #tpu.memory_space<vmem>>, vector<1x128xf32>
    %c6_72 = arith.constant 6 : index
    %c0_73 = arith.constant 0 : index
    %131 = vector.load %arg3[%c6_72, %c0_73] : memref<13x128xf32, #tpu.memory_space<vmem>>, vector<1x128xf32>
    %132 = vector.shape_cast %129 : vector<32x128xf32> to vector<2x16x128xf32>
    %cst_74 = arith.constant dense<0.000000e+00> : vector<2x16xf32>
    %133 = vector.multi_reduction <add>, %132, %cst_74 [2] : vector<2x16x128xf32> to vector<2x16xf32>
    %134 = vector.shape_cast %133 : vector<2x16xf32> to vector<2x16x1xf32>
    %cst_75 = arith.constant dense<0.000000e+00> : vector<2x1xf32>
    %135 = vector.multi_reduction <add>, %134, %cst_75 [1] : vector<2x16x1xf32> to vector<2x1xf32>
    %136 = vector.shape_cast %135 : vector<2x1xf32> to vector<2x1x1xf32>
    %137 = arith.mulf %132, %132 : vector<2x16x128xf32>
    %cst_76 = arith.constant dense<0.000000e+00> : vector<2x16xf32>
    %138 = vector.multi_reduction <add>, %137, %cst_76 [2] : vector<2x16x128xf32> to vector<2x16xf32>
    %139 = vector.shape_cast %138 : vector<2x16xf32> to vector<2x16x1xf32>
    %cst_77 = arith.constant dense<0.000000e+00> : vector<2x1xf32>
    %140 = vector.multi_reduction <add>, %139, %cst_77 [1] : vector<2x16x1xf32> to vector<2x1xf32>
    %141 = vector.shape_cast %140 : vector<2x1xf32> to vector<2x1x1xf32>
    %cst_78 = arith.constant 4.8828125E-4 : f32
    %142 = vector.broadcast %cst_78 : f32 to vector<2x1x1xf32>
    %143 = arith.mulf %136, %142 : vector<2x1x1xf32>
    %cst_79 = arith.constant 4.8828125E-4 : f32
    %144 = vector.broadcast %cst_79 : f32 to vector<2x1x1xf32>
    %145 = arith.mulf %141, %144 : vector<2x1x1xf32>
    %146 = arith.mulf %143, %143 : vector<2x1x1xf32>
    %147 = arith.subf %145, %146 : vector<2x1x1xf32>
    %cst_80 = arith.constant 0.000000e+00 : f32
    %148 = vector.broadcast %cst_80 : f32 to vector<2x1x1xf32>
    %149 = arith.maximumf %147, %148 : vector<2x1x1xf32>
    %cst_81 = arith.constant 9.99999974E-6 : f32
    %150 = vector.broadcast %cst_81 : f32 to vector<2x1x1xf32>
    %151 = arith.addf %149, %150 : vector<2x1x1xf32>
    %152 = math.rsqrt %151 : vector<2x1x1xf32>
    %153 = vector.broadcast %143 : vector<2x1x1xf32> to vector<2x16x128xf32>
    %154 = arith.subf %132, %153 : vector<2x16x128xf32>
    %155 = vector.broadcast %152 : vector<2x1x1xf32> to vector<2x16x128xf32>
    %156 = arith.mulf %154, %155 : vector<2x16x128xf32>
    %157 = vector.shape_cast %156 : vector<2x16x128xf32> to vector<32x128xf32>
    %158 = vector.broadcast %130 : vector<1x128xf32> to vector<32x128xf32>
    %159 = arith.mulf %157, %158 : vector<32x128xf32>
    %160 = vector.broadcast %131 : vector<1x128xf32> to vector<32x128xf32>
    %161 = arith.addf %159, %160 : vector<32x128xf32>
    %162 = arith.truncf %161 : vector<32x128xf32> to vector<32x128xbf16>
    %c0_82 = arith.constant 0 : index
    %c0_83 = arith.constant 0 : index
    %c0_84 = arith.constant 0 : index
    %163 = vector.load %arg6[%c0_82, %c0_83, %c0_84] : memref<3x128x128xbf16, #tpu.memory_space<vmem>>, vector<1x128x128xbf16>
    %164 = vector.shape_cast %163 : vector<1x128x128xbf16> to vector<128x128xbf16>
    %cst_85 = arith.constant dense<0.000000e+00> : vector<32x128xf32>
    %165 = tpu.matmul %162, %164, %cst_85 {dimension_numbers = #tpu.dot_dimension_numbers<[1], [0], [0], [1], [0, 0, 1, 1], [], []>} : vector<32x128xbf16>, vector<128x128xbf16>, vector<32x128xf32> -> vector<32x128xf32>
    %cst_86 = arith.constant 5.000000e-01 : f32
    %166 = vector.broadcast %cst_86 : f32 to vector<32x128xf32>
    %167 = arith.mulf %166, %165 : vector<32x128xf32>
    %cst_87 = arith.constant 0.707106769 : f32
    %168 = vector.broadcast %cst_87 : f32 to vector<32x128xf32>
    %169 = arith.mulf %165, %168 : vector<32x128xf32>
    %cst_88 = arith.constant 0.000000e+00 : f32
    %170 = vector.broadcast %cst_88 : f32 to vector<32x128xf32>
    %171 = arith.cmpf oge, %169, %170 : vector<32x128xf32>
    %cst_89 = arith.constant 1.000000e+00 : f32
    %cst_90 = arith.constant -1.000000e+00 : f32
    %172 = vector.broadcast %cst_89 : f32 to vector<32x128xf32>
    %173 = vector.broadcast %cst_90 : f32 to vector<32x128xf32>
    %174 = arith.select %171, %172, %173 : vector<32x128xi1>, vector<32x128xf32>
    %175 = math.absf %169 : vector<32x128xf32>
    %cst_91 = arith.constant 0.327591091 : f32
    %176 = vector.broadcast %cst_91 : f32 to vector<32x128xf32>
    %177 = arith.mulf %176, %175 : vector<32x128xf32>
    %cst_92 = arith.constant 1.000000e+00 : f32
    %178 = vector.broadcast %cst_92 : f32 to vector<32x128xf32>
    %179 = arith.addf %178, %177 : vector<32x128xf32>
    %180 = tpu.reciprocal %179 {approx = true} : vector<32x128xf32> -> vector<32x128xf32>
    %181 = arith.mulf %179, %180 : vector<32x128xf32>
    %cst_93 = arith.constant 2.000000e+00 : f32
    %182 = vector.broadcast %cst_93 : f32 to vector<32x128xf32>
    %183 = arith.subf %182, %181 : vector<32x128xf32>
    %184 = arith.mulf %180, %183 : vector<32x128xf32>
    %cst_94 = arith.constant 1.06140542 : f32
    %185 = vector.broadcast %cst_94 : f32 to vector<32x128xf32>
    %186 = arith.mulf %185, %184 : vector<32x128xf32>
    %cst_95 = arith.constant -1.45315206 : f32
    %187 = vector.broadcast %cst_95 : f32 to vector<32x128xf32>
    %188 = arith.addf %186, %187 : vector<32x128xf32>
    %189 = arith.mulf %188, %184 : vector<32x128xf32>
    %cst_96 = arith.constant 1.42141378 : f32
    %190 = vector.broadcast %cst_96 : f32 to vector<32x128xf32>
    %191 = arith.addf %189, %190 : vector<32x128xf32>
    %192 = arith.mulf %191, %184 : vector<32x128xf32>
    %cst_97 = arith.constant -0.284496725 : f32
    %193 = vector.broadcast %cst_97 : f32 to vector<32x128xf32>
    %194 = arith.addf %192, %193 : vector<32x128xf32>
    %195 = arith.mulf %194, %184 : vector<32x128xf32>
    %cst_98 = arith.constant 0.254829586 : f32
    %196 = vector.broadcast %cst_98 : f32 to vector<32x128xf32>
    %197 = arith.addf %195, %196 : vector<32x128xf32>
    %198 = arith.mulf %197, %184 : vector<32x128xf32>
    %cst_99 = arith.constant 0.000000e+00 : f32
    %199 = vector.broadcast %cst_99 : f32 to vector<32x128xf32>
    %200 = arith.subf %199, %175 : vector<32x128xf32>
    %201 = arith.mulf %200, %175 : vector<32x128xf32>
    %202 = math.exp %201 : vector<32x128xf32>
    %203 = arith.mulf %198, %202 : vector<32x128xf32>
    %cst_100 = arith.constant 1.000000e+00 : f32
    %204 = vector.broadcast %cst_100 : f32 to vector<32x128xf32>
    %205 = arith.subf %204, %203 : vector<32x128xf32>
    %206 = arith.mulf %174, %205 : vector<32x128xf32>
    %cst_101 = arith.constant 1.000000e+00 : f32
    %207 = vector.broadcast %cst_101 : f32 to vector<32x128xf32>
    %208 = arith.addf %207, %206 : vector<32x128xf32>
    %209 = arith.mulf %167, %208 : vector<32x128xf32>
    %210 = arith.truncf %209 : vector<32x128xf32> to vector<32x128xbf16>
    %c0_102 = arith.constant 0 : index
    %c0_103 = arith.constant 0 : index
    %c0_104 = arith.constant 0 : index
    %211 = vector.load %arg7[%c0_102, %c0_103, %c0_104] : memref<3x128x128xbf16, #tpu.memory_space<vmem>>, vector<1x128x128xbf16>
    %212 = vector.shape_cast %211 : vector<1x128x128xbf16> to vector<128x128xbf16>
    %cst_105 = arith.constant dense<0.000000e+00> : vector<32x128xf32>
    %213 = tpu.matmul %210, %212, %cst_105 {dimension_numbers = #tpu.dot_dimension_numbers<[1], [0], [0], [1], [0, 0, 1, 1], [], []>} : vector<32x128xbf16>, vector<128x128xbf16>, vector<32x128xf32> -> vector<32x128xf32>
    %214 = arith.addf %213, %86 : vector<32x128xf32>
    %215 = arith.addf %214, %10 : vector<32x128xf32>
    %216 = arith.truncf %215 : vector<32x128xf32> to vector<32x128xbf16>
    %c0_106 = arith.constant 0 : index
    %c0_107 = arith.constant 0 : index
    %217 = vector.load %arg4[%c0_106, %c0_107] : memref<224x32xbf16, #tpu.memory_space<vmem>>, vector<224x32xbf16>
    %cst_108 = arith.constant dense<0.000000e+00> : vector<224x128xf32>
    %218 = tpu.matmul %217, %216, %cst_108 {dimension_numbers = #tpu.dot_dimension_numbers<[1], [0], [0], [1], [0, 0, 1, 1], [], []>} : vector<224x32xbf16>, vector<32x128xbf16>, vector<224x128xf32> -> vector<224x128xf32>
    %219 = arith.truncf %218 : vector<224x128xf32> to vector<224x128xbf16>
    %cst_109 = arith.constant 0.000000e+00 : f32
    %220 = vector.broadcast %cst_109 : f32 to vector<32x128xf32>
    %221 = vector.extract_strided_slice %219 {offsets = [0, 0], sizes = [32, 128], strides = [1, 1]} : vector<224x128xbf16> to vector<32x128xbf16>
    %c1_110 = arith.constant 1 : index
    %c0_111 = arith.constant 0 : index
    %c0_112 = arith.constant 0 : index
    %c0_113 = arith.constant 0 : index
    %222 = vector.load %arg5[%c1_110, %c0_111, %c0_112, %c0_113] : memref<3x7x128x128xbf16, #tpu.memory_space<vmem>>, vector<1x1x128x128xbf16>
    %223 = vector.shape_cast %222 : vector<1x1x128x128xbf16> to vector<128x128xbf16>
    %cst_114 = arith.constant dense<0.000000e+00> : vector<32x128xf32>
    %224 = tpu.matmul %221, %223, %cst_114 {dimension_numbers = #tpu.dot_dimension_numbers<[1], [0], [0], [1], [0, 0, 1, 1], [], []>} : vector<32x128xbf16>, vector<128x128xbf16>, vector<32x128xf32> -> vector<32x128xf32>
    %225 = arith.addf %220, %224 : vector<32x128xf32>
    %226 = vector.extract_strided_slice %219 {offsets = [32, 0], sizes = [32, 128], strides = [1, 1]} : vector<224x128xbf16> to vector<32x128xbf16>
    %c1_115 = arith.constant 1 : index
    %c1_116 = arith.constant 1 : index
    %c0_117 = arith.constant 0 : index
    %c0_118 = arith.constant 0 : index
    %227 = vector.load %arg5[%c1_115, %c1_116, %c0_117, %c0_118] : memref<3x7x128x128xbf16, #tpu.memory_space<vmem>>, vector<1x1x128x128xbf16>
    %228 = vector.shape_cast %227 : vector<1x1x128x128xbf16> to vector<128x128xbf16>
    %cst_119 = arith.constant dense<0.000000e+00> : vector<32x128xf32>
    %229 = tpu.matmul %226, %228, %cst_119 {dimension_numbers = #tpu.dot_dimension_numbers<[1], [0], [0], [1], [0, 0, 1, 1], [], []>} : vector<32x128xbf16>, vector<128x128xbf16>, vector<32x128xf32> -> vector<32x128xf32>
    %230 = arith.addf %225, %229 : vector<32x128xf32>
    %231 = vector.extract_strided_slice %219 {offsets = [64, 0], sizes = [32, 128], strides = [1, 1]} : vector<224x128xbf16> to vector<32x128xbf16>
    %c1_120 = arith.constant 1 : index
    %c2_121 = arith.constant 2 : index
    %c0_122 = arith.constant 0 : index
    %c0_123 = arith.constant 0 : index
    %232 = vector.load %arg5[%c1_120, %c2_121, %c0_122, %c0_123] : memref<3x7x128x128xbf16, #tpu.memory_space<vmem>>, vector<1x1x128x128xbf16>
    %233 = vector.shape_cast %232 : vector<1x1x128x128xbf16> to vector<128x128xbf16>
    %cst_124 = arith.constant dense<0.000000e+00> : vector<32x128xf32>
    %234 = tpu.matmul %231, %233, %cst_124 {dimension_numbers = #tpu.dot_dimension_numbers<[1], [0], [0], [1], [0, 0, 1, 1], [], []>} : vector<32x128xbf16>, vector<128x128xbf16>, vector<32x128xf32> -> vector<32x128xf32>
    %235 = arith.addf %230, %234 : vector<32x128xf32>
    %236 = vector.extract_strided_slice %219 {offsets = [96, 0], sizes = [32, 128], strides = [1, 1]} : vector<224x128xbf16> to vector<32x128xbf16>
    %c1_125 = arith.constant 1 : index
    %c3_126 = arith.constant 3 : index
    %c0_127 = arith.constant 0 : index
    %c0_128 = arith.constant 0 : index
    %237 = vector.load %arg5[%c1_125, %c3_126, %c0_127, %c0_128] : memref<3x7x128x128xbf16, #tpu.memory_space<vmem>>, vector<1x1x128x128xbf16>
    %238 = vector.shape_cast %237 : vector<1x1x128x128xbf16> to vector<128x128xbf16>
    %cst_129 = arith.constant dense<0.000000e+00> : vector<32x128xf32>
    %239 = tpu.matmul %236, %238, %cst_129 {dimension_numbers = #tpu.dot_dimension_numbers<[1], [0], [0], [1], [0, 0, 1, 1], [], []>} : vector<32x128xbf16>, vector<128x128xbf16>, vector<32x128xf32> -> vector<32x128xf32>
    %240 = arith.addf %235, %239 : vector<32x128xf32>
    %241 = vector.extract_strided_slice %219 {offsets = [128, 0], sizes = [32, 128], strides = [1, 1]} : vector<224x128xbf16> to vector<32x128xbf16>
    %c1_130 = arith.constant 1 : index
    %c4_131 = arith.constant 4 : index
    %c0_132 = arith.constant 0 : index
    %c0_133 = arith.constant 0 : index
    %242 = vector.load %arg5[%c1_130, %c4_131, %c0_132, %c0_133] : memref<3x7x128x128xbf16, #tpu.memory_space<vmem>>, vector<1x1x128x128xbf16>
    %243 = vector.shape_cast %242 : vector<1x1x128x128xbf16> to vector<128x128xbf16>
    %cst_134 = arith.constant dense<0.000000e+00> : vector<32x128xf32>
    %244 = tpu.matmul %241, %243, %cst_134 {dimension_numbers = #tpu.dot_dimension_numbers<[1], [0], [0], [1], [0, 0, 1, 1], [], []>} : vector<32x128xbf16>, vector<128x128xbf16>, vector<32x128xf32> -> vector<32x128xf32>
    %245 = arith.addf %240, %244 : vector<32x128xf32>
    %246 = vector.extract_strided_slice %219 {offsets = [160, 0], sizes = [32, 128], strides = [1, 1]} : vector<224x128xbf16> to vector<32x128xbf16>
    %c1_135 = arith.constant 1 : index
    %c5_136 = arith.constant 5 : index
    %c0_137 = arith.constant 0 : index
    %c0_138 = arith.constant 0 : index
    %247 = vector.load %arg5[%c1_135, %c5_136, %c0_137, %c0_138] : memref<3x7x128x128xbf16, #tpu.memory_space<vmem>>, vector<1x1x128x128xbf16>
    %248 = vector.shape_cast %247 : vector<1x1x128x128xbf16> to vector<128x128xbf16>
    %cst_139 = arith.constant dense<0.000000e+00> : vector<32x128xf32>
    %249 = tpu.matmul %246, %248, %cst_139 {dimension_numbers = #tpu.dot_dimension_numbers<[1], [0], [0], [1], [0, 0, 1, 1], [], []>} : vector<32x128xbf16>, vector<128x128xbf16>, vector<32x128xf32> -> vector<32x128xf32>
    %250 = arith.addf %245, %249 : vector<32x128xf32>
    %251 = vector.extract_strided_slice %219 {offsets = [192, 0], sizes = [32, 128], strides = [1, 1]} : vector<224x128xbf16> to vector<32x128xbf16>
    %c1_140 = arith.constant 1 : index
    %c6_141 = arith.constant 6 : index
    %c0_142 = arith.constant 0 : index
    %c0_143 = arith.constant 0 : index
    %252 = vector.load %arg5[%c1_140, %c6_141, %c0_142, %c0_143] : memref<3x7x128x128xbf16, #tpu.memory_space<vmem>>, vector<1x1x128x128xbf16>
    %253 = vector.shape_cast %252 : vector<1x1x128x128xbf16> to vector<128x128xbf16>
    %cst_144 = arith.constant dense<0.000000e+00> : vector<32x128xf32>
    %254 = tpu.matmul %251, %253, %cst_144 {dimension_numbers = #tpu.dot_dimension_numbers<[1], [0], [0], [1], [0, 0, 1, 1], [], []>} : vector<32x128xbf16>, vector<128x128xbf16>, vector<32x128xf32> -> vector<32x128xf32>
    %255 = arith.addf %250, %254 : vector<32x128xf32>
    %c7 = arith.constant 7 : index
    %c0_145 = arith.constant 0 : index
    %256 = vector.load %arg3[%c7, %c0_145] : memref<13x128xf32, #tpu.memory_space<vmem>>, vector<1x128xf32>
    %257 = vector.broadcast %256 : vector<1x128xf32> to vector<32x128xf32>
    %258 = arith.addf %255, %257 : vector<32x128xf32>
    %c8 = arith.constant 8 : index
    %c0_146 = arith.constant 0 : index
    %259 = vector.load %arg3[%c8, %c0_146] : memref<13x128xf32, #tpu.memory_space<vmem>>, vector<1x128xf32>
    %c9 = arith.constant 9 : index
    %c0_147 = arith.constant 0 : index
    %260 = vector.load %arg3[%c9, %c0_147] : memref<13x128xf32, #tpu.memory_space<vmem>>, vector<1x128xf32>
    %261 = vector.shape_cast %258 : vector<32x128xf32> to vector<2x16x128xf32>
    %cst_148 = arith.constant dense<0.000000e+00> : vector<2x16xf32>
    %262 = vector.multi_reduction <add>, %261, %cst_148 [2] : vector<2x16x128xf32> to vector<2x16xf32>
    %263 = vector.shape_cast %262 : vector<2x16xf32> to vector<2x16x1xf32>
    %cst_149 = arith.constant dense<0.000000e+00> : vector<2x1xf32>
    %264 = vector.multi_reduction <add>, %263, %cst_149 [1] : vector<2x16x1xf32> to vector<2x1xf32>
    %265 = vector.shape_cast %264 : vector<2x1xf32> to vector<2x1x1xf32>
    %266 = arith.mulf %261, %261 : vector<2x16x128xf32>
    %cst_150 = arith.constant dense<0.000000e+00> : vector<2x16xf32>
    %267 = vector.multi_reduction <add>, %266, %cst_150 [2] : vector<2x16x128xf32> to vector<2x16xf32>
    %268 = vector.shape_cast %267 : vector<2x16xf32> to vector<2x16x1xf32>
    %cst_151 = arith.constant dense<0.000000e+00> : vector<2x1xf32>
    %269 = vector.multi_reduction <add>, %268, %cst_151 [1] : vector<2x16x1xf32> to vector<2x1xf32>
    %270 = vector.shape_cast %269 : vector<2x1xf32> to vector<2x1x1xf32>
    %cst_152 = arith.constant 4.8828125E-4 : f32
    %271 = vector.broadcast %cst_152 : f32 to vector<2x1x1xf32>
    %272 = arith.mulf %265, %271 : vector<2x1x1xf32>
    %cst_153 = arith.constant 4.8828125E-4 : f32
    %273 = vector.broadcast %cst_153 : f32 to vector<2x1x1xf32>
    %274 = arith.mulf %270, %273 : vector<2x1x1xf32>
    %275 = arith.mulf %272, %272 : vector<2x1x1xf32>
    %276 = arith.subf %274, %275 : vector<2x1x1xf32>
    %cst_154 = arith.constant 0.000000e+00 : f32
    %277 = vector.broadcast %cst_154 : f32 to vector<2x1x1xf32>
    %278 = arith.maximumf %276, %277 : vector<2x1x1xf32>
    %cst_155 = arith.constant 9.99999974E-6 : f32
    %279 = vector.broadcast %cst_155 : f32 to vector<2x1x1xf32>
    %280 = arith.addf %278, %279 : vector<2x1x1xf32>
    %281 = math.rsqrt %280 : vector<2x1x1xf32>
    %282 = vector.broadcast %272 : vector<2x1x1xf32> to vector<2x16x128xf32>
    %283 = arith.subf %261, %282 : vector<2x16x128xf32>
    %284 = vector.broadcast %281 : vector<2x1x1xf32> to vector<2x16x128xf32>
    %285 = arith.mulf %283, %284 : vector<2x16x128xf32>
    %286 = vector.shape_cast %285 : vector<2x16x128xf32> to vector<32x128xf32>
    %287 = vector.broadcast %259 : vector<1x128xf32> to vector<32x128xf32>
    %288 = arith.mulf %286, %287 : vector<32x128xf32>
    %289 = vector.broadcast %260 : vector<1x128xf32> to vector<32x128xf32>
    %290 = arith.addf %288, %289 : vector<32x128xf32>
    %291 = arith.truncf %290 : vector<32x128xf32> to vector<32x128xbf16>
    %c1_156 = arith.constant 1 : index
    %c0_157 = arith.constant 0 : index
    %c0_158 = arith.constant 0 : index
    %292 = vector.load %arg6[%c1_156, %c0_157, %c0_158] : memref<3x128x128xbf16, #tpu.memory_space<vmem>>, vector<1x128x128xbf16>
    %293 = vector.shape_cast %292 : vector<1x128x128xbf16> to vector<128x128xbf16>
    %cst_159 = arith.constant dense<0.000000e+00> : vector<32x128xf32>
    %294 = tpu.matmul %291, %293, %cst_159 {dimension_numbers = #tpu.dot_dimension_numbers<[1], [0], [0], [1], [0, 0, 1, 1], [], []>} : vector<32x128xbf16>, vector<128x128xbf16>, vector<32x128xf32> -> vector<32x128xf32>
    %cst_160 = arith.constant 5.000000e-01 : f32
    %295 = vector.broadcast %cst_160 : f32 to vector<32x128xf32>
    %296 = arith.mulf %295, %294 : vector<32x128xf32>
    %cst_161 = arith.constant 0.707106769 : f32
    %297 = vector.broadcast %cst_161 : f32 to vector<32x128xf32>
    %298 = arith.mulf %294, %297 : vector<32x128xf32>
    %cst_162 = arith.constant 0.000000e+00 : f32
    %299 = vector.broadcast %cst_162 : f32 to vector<32x128xf32>
    %300 = arith.cmpf oge, %298, %299 : vector<32x128xf32>
    %cst_163 = arith.constant 1.000000e+00 : f32
    %cst_164 = arith.constant -1.000000e+00 : f32
    %301 = vector.broadcast %cst_163 : f32 to vector<32x128xf32>
    %302 = vector.broadcast %cst_164 : f32 to vector<32x128xf32>
    %303 = arith.select %300, %301, %302 : vector<32x128xi1>, vector<32x128xf32>
    %304 = math.absf %298 : vector<32x128xf32>
    %cst_165 = arith.constant 0.327591091 : f32
    %305 = vector.broadcast %cst_165 : f32 to vector<32x128xf32>
    %306 = arith.mulf %305, %304 : vector<32x128xf32>
    %cst_166 = arith.constant 1.000000e+00 : f32
    %307 = vector.broadcast %cst_166 : f32 to vector<32x128xf32>
    %308 = arith.addf %307, %306 : vector<32x128xf32>
    %309 = tpu.reciprocal %308 {approx = true} : vector<32x128xf32> -> vector<32x128xf32>
    %310 = arith.mulf %308, %309 : vector<32x128xf32>
    %cst_167 = arith.constant 2.000000e+00 : f32
    %311 = vector.broadcast %cst_167 : f32 to vector<32x128xf32>
    %312 = arith.subf %311, %310 : vector<32x128xf32>
    %313 = arith.mulf %309, %312 : vector<32x128xf32>
    %cst_168 = arith.constant 1.06140542 : f32
    %314 = vector.broadcast %cst_168 : f32 to vector<32x128xf32>
    %315 = arith.mulf %314, %313 : vector<32x128xf32>
    %cst_169 = arith.constant -1.45315206 : f32
    %316 = vector.broadcast %cst_169 : f32 to vector<32x128xf32>
    %317 = arith.addf %315, %316 : vector<32x128xf32>
    %318 = arith.mulf %317, %313 : vector<32x128xf32>
    %cst_170 = arith.constant 1.42141378 : f32
    %319 = vector.broadcast %cst_170 : f32 to vector<32x128xf32>
    %320 = arith.addf %318, %319 : vector<32x128xf32>
    %321 = arith.mulf %320, %313 : vector<32x128xf32>
    %cst_171 = arith.constant -0.284496725 : f32
    %322 = vector.broadcast %cst_171 : f32 to vector<32x128xf32>
    %323 = arith.addf %321, %322 : vector<32x128xf32>
    %324 = arith.mulf %323, %313 : vector<32x128xf32>
    %cst_172 = arith.constant 0.254829586 : f32
    %325 = vector.broadcast %cst_172 : f32 to vector<32x128xf32>
    %326 = arith.addf %324, %325 : vector<32x128xf32>
    %327 = arith.mulf %326, %313 : vector<32x128xf32>
    %cst_173 = arith.constant 0.000000e+00 : f32
    %328 = vector.broadcast %cst_173 : f32 to vector<32x128xf32>
    %329 = arith.subf %328, %304 : vector<32x128xf32>
    %330 = arith.mulf %329, %304 : vector<32x128xf32>
    %331 = math.exp %330 : vector<32x128xf32>
    %332 = arith.mulf %327, %331 : vector<32x128xf32>
    %cst_174 = arith.constant 1.000000e+00 : f32
    %333 = vector.broadcast %cst_174 : f32 to vector<32x128xf32>
    %334 = arith.subf %333, %332 : vector<32x128xf32>
    %335 = arith.mulf %303, %334 : vector<32x128xf32>
    %cst_175 = arith.constant 1.000000e+00 : f32
    %336 = vector.broadcast %cst_175 : f32 to vector<32x128xf32>
    %337 = arith.addf %336, %335 : vector<32x128xf32>
    %338 = arith.mulf %296, %337 : vector<32x128xf32>
    %339 = arith.truncf %338 : vector<32x128xf32> to vector<32x128xbf16>
    %c1_176 = arith.constant 1 : index
    %c0_177 = arith.constant 0 : index
    %c0_178 = arith.constant 0 : index
    %340 = vector.load %arg7[%c1_176, %c0_177, %c0_178] : memref<3x128x128xbf16, #tpu.memory_space<vmem>>, vector<1x128x128xbf16>
    %341 = vector.shape_cast %340 : vector<1x128x128xbf16> to vector<128x128xbf16>
    %cst_179 = arith.constant dense<0.000000e+00> : vector<32x128xf32>
    %342 = tpu.matmul %339, %341, %cst_179 {dimension_numbers = #tpu.dot_dimension_numbers<[1], [0], [0], [1], [0, 0, 1, 1], [], []>} : vector<32x128xbf16>, vector<128x128xbf16>, vector<32x128xf32> -> vector<32x128xf32>
    %343 = arith.addf %342, %215 : vector<32x128xf32>
    %344 = arith.truncf %343 : vector<32x128xf32> to vector<32x128xbf16>
    %c0_180 = arith.constant 0 : index
    %c0_181 = arith.constant 0 : index
    %345 = vector.load %arg4[%c0_180, %c0_181] : memref<224x32xbf16, #tpu.memory_space<vmem>>, vector<224x32xbf16>
    %cst_182 = arith.constant dense<0.000000e+00> : vector<224x128xf32>
    %346 = tpu.matmul %345, %344, %cst_182 {dimension_numbers = #tpu.dot_dimension_numbers<[1], [0], [0], [1], [0, 0, 1, 1], [], []>} : vector<224x32xbf16>, vector<32x128xbf16>, vector<224x128xf32> -> vector<224x128xf32>
    %347 = arith.truncf %346 : vector<224x128xf32> to vector<224x128xbf16>
    %cst_183 = arith.constant 0.000000e+00 : f32
    %348 = vector.broadcast %cst_183 : f32 to vector<32x128xf32>
    %349 = vector.extract_strided_slice %347 {offsets = [0, 0], sizes = [32, 128], strides = [1, 1]} : vector<224x128xbf16> to vector<32x128xbf16>
    %c2_184 = arith.constant 2 : index
    %c0_185 = arith.constant 0 : index
    %c0_186 = arith.constant 0 : index
    %c0_187 = arith.constant 0 : index
    %350 = vector.load %arg5[%c2_184, %c0_185, %c0_186, %c0_187] : memref<3x7x128x128xbf16, #tpu.memory_space<vmem>>, vector<1x1x128x128xbf16>
    %351 = vector.shape_cast %350 : vector<1x1x128x128xbf16> to vector<128x128xbf16>
    %cst_188 = arith.constant dense<0.000000e+00> : vector<32x128xf32>
    %352 = tpu.matmul %349, %351, %cst_188 {dimension_numbers = #tpu.dot_dimension_numbers<[1], [0], [0], [1], [0, 0, 1, 1], [], []>} : vector<32x128xbf16>, vector<128x128xbf16>, vector<32x128xf32> -> vector<32x128xf32>
    %353 = arith.addf %348, %352 : vector<32x128xf32>
    %354 = vector.extract_strided_slice %347 {offsets = [32, 0], sizes = [32, 128], strides = [1, 1]} : vector<224x128xbf16> to vector<32x128xbf16>
    %c2_189 = arith.constant 2 : index
    %c1_190 = arith.constant 1 : index
    %c0_191 = arith.constant 0 : index
    %c0_192 = arith.constant 0 : index
    %355 = vector.load %arg5[%c2_189, %c1_190, %c0_191, %c0_192] : memref<3x7x128x128xbf16, #tpu.memory_space<vmem>>, vector<1x1x128x128xbf16>
    %356 = vector.shape_cast %355 : vector<1x1x128x128xbf16> to vector<128x128xbf16>
    %cst_193 = arith.constant dense<0.000000e+00> : vector<32x128xf32>
    %357 = tpu.matmul %354, %356, %cst_193 {dimension_numbers = #tpu.dot_dimension_numbers<[1], [0], [0], [1], [0, 0, 1, 1], [], []>} : vector<32x128xbf16>, vector<128x128xbf16>, vector<32x128xf32> -> vector<32x128xf32>
    %358 = arith.addf %353, %357 : vector<32x128xf32>
    %359 = vector.extract_strided_slice %347 {offsets = [64, 0], sizes = [32, 128], strides = [1, 1]} : vector<224x128xbf16> to vector<32x128xbf16>
    %c2_194 = arith.constant 2 : index
    %c2_195 = arith.constant 2 : index
    %c0_196 = arith.constant 0 : index
    %c0_197 = arith.constant 0 : index
    %360 = vector.load %arg5[%c2_194, %c2_195, %c0_196, %c0_197] : memref<3x7x128x128xbf16, #tpu.memory_space<vmem>>, vector<1x1x128x128xbf16>
    %361 = vector.shape_cast %360 : vector<1x1x128x128xbf16> to vector<128x128xbf16>
    %cst_198 = arith.constant dense<0.000000e+00> : vector<32x128xf32>
    %362 = tpu.matmul %359, %361, %cst_198 {dimension_numbers = #tpu.dot_dimension_numbers<[1], [0], [0], [1], [0, 0, 1, 1], [], []>} : vector<32x128xbf16>, vector<128x128xbf16>, vector<32x128xf32> -> vector<32x128xf32>
    %363 = arith.addf %358, %362 : vector<32x128xf32>
    %364 = vector.extract_strided_slice %347 {offsets = [96, 0], sizes = [32, 128], strides = [1, 1]} : vector<224x128xbf16> to vector<32x128xbf16>
    %c2_199 = arith.constant 2 : index
    %c3_200 = arith.constant 3 : index
    %c0_201 = arith.constant 0 : index
    %c0_202 = arith.constant 0 : index
    %365 = vector.load %arg5[%c2_199, %c3_200, %c0_201, %c0_202] : memref<3x7x128x128xbf16, #tpu.memory_space<vmem>>, vector<1x1x128x128xbf16>
    %366 = vector.shape_cast %365 : vector<1x1x128x128xbf16> to vector<128x128xbf16>
    %cst_203 = arith.constant dense<0.000000e+00> : vector<32x128xf32>
    %367 = tpu.matmul %364, %366, %cst_203 {dimension_numbers = #tpu.dot_dimension_numbers<[1], [0], [0], [1], [0, 0, 1, 1], [], []>} : vector<32x128xbf16>, vector<128x128xbf16>, vector<32x128xf32> -> vector<32x128xf32>
    %368 = arith.addf %363, %367 : vector<32x128xf32>
    %369 = vector.extract_strided_slice %347 {offsets = [128, 0], sizes = [32, 128], strides = [1, 1]} : vector<224x128xbf16> to vector<32x128xbf16>
    %c2_204 = arith.constant 2 : index
    %c4_205 = arith.constant 4 : index
    %c0_206 = arith.constant 0 : index
    %c0_207 = arith.constant 0 : index
    %370 = vector.load %arg5[%c2_204, %c4_205, %c0_206, %c0_207] : memref<3x7x128x128xbf16, #tpu.memory_space<vmem>>, vector<1x1x128x128xbf16>
    %371 = vector.shape_cast %370 : vector<1x1x128x128xbf16> to vector<128x128xbf16>
    %cst_208 = arith.constant dense<0.000000e+00> : vector<32x128xf32>
    %372 = tpu.matmul %369, %371, %cst_208 {dimension_numbers = #tpu.dot_dimension_numbers<[1], [0], [0], [1], [0, 0, 1, 1], [], []>} : vector<32x128xbf16>, vector<128x128xbf16>, vector<32x128xf32> -> vector<32x128xf32>
    %373 = arith.addf %368, %372 : vector<32x128xf32>
    %374 = vector.extract_strided_slice %347 {offsets = [160, 0], sizes = [32, 128], strides = [1, 1]} : vector<224x128xbf16> to vector<32x128xbf16>
    %c2_209 = arith.constant 2 : index
    %c5_210 = arith.constant 5 : index
    %c0_211 = arith.constant 0 : index
    %c0_212 = arith.constant 0 : index
    %375 = vector.load %arg5[%c2_209, %c5_210, %c0_211, %c0_212] : memref<3x7x128x128xbf16, #tpu.memory_space<vmem>>, vector<1x1x128x128xbf16>
    %376 = vector.shape_cast %375 : vector<1x1x128x128xbf16> to vector<128x128xbf16>
    %cst_213 = arith.constant dense<0.000000e+00> : vector<32x128xf32>
    %377 = tpu.matmul %374, %376, %cst_213 {dimension_numbers = #tpu.dot_dimension_numbers<[1], [0], [0], [1], [0, 0, 1, 1], [], []>} : vector<32x128xbf16>, vector<128x128xbf16>, vector<32x128xf32> -> vector<32x128xf32>
    %378 = arith.addf %373, %377 : vector<32x128xf32>
    %379 = vector.extract_strided_slice %347 {offsets = [192, 0], sizes = [32, 128], strides = [1, 1]} : vector<224x128xbf16> to vector<32x128xbf16>
    %c2_214 = arith.constant 2 : index
    %c6_215 = arith.constant 6 : index
    %c0_216 = arith.constant 0 : index
    %c0_217 = arith.constant 0 : index
    %380 = vector.load %arg5[%c2_214, %c6_215, %c0_216, %c0_217] : memref<3x7x128x128xbf16, #tpu.memory_space<vmem>>, vector<1x1x128x128xbf16>
    %381 = vector.shape_cast %380 : vector<1x1x128x128xbf16> to vector<128x128xbf16>
    %cst_218 = arith.constant dense<0.000000e+00> : vector<32x128xf32>
    %382 = tpu.matmul %379, %381, %cst_218 {dimension_numbers = #tpu.dot_dimension_numbers<[1], [0], [0], [1], [0, 0, 1, 1], [], []>} : vector<32x128xbf16>, vector<128x128xbf16>, vector<32x128xf32> -> vector<32x128xf32>
    %383 = arith.addf %378, %382 : vector<32x128xf32>
    %c10 = arith.constant 10 : index
    %c0_219 = arith.constant 0 : index
    %384 = vector.load %arg3[%c10, %c0_219] : memref<13x128xf32, #tpu.memory_space<vmem>>, vector<1x128xf32>
    %385 = vector.broadcast %384 : vector<1x128xf32> to vector<32x128xf32>
    %386 = arith.addf %383, %385 : vector<32x128xf32>
    %c11 = arith.constant 11 : index
    %c0_220 = arith.constant 0 : index
    %387 = vector.load %arg3[%c11, %c0_220] : memref<13x128xf32, #tpu.memory_space<vmem>>, vector<1x128xf32>
    %c12 = arith.constant 12 : index
    %c0_221 = arith.constant 0 : index
    %388 = vector.load %arg3[%c12, %c0_221] : memref<13x128xf32, #tpu.memory_space<vmem>>, vector<1x128xf32>
    %389 = vector.shape_cast %386 : vector<32x128xf32> to vector<2x16x128xf32>
    %cst_222 = arith.constant dense<0.000000e+00> : vector<2x16xf32>
    %390 = vector.multi_reduction <add>, %389, %cst_222 [2] : vector<2x16x128xf32> to vector<2x16xf32>
    %391 = vector.shape_cast %390 : vector<2x16xf32> to vector<2x16x1xf32>
    %cst_223 = arith.constant dense<0.000000e+00> : vector<2x1xf32>
    %392 = vector.multi_reduction <add>, %391, %cst_223 [1] : vector<2x16x1xf32> to vector<2x1xf32>
    %393 = vector.shape_cast %392 : vector<2x1xf32> to vector<2x1x1xf32>
    %394 = arith.mulf %389, %389 : vector<2x16x128xf32>
    %cst_224 = arith.constant dense<0.000000e+00> : vector<2x16xf32>
    %395 = vector.multi_reduction <add>, %394, %cst_224 [2] : vector<2x16x128xf32> to vector<2x16xf32>
    %396 = vector.shape_cast %395 : vector<2x16xf32> to vector<2x16x1xf32>
    %cst_225 = arith.constant dense<0.000000e+00> : vector<2x1xf32>
    %397 = vector.multi_reduction <add>, %396, %cst_225 [1] : vector<2x16x1xf32> to vector<2x1xf32>
    %398 = vector.shape_cast %397 : vector<2x1xf32> to vector<2x1x1xf32>
    %cst_226 = arith.constant 4.8828125E-4 : f32
    %399 = vector.broadcast %cst_226 : f32 to vector<2x1x1xf32>
    %400 = arith.mulf %393, %399 : vector<2x1x1xf32>
    %cst_227 = arith.constant 4.8828125E-4 : f32
    %401 = vector.broadcast %cst_227 : f32 to vector<2x1x1xf32>
    %402 = arith.mulf %398, %401 : vector<2x1x1xf32>
    %403 = arith.mulf %400, %400 : vector<2x1x1xf32>
    %404 = arith.subf %402, %403 : vector<2x1x1xf32>
    %cst_228 = arith.constant 0.000000e+00 : f32
    %405 = vector.broadcast %cst_228 : f32 to vector<2x1x1xf32>
    %406 = arith.maximumf %404, %405 : vector<2x1x1xf32>
    %cst_229 = arith.constant 9.99999974E-6 : f32
    %407 = vector.broadcast %cst_229 : f32 to vector<2x1x1xf32>
    %408 = arith.addf %406, %407 : vector<2x1x1xf32>
    %409 = math.rsqrt %408 : vector<2x1x1xf32>
    %410 = vector.broadcast %400 : vector<2x1x1xf32> to vector<2x16x128xf32>
    %411 = arith.subf %389, %410 : vector<2x16x128xf32>
    %412 = vector.broadcast %409 : vector<2x1x1xf32> to vector<2x16x128xf32>
    %413 = arith.mulf %411, %412 : vector<2x16x128xf32>
    %414 = vector.shape_cast %413 : vector<2x16x128xf32> to vector<32x128xf32>
    %415 = vector.broadcast %387 : vector<1x128xf32> to vector<32x128xf32>
    %416 = arith.mulf %414, %415 : vector<32x128xf32>
    %417 = vector.broadcast %388 : vector<1x128xf32> to vector<32x128xf32>
    %418 = arith.addf %416, %417 : vector<32x128xf32>
    %419 = arith.truncf %418 : vector<32x128xf32> to vector<32x128xbf16>
    %c2_230 = arith.constant 2 : index
    %c0_231 = arith.constant 0 : index
    %c0_232 = arith.constant 0 : index
    %420 = vector.load %arg6[%c2_230, %c0_231, %c0_232] : memref<3x128x128xbf16, #tpu.memory_space<vmem>>, vector<1x128x128xbf16>
    %421 = vector.shape_cast %420 : vector<1x128x128xbf16> to vector<128x128xbf16>
    %cst_233 = arith.constant dense<0.000000e+00> : vector<32x128xf32>
    %422 = tpu.matmul %419, %421, %cst_233 {dimension_numbers = #tpu.dot_dimension_numbers<[1], [0], [0], [1], [0, 0, 1, 1], [], []>} : vector<32x128xbf16>, vector<128x128xbf16>, vector<32x128xf32> -> vector<32x128xf32>
    %cst_234 = arith.constant 5.000000e-01 : f32
    %423 = vector.broadcast %cst_234 : f32 to vector<32x128xf32>
    %424 = arith.mulf %423, %422 : vector<32x128xf32>
    %cst_235 = arith.constant 0.707106769 : f32
    %425 = vector.broadcast %cst_235 : f32 to vector<32x128xf32>
    %426 = arith.mulf %422, %425 : vector<32x128xf32>
    %cst_236 = arith.constant 0.000000e+00 : f32
    %427 = vector.broadcast %cst_236 : f32 to vector<32x128xf32>
    %428 = arith.cmpf oge, %426, %427 : vector<32x128xf32>
    %cst_237 = arith.constant 1.000000e+00 : f32
    %cst_238 = arith.constant -1.000000e+00 : f32
    %429 = vector.broadcast %cst_237 : f32 to vector<32x128xf32>
    %430 = vector.broadcast %cst_238 : f32 to vector<32x128xf32>
    %431 = arith.select %428, %429, %430 : vector<32x128xi1>, vector<32x128xf32>
    %432 = math.absf %426 : vector<32x128xf32>
    %cst_239 = arith.constant 0.327591091 : f32
    %433 = vector.broadcast %cst_239 : f32 to vector<32x128xf32>
    %434 = arith.mulf %433, %432 : vector<32x128xf32>
    %cst_240 = arith.constant 1.000000e+00 : f32
    %435 = vector.broadcast %cst_240 : f32 to vector<32x128xf32>
    %436 = arith.addf %435, %434 : vector<32x128xf32>
    %437 = tpu.reciprocal %436 {approx = true} : vector<32x128xf32> -> vector<32x128xf32>
    %438 = arith.mulf %436, %437 : vector<32x128xf32>
    %cst_241 = arith.constant 2.000000e+00 : f32
    %439 = vector.broadcast %cst_241 : f32 to vector<32x128xf32>
    %440 = arith.subf %439, %438 : vector<32x128xf32>
    %441 = arith.mulf %437, %440 : vector<32x128xf32>
    %cst_242 = arith.constant 1.06140542 : f32
    %442 = vector.broadcast %cst_242 : f32 to vector<32x128xf32>
    %443 = arith.mulf %442, %441 : vector<32x128xf32>
    %cst_243 = arith.constant -1.45315206 : f32
    %444 = vector.broadcast %cst_243 : f32 to vector<32x128xf32>
    %445 = arith.addf %443, %444 : vector<32x128xf32>
    %446 = arith.mulf %445, %441 : vector<32x128xf32>
    %cst_244 = arith.constant 1.42141378 : f32
    %447 = vector.broadcast %cst_244 : f32 to vector<32x128xf32>
    %448 = arith.addf %446, %447 : vector<32x128xf32>
    %449 = arith.mulf %448, %441 : vector<32x128xf32>
    %cst_245 = arith.constant -0.284496725 : f32
    %450 = vector.broadcast %cst_245 : f32 to vector<32x128xf32>
    %451 = arith.addf %449, %450 : vector<32x128xf32>
    %452 = arith.mulf %451, %441 : vector<32x128xf32>
    %cst_246 = arith.constant 0.254829586 : f32
    %453 = vector.broadcast %cst_246 : f32 to vector<32x128xf32>
    %454 = arith.addf %452, %453 : vector<32x128xf32>
    %455 = arith.mulf %454, %441 : vector<32x128xf32>
    %cst_247 = arith.constant 0.000000e+00 : f32
    %456 = vector.broadcast %cst_247 : f32 to vector<32x128xf32>
    %457 = arith.subf %456, %432 : vector<32x128xf32>
    %458 = arith.mulf %457, %432 : vector<32x128xf32>
    %459 = math.exp %458 : vector<32x128xf32>
    %460 = arith.mulf %455, %459 : vector<32x128xf32>
    %cst_248 = arith.constant 1.000000e+00 : f32
    %461 = vector.broadcast %cst_248 : f32 to vector<32x128xf32>
    %462 = arith.subf %461, %460 : vector<32x128xf32>
    %463 = arith.mulf %431, %462 : vector<32x128xf32>
    %cst_249 = arith.constant 1.000000e+00 : f32
    %464 = vector.broadcast %cst_249 : f32 to vector<32x128xf32>
    %465 = arith.addf %464, %463 : vector<32x128xf32>
    %466 = arith.mulf %424, %465 : vector<32x128xf32>
    %467 = arith.truncf %466 : vector<32x128xf32> to vector<32x128xbf16>
    %c2_250 = arith.constant 2 : index
    %c0_251 = arith.constant 0 : index
    %c0_252 = arith.constant 0 : index
    %468 = vector.load %arg7[%c2_250, %c0_251, %c0_252] : memref<3x128x128xbf16, #tpu.memory_space<vmem>>, vector<1x128x128xbf16>
    %469 = vector.shape_cast %468 : vector<1x128x128xbf16> to vector<128x128xbf16>
    %cst_253 = arith.constant dense<0.000000e+00> : vector<32x128xf32>
    %470 = tpu.matmul %467, %469, %cst_253 {dimension_numbers = #tpu.dot_dimension_numbers<[1], [0], [0], [1], [0, 0, 1, 1], [], []>} : vector<32x128xbf16>, vector<128x128xbf16>, vector<32x128xf32> -> vector<32x128xf32>
    %471 = arith.addf %470, %343 : vector<32x128xf32>
    %c0_254 = arith.constant 0 : index
    %c0_255 = arith.constant 0 : index
    %472 = vector.load %arg8[%c0_254, %c0_255] : memref<32x128xf32, #tpu.memory_space<vmem>>, vector<32x128xf32>
    tpu.vector_store %arg8[%c0_254, %c0_255], %471 {strides = array<i32>} : memref<32x128xf32, #tpu.memory_space<vmem>>, vector<32x128xf32>,
    return
  }
  func.func @transform_0(%arg0: i32) -> (i32, i32) {
    %c0_i32 = arith.constant 0 : i32
    %c0_i32_0 = arith.constant 0 : i32
    return %arg0, %c0_i32 : i32, i32
  }
  func.func @transform_1(%arg0: i32) -> (i32, i32) {
    %c0_i32 = arith.constant 0 : i32
    %c0_i32_0 = arith.constant 0 : i32
    %c0_i32_1 = arith.constant 0 : i32
    return %c0_i32, %c0_i32_0 : i32, i32
  }
  func.func @transform_2(%arg0: i32) -> (i32, i32) {
    %c0_i32 = arith.constant 0 : i32
    %c0_i32_0 = arith.constant 0 : i32
    %c0_i32_1 = arith.constant 0 : i32
    return %c0_i32, %c0_i32_0 : i32, i32
  }
  func.func @transform_3(%arg0: i32) -> (i32, i32) {
    %c0_i32 = arith.constant 0 : i32
    %c0_i32_0 = arith.constant 0 : i32
    %c0_i32_1 = arith.constant 0 : i32
    return %c0_i32, %c0_i32_0 : i32, i32
  }
  func.func @transform_4(%arg0: i32) -> (i32, i32, i32, i32) {
    %c0_i32 = arith.constant 0 : i32
    %c0_i32_0 = arith.constant 0 : i32
    %c0_i32_1 = arith.constant 0 : i32
    %c0_i32_2 = arith.constant 0 : i32
    %c0_i32_3 = arith.constant 0 : i32
    return %c0_i32, %c0_i32_0, %c0_i32_1, %c0_i32_2 : i32, i32, i32, i32
  }
  func.func @transform_5(%arg0: i32) -> (i32, i32, i32) {
    %c0_i32 = arith.constant 0 : i32
    %c0_i32_0 = arith.constant 0 : i32
    %c0_i32_1 = arith.constant 0 : i32
    %c0_i32_2 = arith.constant 0 : i32
    return %c0_i32, %c0_i32_0, %c0_i32_1 : i32, i32, i32
  }
  func.func @transform_6(%arg0: i32) -> (i32, i32, i32) {
    %c0_i32 = arith.constant 0 : i32
    %c0_i32_0 = arith.constant 0 : i32
    %c0_i32_1 = arith.constant 0 : i32
    %c0_i32_2 = arith.constant 0 : i32
    return %c0_i32, %c0_i32_0, %c0_i32_1 : i32, i32, i32
  }
  func.func @transform_7(%arg0: i32) -> (i32, i32) {
    %c0_i32 = arith.constant 0 : i32
    %c0_i32_0 = arith.constant 0 : i32
    return %arg0, %c0_i32 : i32, i32
  }
}

</mosaic_0001>

<bundles_post_ra>
// kernel: tpu_custom_call.1
= control target key start
LH: loop header
LB: loop body
LE: loop exit
PB: predicated region body
PF: predicated region fallthrough
CT: control target
= control target key end

     0   :  { %12 = vsyncpa [#allocation3], 0  ;;  %s7727_s0 = inlined_call_operand.vmem [shape: bf16[32,256], index: 0, kind: input, shape index: {}]   ;;  %s7728_s1 = inlined_call_operand.hbm [shape: bf16[256,256], index: 1, kind: input, shape index: {}]   ;;  %s7729_s2 = inlined_call_operand.vmem [shape: f32[13,128], index: 2, kind: input, shape index: {}]   ;;  %s7730_s3 = inlined_call_operand.vmem [shape: bf16[224,32], index: 3, kind: input, shape index: {}]   ;;  %s7731_s4 = inlined_call_operand.hbm [shape: bf16[3,7,128,128], index: 4, kind: input, shape index: {}]   ;;  %s7732_s5 = inlined_call_operand.hbm [shape: bf16[3,128,128], index: 5, kind: input, shape index: {}]   ;;  %s7733_s6 = inlined_call_operand.hbm [shape: bf16[3,128,128], index: 6, kind: input, shape index: {}]   ;;  %s7734_s7 = inlined_call_operand.hbm [shape: f32[32,128], index: 7, kind: output, shape index: {}]  }
   0x1   :  { %13 = vsyncpa [#allocation6], 0 }
   0x2   :  { %14 = vsyncpa [#allocation9], 0 }
   0x3   :  { %15 = vsyncpa [#allocation4], 0  ;;  %s6878_s24 = smov [#allocation5]   ;;  %s6760_s28 = scalar_lea.hbm %s7731_s4, 21504 }
   0x4   :  { %s39_s25 = sshll.u32 %s6878_s24, 4  ;;  %p6761_p0 = scmp.ne.s32.totalorder %s7731_s4, %s6760_s28  ;;  %s40_s25 = int_to_ptr.vmem [resolvable:$true] %s39_s25 }
   0x5   :  { %p6764_p1 = scmp.lt.u32.totalorder %s6760_s28, %s7731_s4 }
   0x7   :  { %p6766_p2 = pnand %p6764_p1, %p6761_p0 }
   0x9   :  { %6769 = shalt.err (!%p6766_p2)
}
   0xa   :  { %s6770_s10 = scalar_lea.vmem %s40_s25, 21504  ;;  %p6775_p4 = scmp.lt.s32.totalorder %s40_s25, %s40_s25 }
   0xb   :  { %p6771_p3 = scmp.ne.s32.totalorder %s40_s25, %s6770_s10  ;;  %p6776_p5 = scmp.lt.s32.totalorder %s6770_s10, %s6770_s10 }
   0xd   :  { %p6777_p6 = por %p6776_p5, %p6775_p4 }
   0xf   :  { %p6778_p7 = pnand %p6777_p6, %p6771_p3 }
  0x11   :  { %6781 = shalt.err (!%p6778_p7)
}
  0x12   :  { %s6879_s11 = smov 64   ;;  %s6880_s12 = smov 4  }
  0x13   :  { %45 = dma.hbm_to_vmem [thread:$0]  %s7731_s4, 21504, %s40_s25, [#allocation6], %s6879_s11, %s6879_s11, %s6880_s12  }
  0x14   :  { %s6881_s15 = smov [#allocation2]   ;;  %s6782_s19 = scalar_lea.hbm %s7728_s1, 4096 }
  0x15   :  { %s23_s16 = sshll.u32 %s6881_s15, 4  ;;  %p6783_p8 = scmp.ne.s32.totalorder %s7728_s1, %s6782_s19  ;;  %s24_s16 = int_to_ptr.vmem [resolvable:$true] %s23_s16 }
  0x16   :  { %p6786_p9 = scmp.lt.u32.totalorder %s6782_s19, %s7728_s1 }
  0x18   :  { %p6788_p10 = pnand %p6786_p9, %p6783_p8 }
  0x1a   :  { %6791 = shalt.err (!%p6788_p10)
}
  0x1b   :  { %s6792_s24 = scalar_lea.vmem %s24_s16, 4096  ;;  %p6797_p12 = scmp.lt.s32.totalorder %s24_s16, %s24_s16 }
  0x1c   :  { %p6793_p11 = scmp.ne.s32.totalorder %s24_s16, %s6792_s24  ;;  %p6798_p13 = scmp.lt.s32.totalorder %s6792_s24, %s6792_s24 }
  0x1e   :  { %p6799_p0 = por %p6798_p13, %p6797_p12 }
  0x20   :  { %p6800_p1 = pnand %p6799_p0, %p6793_p11 }
  0x22   :  { %6803 = shalt.err (!%p6800_p1)
}
  0x23   :  { %s6882_s4 = smov 128   ;;  %s6883_s25 = smov 8  }
  0x24   :  { %29 = dma.hbm_to_vmem [thread:$0]  %s7728_s1, 4096, %s24_s16, [#allocation3], %s6882_s4, %s6882_s4, %s6883_s25  }
  0x25   :  { %s6884_s28 = smov [#allocation7]   ;;  %s6885_s30 = smov [#allocation8]  }
  0x26   :  { %s51_s29 = sshll.u32 %s6884_s28, 4  ;;  %s63_s8 = sshll.u32 %s6885_s30, 4  ;;  %s52_s29 = int_to_ptr.vmem [resolvable:$true] %s51_s29  ;;  %s6958_s8 = int_to_ptr.vmem [resolvable:$true] %s63_s8 }
  0x27   :  { %s6804_s13 = scalar_lea.hbm %s7732_s5, 3072 }
  0x28   :  { %p6805_p2 = scmp.ne.s32.totalorder %s7732_s5, %s6804_s13  ;;  %p6808_p3 = scmp.lt.u32.totalorder %s6804_s13, %s7732_s5 }
  0x2a   :  { %p6810_p4 = pnand %p6808_p3, %p6805_p2 }
  0x2c   :  { %6813 = shalt.err (!%p6810_p4)
}
  0x2d   :  { %s6814_s1 = scalar_lea.vmem %s52_s29, 3072  ;;  %p6819_p6 = scmp.lt.s32.totalorder %s52_s29, %s52_s29 }
  0x2e   :  { %p6815_p5 = scmp.ne.s32.totalorder %s52_s29, %s6814_s1  ;;  %p6820_p7 = scmp.lt.s32.totalorder %s6814_s1, %s6814_s1 }
  0x30   :  { %p6821_p8 = por %p6820_p7, %p6819_p6 }
  0x32   :  { %p6822_p9 = pnand %p6821_p8, %p6815_p5 }
  0x34   :  { %6825 = shalt.err (!%p6822_p9)
}
  0x35   :  { %57 = dma.hbm_to_vmem [thread:$0]  %s7732_s5, 3072, %s52_s29, [#allocation6], %s6879_s11, %s6879_s11, %s6880_s12  }
  0x36   :  { %s6826_s22 = scalar_lea.hbm %s7733_s6, 3072 }
  0x37   :  { %p6827_p10 = scmp.ne.s32.totalorder %s7733_s6, %s6826_s22  ;;  %p6830_p11 = scmp.lt.u32.totalorder %s6826_s22, %s7733_s6 }
  0x39   :  { %p6832_p12 = pnand %p6830_p11, %p6827_p10 }
  0x3b   :  { %6835 = shalt.err (!%p6832_p12)
}
  0x3c   :  { %s6836_s28 = scalar_lea.vmem %s6958_s8, 3072  ;;  %p6841_p0 = scmp.lt.s32.totalorder %s6958_s8, %s6958_s8 }
  0x3d   :  { %p6837_p13 = scmp.ne.s32.totalorder %s6958_s8, %s6836_s28  ;;  %p6842_p1 = scmp.lt.s32.totalorder %s6836_s28, %s6836_s28 }
  0x3f   :  { %p6843_p2 = por %p6842_p1, %p6841_p0 }
  0x41   :  { %p6844_p3 = pnand %p6843_p2, %p6837_p13 }
  0x43   :  { %6847 = shalt.err (!%p6844_p3)
}
  0x44   :  { %69 = dma.hbm_to_vmem [thread:$0]  %s7733_s6, 3072, %s6958_s8, [#allocation9], %s6879_s11, %s6879_s11, %s6880_s12  }
  0x45   :  { %6870 = dma.done.wait [#allocation3], 4096  }
  0x46   :  { %6871 = vsyncadd [#allocation3], 4294963200 }
  0x47   :  { %6872 = dma.done.wait [#allocation6], 24576  }
  0x48   :  { %6873 = vsyncadd [#allocation6], 4294942720 }
  0x49   :  { %6874 = dma.done.wait [#allocation9], 3072  }
  0x4a   :  { %6875 = vsyncadd [#allocation9], 4294964224  ;;  %v6368_v0 = vld [vmem:[#allocation2 + $0x4] ss:$8 sps:$4 sm:$0xff]   ;;  %v6370_v1 = vld [vmem:[#allocation2] ss:$8 sps:$4 sm:$0xff]  }
  0x4b   :  { %299 = vmatprep.subr.bf16.mxu0 %v6368_v0  ;;  %v6371_v2 = vld [vmem:[#allocation2 + $0x14] ss:$8 sps:$4 sm:$0xff]   ;;  %v6373_v3 = vld [vmem:[#allocation2 + $0x10] ss:$8 sps:$4 sm:$0xff]   ;;  %v6374_v4 = vld [vmem:[#allocation2 + $0x24] ss:$8 sps:$4 sm:$0xff]  }
  0x4c   :  { %300 = vmatpush1.bf16.msra.mxu0 %v6370_v1  ;;  %v6376_v5 = vld [vmem:[#allocation2 + $0x20] ss:$8 sps:$4 sm:$0xff]   ;;  %v6377_v6 = vld [vmem:[#allocation2 + $0x34] ss:$8 sps:$4 sm:$0xff]   ;;  %v6379_v7 = vld [vmem:[#allocation2 + $0x30] ss:$8 sps:$4 sm:$0xff]  }
  0x4d   :  { %301 = vmatprep.subr.bf16.mxu0 %v6371_v2  ;;  %v6380_v8 = vld [vmem:[#allocation2 + $0x44] ss:$8 sps:$4 sm:$0xff]   ;;  %v6382_v9 = vld [vmem:[#allocation2 + $0x40] ss:$8 sps:$4 sm:$0xff]   ;;  %v6383_v10 = vld [vmem:[#allocation2 + $0x54] ss:$8 sps:$4 sm:$0xff]  }
  0x4e   :  { %v6385_v11 = vld [vmem:[#allocation2 + $0x50] ss:$8 sps:$4 sm:$0xff]   ;;  %v6386_v12 = vld [vmem:[#allocation2 + $0x64] ss:$8 sps:$4 sm:$0xff]   ;;  %v6388_v14 = vld [vmem:[#allocation2 + $0x60] ss:$8 sps:$4 sm:$0xff]  }
  0x4f   :  { %v6418_v13 = vld [vmem:[%s7727_s0 + $0x4] ss:$8 sps:$4 sm:$0xff]   ;;  %v6389_v15 = vld [vmem:[#allocation2 + $0x74] ss:$8 sps:$4 sm:$0xff]   ;;  %v6391_v16 = vld [vmem:[#allocation2 + $0x70] ss:$8 sps:$4 sm:$0xff]  }
  0x50   :  { %302 = vmatpush1.bf16.msra.mxu0 %v6373_v3  ;;  %331 = vmatprep.mubr.bf16.mxu0 %v6418_v13  ;;  %v6392_v17 = vld [vmem:[#allocation2 + $0x84] ss:$8 sps:$4 sm:$0xff]   ;;  %v6394_v18 = vld [vmem:[#allocation2 + $0x80] ss:$8 sps:$4 sm:$0xff]   ;;  %v6395_v19 = vld [vmem:[#allocation2 + $0x94] ss:$8 sps:$4 sm:$0xff]  }
  0x51   :  { %303 = vmatprep.subr.bf16.mxu0 %v6374_v4  ;;  %v6397_v20 = vld [vmem:[#allocation2 + $0x90] ss:$8 sps:$4 sm:$0xff]   ;;  %v6398_v21 = vld [vmem:[#allocation2 + $0xa4] ss:$8 sps:$4 sm:$0xff]   ;;  %v6400_v22 = vld [vmem:[#allocation2 + $0xa0] ss:$8 sps:$4 sm:$0xff]  }
  0x52   :  { %v6401_v23 = vld [vmem:[#allocation2 + $0xb4] ss:$8 sps:$4 sm:$0xff]   ;;  %v6403_v24 = vld [vmem:[#allocation2 + $0xb0] ss:$8 sps:$4 sm:$0xff]   ;;  %v6404_v25 = vld [vmem:[#allocation2 + $0xc4] ss:$8 sps:$4 sm:$0xff]  }
  0x53   :  { %v6406_v26 = vld [vmem:[#allocation2 + $0xc0] ss:$8 sps:$4 sm:$0xff]   ;;  %v6407_v27 = vld [vmem:[#allocation2 + $0xd4] ss:$8 sps:$4 sm:$0xff]   ;;  %v6409_v28 = vld [vmem:[#allocation2 + $0xd0] ss:$8 sps:$4 sm:$0xff]  }
  0x54   :  { %304 = vmatpush1.bf16.msra.mxu0 %v6376_v5  ;;  %v6410_v29 = vld [vmem:[#allocation2 + $0xe4] ss:$8 sps:$4 sm:$0xff]   ;;  %v6412_v30 = vld [vmem:[#allocation2 + $0xe0] ss:$8 sps:$4 sm:$0xff]   ;;  %v6413_v31 = vld [vmem:[#allocation2 + $0xf4] ss:$8 sps:$4 sm:$0xff]  }
  0x55   :  { %305 = vmatprep.subr.bf16.mxu0 %v6377_v6  ;;  %v6415_v32 = vld [vmem:[#allocation2 + $0xf0] ss:$8 sps:$4 sm:$0xff]   ;;  %v6416_v33 = vld [vmem:[%s7727_s0] ss:$8 sps:$4 sm:$0xff]   ;;  %v6419_v34 = vld [vmem:[%s7727_s0 + $0x14] ss:$8 sps:$4 sm:$0xff]  }
  0x56   :  { %v6421_v35 = vld [vmem:[%s7727_s0 + $0x10] ss:$8 sps:$4 sm:$0xff]   ;;  %v5047_v36 = vld [vmem:[%s7729_s2] ss:$0 sm:$0xff]  ;;  %vm674_vm0 = vcmask 261120  }
  0x57   :  { %v6422_v53 = vld [vmem:[%s7730_s3] sm:$0xff]  }
  0x58   :  { %306 = vmatpush1.bf16.msra.mxu0 %v6379_v7 }
  0x59   :  { %307 = vmatprep.subr.bf16.mxu0 %v6380_v8 }
  0x5c   :  { %308 = vmatpush1.bf16.msra.mxu0 %v6382_v9 }
  0x5d   :  { %309 = vmatprep.subr.bf16.mxu0 %v6383_v10 }
  0x60   :  { %310 = vmatpush1.bf16.msra.mxu0 %v6385_v11 }
  0x61   :  { %311 = vmatprep.subr.bf16.mxu0 %v6386_v12 }
  0x64   :  { %312 = vmatpush1.bf16.msra.mxu0 %v6388_v14 }
  0x65   :  { %313 = vmatprep.subr.bf16.mxu0 %v6389_v15 }
  0x68   :  { %314 = vmatpush1.bf16.msra.mxu0 %v6391_v16 }
  0x69   :  { %315 = vmatprep.subr.bf16.mxu0 %v6392_v17 }
  0x6c   :  { %316 = vmatpush1.bf16.msra.mxu0 %v6394_v18 }
  0x6d   :  { %317 = vmatprep.subr.bf16.mxu0 %v6395_v19 }
  0x70   :  { %318 = vmatpush1.bf16.msra.mxu0 %v6397_v20 }
  0x71   :  { %319 = vmatprep.subr.bf16.mxu0 %v6398_v21 }
  0x74   :  { %320 = vmatpush1.bf16.msra.mxu0 %v6400_v22 }
  0x75   :  { %321 = vmatprep.subr.bf16.mxu0 %v6401_v23 }
  0x78   :  { %322 = vmatpush1.bf16.msra.mxu0 %v6403_v24 }
  0x79   :  { %323 = vmatprep.subr.bf16.mxu0 %v6404_v25 }
  0x7c   :  { %324 = vmatpush1.bf16.msra.mxu0 %v6406_v26 }
  0x7d   :  { %325 = vmatprep.subr.bf16.mxu0 %v6407_v27 }
  0x80   :  { %326 = vmatpush1.bf16.msra.mxu0 %v6409_v28 }
  0x81   :  { %327 = vmatprep.subr.bf16.mxu0 %v6410_v29 }
  0x84   :  { %328 = vmatpush1.bf16.msra.mxu0 %v6412_v30 }
  0x85   :  { %329 = vmatprep.subr.bf16.mxu0 %v6413_v31 }
  0x88   :  { %330 = vmatpush1.bf16.msra.mxu0 %v6415_v32 }
  0x8b   :  { %332 = vmatmul.mubr.bf16.vlgmr.msra.gmra.mrb[0].mxu0 %v6416_v33 }
  0x8c   :  { %341 = vmatprep.mubr.bf16.mxu0 %v6419_v34 }
  0x93   :  { %342 = vmatmul.mubr.bf16.gmra.mrb[4].mxu0 %v6421_v35 }
  0x94   :  { %5654 = vmatprep.mubr.msk.bf16.mxu0 %vm674_vm0, %v6422_v53 }
 0x15e   :  { %v333_v37 = vpop.f32.mrb[0].mxu0 }
 0x15f   :  { %v7010_v38 = vadd.f32 %v5047_v36, %v333_v37  ;;  %v7012_v39 = vpop.f32.mrb[1].mxu0  ;;  %v6436_v37 = vld [vmem:[#allocation5] sm:$0xff]  }
 0x160   :  { %v337_v40 = vpop.f32.mrb[2].mxu0  ;;  %5702 = vmatprep.subr.bf16.mxu1 %v6436_v37 }
 0x161   :  { %v7014_v41 = vadd.f32 %v5047_v36, %v337_v40  ;;  %372 = vadd.xlane.f32.xlu0 %v7010_v38  ;;  %v7017_v42 = vpop.f32.mrb[3].mxu0  ;;  %v394_v43 = vmul.f32 %v7010_v38, %v7010_v38  ;;  %v6437_v40 = vld [vmem:[#allocation5 + $0x8] sm:$0xff]   ;;  %5703 = vmatpush3.bf16.msra.mxu1 %v6436_v37 }
 0x162   :  { %5704 = vmatprep.subr.bf16.mxu1 %v6437_v40 }
 0x163   :  { %398 = vadd.xlane.f32.xlu1 %v394_v43  ;;  %v395_v44 = vmul.f32 %v7014_v41, %v7014_v41 }
 0x165   :  { %374 = vadd.xlane.f32.xlu0 %v7014_v41  ;;  %5705 = vmatpush3.bf16.msra.mxu1 %v6437_v40 }
 0x166   :  { %v343_v45 = vpop.f32.mrb[4].mxu0 }
 0x167   :  { %v7024_v46 = vadd.f32 %v5047_v36, %v343_v45  ;;  %400 = vadd.xlane.f32.xlu1 %v395_v44  ;;  %v7026_v47 = vpop.f32.mrb[5].mxu0 }
 0x168   :  { %v347_v48 = vpop.f32.mrb[6].mxu0 }
 0x169   :  { %v7028_v49 = vadd.f32 %v5047_v36, %v347_v48  ;;  %376 = vadd.xlane.f32.xlu0 %v7024_v46  ;;  %v7031_v50 = vpop.f32.mrb[7].mxu0  ;;  %v396_v51 = vmul.f32 %v7024_v46, %v7024_v46 }
 0x16b   :  { %378 = vadd.xlane.f32.xlu1 %v7028_v49  ;;  %v397_v52 = vmul.f32 %v7028_v49, %v7028_v49 }
 0x16d   :  { %402 = vadd.xlane.f32.xlu0 %v396_v51  ;;  %v5049_v51 = vld [vmem:[%s7729_s2 + $0x1] ss:$0 sm:$0xff] }
 0x16f   :  { %404 = vadd.xlane.f32.xlu1 %v397_v52  ;;  %v6438_v52 = vld [vmem:[#allocation5 + $0x10] sm:$0xff]  }
 0x170   :  { %5706 = vmatprep.subr.bf16.mxu1 %v6438_v52 }
 0x171   :  { %5707 = vmatpush3.bf16.msra.mxu1 %v6438_v52 }
 0x1ee   :  { %v373_v54 = vpop.xlane.xlu0 %372 }
 0x1f0   :  { %v399_v55 = vpop.xlane.xlu1 %398 }
 0x1f2   :  { %v375_v56 = vpop.xlane.xlu0 %374 }
 0x1f3   :  { %v380_v57 = vadd.f32 %v375_v56, %v373_v54 }
 0x1f4   :  { %v401_v58 = vpop.xlane.xlu1 %400 }
 0x1f5   :  { %v381_v59 = vrot.slane %v380_v57, 4  ;;  %v406_v60 = vadd.f32 %v401_v58, %v399_v55  ;;  %v5050_v55 = vld [vmem:[%s7729_s2 + $0x2] ss:$0 sm:$0xff] }
 0x1f6   :  { %v377_v61 = vpop.xlane.xlu0 %376 }
 0x1f7   :  { %v382_v62 = vadd.f32 %v381_v59, %v380_v57  ;;  %v407_v63 = vrot.slane %v406_v60, 4 }
 0x1f8   :  { %v379_v0 = vpop.xlane.xlu1 %378 }
 0x1f9   :  { %v383_v1 = vrot.slane %v382_v62, 2  ;;  %v408_v2 = vadd.f32 %v407_v63, %v406_v60  ;;  %v387_v3 = vadd.f32 %v379_v0, %v377_v61  ;;  %v6440_v63 = vld [vmem:[#allocation5 + $0x20] sm:$0xff]  }
 0x1fa   :  { %v403_v7 = vpop.xlane.xlu0 %402 }
 0x1fb   :  { %v384_v4 = vadd.f32 %v383_v1, %v382_v62  ;;  %v409_v5 = vrot.slane %v408_v2, 2  ;;  %v388_v6 = vrot.slane %v387_v3, 4 }
 0x1fc   :  { %v405_v8 = vpop.xlane.xlu1 %404 }
 0x1fd   :  { %v385_v9 = vrot.slane %v384_v4, 1  ;;  %v410_v10 = vadd.f32 %v409_v5, %v408_v2  ;;  %v389_v11 = vadd.f32 %v388_v6, %v387_v3  ;;  %v413_v12 = vadd.f32 %v405_v8, %v403_v7 }
 0x1ff   :  { %v386_v13 = vadd.f32 %v385_v9, %v384_v4  ;;  %v411_v14 = vrot.slane %v410_v10, 1  ;;  %v390_v15 = vrot.slane %v389_v11, 2  ;;  %v414_v16 = vrot.slane %v413_v12, 4  ;;  %v6441_v9 = vld [vmem:[#allocation5 + $0x28] sm:$0xff]  }
 0x201   :  { %v420_v17 = vmul.f32 0.00048828125, %v386_v13  ;;  %v412_v18 = vadd.f32 %v411_v14, %v410_v10  ;;  %v391_v19 = vadd.f32 %v390_v15, %v389_v11  ;;  %v415_v20 = vadd.f32 %v414_v16, %v413_v12  ;;  %v6443_v13 = vld [vmem:[#allocation5 + $0x30] sm:$0xff]  }
 0x203   :  { %v424_v21 = vmul.f32 %v420_v17, %v420_v17  ;;  %v422_v22 = vmul.f32 0.00048828125, %v412_v18  ;;  %v392_v23 = vrot.slane %v391_v19, 1  ;;  %v416_v24 = vrot.slane %v415_v20, 2 }
 0x204   :  { %v434_v44 = vsub.f32 %v7010_v38, %v420_v17  ;;  %v435_v45 = vsub.f32 %v7014_v41, %v420_v17  ;;  %v6439_v38 = vld [vmem:[#allocation5 + $0x18] sm:$0xff]  }
 0x205   :  { %v426_v25 = vsub.f32 %v422_v22, %v424_v21  ;;  %v393_v26 = vadd.f32 %v392_v23, %v391_v19  ;;  %v417_v27 = vadd.f32 %v416_v24, %v415_v20  ;;  %5708 = vmatprep.subr.bf16.mxu1 %v6439_v38 }
 0x206   :  { %5709 = vmatpush3.bf16.msra.mxu1 %v6439_v38 }
 0x207   :  { %v428_v28 = vmax.f32 %v426_v25, 0.0  ;;  %v421_v29 = vmul.f32 0.00048828125, %v393_v26  ;;  %v418_v30 = vrot.slane %v417_v27, 1  ;;  %5710 = vmatprep.subr.bf16.mxu1 %v6440_v63 }
 0x209   :  { %v430_v31 = vadd.f32 1e-05, %v428_v28  ;;  %v419_v32 = vadd.f32 %v418_v30, %v417_v27  ;;  %v425_v33 = vmul.f32 %v421_v29, %v421_v29  ;;  %v436_v61 = vsub.f32 %v7024_v46, %v421_v29 }
 0x20a   :  { %v437_v62 = vsub.f32 %v7028_v49, %v421_v29  ;;  %5711 = vmatpush3.bf16.msra.mxu1 %v6440_v63 }
 0x20b   :  { %6652 = vrsqrt.f32 %v430_v31  ;;  %v423_v34 = vmul.f32 0.00048828125, %v419_v32  ;;  %5712 = vmatprep.subr.bf16.mxu1 %v6441_v9 }
 0x20d   :  { %v427_v35 = vsub.f32 %v423_v34, %v425_v33 }
 0x20e   :  { %5713 = vmatpush3.bf16.msra.mxu1 %v6441_v9 }
 0x20f   :  { %v429_v36 = vmax.f32 %v427_v35, 0.0  ;;  %5714 = vmatprep.subr.bf16.mxu1 %v6443_v13 }
 0x211   :  { %v431_v43 = vadd.f32 1e-05, %v429_v36 }
 0x212   :  { %5715 = vmatpush3.bf16.msra.mxu1 %v6443_v13 }
 0x213   :  { %6654 = vrsqrt.f32 %v431_v43 }
 0x215   :  { %v6653_v48 = vpop.eup %6652 }
 0x216   :  { %v438_v53 = vmul.f32 %v6653_v48, %v434_v44  ;;  %v439_v54 = vmul.f32 %v6653_v48, %v435_v45 }
 0x218   :  { %v446_v56 = vmul.f32 %v5049_v51, %v438_v53  ;;  %v447_v57 = vmul.f32 %v5049_v51, %v439_v54 }
 0x21a   :  { %v7050_v41 = vadd.f32 %v5050_v55, %v446_v56  ;;  %v7052_v58 = vadd.f32 %v5050_v55, %v447_v57 }
 0x21c   :  { %v7055_v59 = vmul.f32 0.70710677, %v7050_v41  ;;  %v7058_v60 = vmul.f32 0.70710677, %v7052_v58 }
 0x21d   :  { %v6655_v0 = vpop.eup %6654 }
 0x21e   :  { %v474_v1 = vand.u32 2147483647, %v7055_v59  ;;  %v475_v2 = vand.u32 2147483647, %v7058_v60  ;;  %v440_v3 = vmul.f32 %v6655_v0, %v436_v61  ;;  %v441_v4 = vmul.f32 %v6655_v0, %v437_v62 }
 0x21f   :  { %vm466_vm1 = vcmp.ge.f32.partialorder %v7055_v59, 0.0  ;;  %vm467_vm2 = vcmp.ge.f32.partialorder %v7058_v60, 0.0  ;;  %v458_v59 = vmul.f32 0.5, %v7050_v41  ;;  %v459_v60 = vmul.f32 0.5, %v7052_v58 }
 0x220   :  { %v478_v5 = vmul.f32 0.3275911, %v474_v1  ;;  %v479_v6 = vmul.f32 0.3275911, %v475_v2  ;;  %v448_v7 = vmul.f32 %v5049_v51, %v440_v3  ;;  %v449_v8 = vmul.f32 %v5049_v51, %v441_v4 }
 0x221   :  { %v538_v25 = vsub.f32 0.0, %v474_v1  ;;  %v539_v27 = vsub.f32 0.0, %v475_v2 }
 0x222   :  { %v482_v10 = vadd.f32 1.0, %v478_v5  ;;  %v483_v46 = vadd.f32 1.0, %v479_v6  ;;  %v7064_v11 = vadd.f32 %v5050_v55, %v448_v7  ;;  %v7066_v49 = vadd.f32 %v5050_v55, %v449_v8 }
 0x223   :  { %v542_v31 = vmul.f32 %v538_v25, %v474_v1  ;;  %v543_v33 = vmul.f32 %v539_v27, %v475_v2 }
 0x224   :  { %6656 = vrcp.f32 %v482_v10  ;;  %v7069_v12 = vmul.f32 0.70710677, %v7064_v11  ;;  %v7072_v14 = vmul.f32 0.70710677, %v7066_v49 }
 0x225   :  { %6658 = vrcp.f32 %v483_v46  ;;  %v546_v43 = vmul.f32 1.442695, %v542_v31  ;;  %v548_v48 = vmul.f32 1.442695, %v543_v33 }
 0x226   :  { %v476_v15 = vand.u32 2147483647, %v7069_v12  ;;  %v477_v16 = vand.u32 2147483647, %v7072_v14  ;;  %vm468_vm3 = vcmp.ge.f32.partialorder %v7069_v12, 0.0  ;;  %vm469_vm4 = vcmp.ge.f32.partialorder %v7072_v14, 0.0 }
 0x228   :  { %v480_v17 = vmul.f32 0.3275911, %v476_v15  ;;  %v481_v18 = vmul.f32 0.3275911, %v477_v16  ;;  %v540_v52 = vsub.f32 0.0, %v476_v15  ;;  %v541_v55 = vsub.f32 0.0, %v477_v16 }
 0x22a   :  { %v484_v19 = vadd.f32 1.0, %v480_v17  ;;  %v485_v20 = vadd.f32 1.0, %v481_v18  ;;  %v544_v0 = vmul.f32 %v540_v52, %v476_v15  ;;  %v545_v3 = vmul.f32 %v541_v55, %v477_v16 }
 0x22c   :  { %6660 = vrcp.f32 %v484_v19  ;;  %v552_v17 = vmul.f32 1.442695, %v545_v3  ;;  %v460_v3 = vmul.f32 0.5, %v7064_v11  ;;  %v6424_v11 = vld [vmem:[%s7730_s3 + $0x10] sm:$0xff]  }
 0x22d   :  { %6662 = vrcp.f32 %v485_v20 }
 0x22e   :  { %v6657_v21 = vpop.eup %6656  ;;  %6664 = vpow2.f32 %v546_v43 }
 0x22f   :  { %v6659_v22 = vpop.eup %6658  ;;  %v490_v23 = vmul.f32 %v6657_v21, %v482_v10  ;;  %6666 = vpow2.f32 %v548_v48  ;;  %v550_v10 = vmul.f32 1.442695, %v544_v0 }
 0x230   :  { %v491_v24 = vmul.f32 %v6659_v22, %v483_v46 }
 0x231   :  { %v494_v26 = vsub.f32 2.0, %v490_v23  ;;  %6668 = vpow2.f32 %v550_v10  ;;  %v6426_v10 = vld [vmem:[%s7730_s3 + $0x20] sm:$0xff]  }
 0x232   :  { %v495_v28 = vsub.f32 2.0, %v491_v24  ;;  %6670 = vpow2.f32 %v552_v17  ;;  %v6429_v17 = vld [vmem:[%s7730_s3 + $0x38] sm:$0xff]  }
 0x233   :  { %v498_v29 = vmul.f32 %v6657_v21, %v494_v26 }
 0x234   :  { %v499_v30 = vmul.f32 %v6659_v22, %v495_v28 }
 0x235   :  { %v502_v32 = vmul.f32 1.0614054, %v498_v29 }
 0x236   :  { %v503_v34 = vmul.f32 1.0614054, %v499_v30  ;;  %v6661_v35 = vpop.eup %6660 }
 0x237   :  { %v506_v36 = vadd.f32 -1.4531521, %v502_v32  ;;  %v6663_v37 = vpop.eup %6662  ;;  %v492_v44 = vmul.f32 %v6661_v35, %v484_v19 }
 0x238   :  { %v507_v40 = vadd.f32 -1.4531521, %v503_v34  ;;  %v493_v51 = vmul.f32 %v6663_v37, %v485_v20  ;;  %v6665_v15 = vpop.eup %6664  ;;  %v6886_v34 = vmov -1.0  }
 0x239   :  { %v510_v45 = vmul.f32 %v506_v36, %v498_v29  ;;  %v496_v54 = vsub.f32 2.0, %v492_v44  ;;  %v6667_v25 = vpop.eup %6666  ;;  %v472_v58 = vsel %vm468_vm3, 1.0, %v6886_v34 }
 0x23a   :  { %v511_v53 = vmul.f32 %v507_v40, %v499_v30  ;;  %v497_v57 = vsub.f32 2.0, %v493_v51 }
 0x23b   :  { %v514_v56 = vadd.f32 1.4214138, %v510_v45  ;;  %v500_v61 = vmul.f32 %v6661_v35, %v496_v54 }
 0x23c   :  { %v515_v38 = vadd.f32 1.4214138, %v511_v53  ;;  %v501_v63 = vmul.f32 %v6663_v37, %v497_v57  ;;  %v6669_v53 = vpop.eup %6668 }
 0x23d   :  { %v518_v62 = vmul.f32 %v514_v56, %v498_v29  ;;  %v504_v2 = vmul.f32 1.0614054, %v500_v61  ;;  %v6671_v56 = vpop.eup %6670 }
 0x23e   :  { %v519_v1 = vmul.f32 %v515_v38, %v499_v30  ;;  %v505_v5 = vmul.f32 1.0614054, %v501_v63 }
 0x23f   :  { %v522_v4 = vadd.f32 -0.28449672, %v518_v62  ;;  %v508_v7 = vadd.f32 -1.4531521, %v504_v2 }
 0x240   :  { %v523_v6 = vadd.f32 -0.28449672, %v519_v1  ;;  %v509_v9 = vadd.f32 -1.4531521, %v505_v5  ;;  %v473_v1 = vsel %vm469_vm4, 1.0, %v6886_v34 }
 0x241   :  { %v526_v8 = vmul.f32 %v522_v4, %v498_v29  ;;  %v512_v13 = vmul.f32 %v508_v7, %v500_v61  ;;  %v461_v4 = vmul.f32 0.5, %v7066_v49  ;;  %v6425_v49 = vld [vmem:[%s7730_s3 + $0x18] sm:$0xff]  }
 0x242   :  { %v527_v46 = vmul.f32 %v523_v6, %v499_v30  ;;  %v513_v19 = vmul.f32 %v509_v9, %v501_v63  ;;  %v6423_v9 = vld [vmem:[%s7730_s3 + $0x8] sm:$0xff]  }
 0x243   :  { %v530_v18 = vadd.f32 0.2548296, %v526_v8  ;;  %v516_v21 = vadd.f32 1.4214138, %v512_v13  ;;  %v6442_v8 = vld [vmem:[#allocation5 + $0x40] sm:$0xff]   ;;  %v6428_v13 = vld [vmem:[%s7730_s3 + $0x30] sm:$0xff]  }
 0x244   :  { %v531_v20 = vadd.f32 0.2548296, %v527_v46  ;;  %v517_v23 = vadd.f32 1.4214138, %v513_v19  ;;  %v6427_v46 = vld [vmem:[%s7730_s3 + $0x28] sm:$0xff]  }
 0x245   :  { %v534_v22 = vmul.f32 %v530_v18, %v498_v29  ;;  %v520_v16 = vmul.f32 %v516_v21, %v500_v61  ;;  %v470_v29 = vsel %vm466_vm1, 1.0, %v6886_v34  ;;  %v6430_v18 = vld [vmem:[%s7730_s3 + $0x40] sm:$0xff]   ;;  %v6431_v19 = vld [vmem:[%s7730_s3 + $0x48] sm:$0xff]   ;;  %v6433_v21 = vld [vmem:[%s7730_s3 + $0x58] sm:$0xff]  }
 0x246   :  { %v535_v24 = vmul.f32 %v531_v20, %v499_v30  ;;  %v521_v27 = vmul.f32 %v517_v23, %v501_v63  ;;  %v471_v30 = vsel %vm467_vm2, 1.0, %v6886_v34  ;;  %v6432_v20 = vld [vmem:[%s7730_s3 + $0x50] sm:$0xff]   ;;  %v6435_v23 = vld [vmem:[%s7730_s3 + $0x68] sm:$0xff]  }
 0x247   :  { %v554_v26 = vmul.f32 %v6665_v15, %v534_v22  ;;  %v524_v31 = vadd.f32 -0.28449672, %v520_v16  ;;  %v6434_v22 = vld [vmem:[%s7730_s3 + $0x60] sm:$0xff]   ;;  %v6444_v15 = vld [vmem:[#allocation5 + $0x48] sm:$0xff]   ;;  %v6445_v16 = vld [vmem:[#allocation5 + $0x38] sm:$0xff]  }
 0x248   :  { %v555_v28 = vmul.f32 %v6667_v25, %v535_v24  ;;  %v525_v33 = vadd.f32 -0.28449672, %v521_v27  ;;  %v6446_v24 = vld [vmem:[#allocation5 + $0x50] sm:$0xff]   ;;  %5716 = vmatprep.subr.bf16.mxu1 %v6445_v16  ;;  %v6448_v25 = vld [vmem:[#allocation5 + $0x58] sm:$0xff]   ;;  %v6450_v27 = vld [vmem:[#allocation5 + $0x60] sm:$0xff]  }
 0x249   :  { %v558_v32 = vsub.f32 1.0, %v554_v26  ;;  %v528_v36 = vmul.f32 %v524_v31, %v500_v61  ;;  %5717 = vmatpush3.bf16.msra.mxu1 %v6445_v16  ;;  %v6447_v26 = vld [vmem:[#allocation5 + $0x80] sm:$0xff]   ;;  %v6454_v31 = vld [vmem:[#allocation5 + $0x70] sm:$0xff]  }
 0x24a   :  { %v559_v35 = vsub.f32 1.0, %v555_v28  ;;  %v529_v40 = vmul.f32 %v525_v33, %v501_v63  ;;  %5722 = vmatprep.subr.bf16.mxu1 %v6447_v26  ;;  %v6452_v28 = vld [vmem:[#allocation5 + $0x68] sm:$0xff]   ;;  %v6464_v16 = vld [vmem:[#allocation5 + $0xe0] sm:$0xff]  }
 0x24b   :  { %v562_v37 = vmul.f32 %v558_v32, %v470_v29  ;;  %v532_v44 = vadd.f32 0.2548296, %v528_v36  ;;  %v6456_v32 = vld [vmem:[#allocation5 + $0x78] sm:$0xff]  }
 0x24c   :  { %v563_v43 = vmul.f32 %v559_v35, %v471_v30  ;;  %v533_v48 = vadd.f32 0.2548296, %v529_v40  ;;  %v6449_v40 = vld [vmem:[#allocation5 + $0x88] sm:$0xff]  }
 0x24d   :  { %v566_v45 = vadd.f32 1.0, %v562_v37  ;;  %v536_v52 = vmul.f32 %v532_v44, %v500_v61  ;;  %v6451_v44 = vld [vmem:[#allocation5 + $0x90] sm:$0xff]  }
 0x24e   :  { %v567_v51 = vadd.f32 1.0, %v563_v43  ;;  %v537_v55 = vmul.f32 %v533_v48, %v501_v63 }
 0x24f   :  { %v7082_v54 = vmul.f32 %v566_v45, %v458_v59  ;;  %v556_v38 = vmul.f32 %v6669_v53, %v536_v52  ;;  %v6453_v52 = vld [vmem:[#allocation5 + $0x98] sm:$0xff]  }
 0x250   :  { %v7084_v57 = vmul.f32 %v567_v51, %v459_v60  ;;  %v557_v62 = vmul.f32 %v6671_v56, %v537_v55  ;;  %v6455_v55 = vld [vmem:[#allocation5 + $0xa0] sm:$0xff]  }
 0x251   :  { %v560_v0 = vsub.f32 1.0, %v556_v38 }
 0x252   :  { %v574_v41 = vpack.c.bf16 %v7084_v57, %v7082_v54  ;;  %v561_v61 = vsub.f32 1.0, %v557_v62 }
 0x253   :  { %v564_v63 = vmul.f32 %v560_v0, %v472_v58  ;;  %v6457_v58 = vld [vmem:[#allocation5 + $0xa8] sm:$0xff]  }
 0x254   :  { %5650 = vmatprep.subr.bf16.mxu0 %v574_v41  ;;  %v565_v2 = vmul.f32 %v561_v61, %v473_v1  ;;  %v6458_v1 = vld [vmem:[#allocation5 + $0xb0] sm:$0xff]  }
 0x255   :  { %5651 = vmatpush3.bf16.msra.mxu0 %v574_v41  ;;  %v568_v12 = vadd.f32 1.0, %v564_v63 }
 0x256   :  { %v569_v14 = vadd.f32 1.0, %v565_v2 }
 0x257   :  { %v7094_v5 = vmul.f32 %v568_v12, %v460_v3 }
 0x258   :  { %v7096_v6 = vmul.f32 %v569_v14, %v461_v4  ;;  %v6459_v14 = vld [vmem:[#allocation5 + $0xb8] sm:$0xff]  }
 0x25a   :  { %v575_v7 = vpack.c.bf16 %v7096_v6, %v7094_v5 }
 0x25c   :  { %5652 = vmatprep.subr.bf16.mxu0 %v575_v7 }
 0x25d   :  { %5653 = vmatpush3.bf16.msra.mxu0 %v575_v7 }
 0x25e   :  { %5682 = vmatprep.subr.bf16.mxu0 %v6442_v8 }
 0x260   :  { %5655 = vmatmul.mubr.msk.bf16.vlgmr.msra.gmra.mrb[8].mxu0 %vm674_vm0, %v6423_v9 }
 0x261   :  { %5658 = vmatprep.mubr.msk.bf16.mxu0 %vm674_vm0, %v6424_v11  ;;  %5683 = vmatpush3.bf16.msra.mxu0 %v6442_v8  ;;  %v6460_v8 = vld [vmem:[#allocation5 + $0xc0] sm:$0xff]  }
 0x262   :  { %5684 = vmatprep.subr.bf16.mxu0 %v6444_v15 }
 0x265   :  { %5685 = vmatpush3.bf16.msra.mxu0 %v6444_v15  ;;  %v6463_v15 = vld [vmem:[#allocation5 + $0xd8] sm:$0xff]  }
 0x266   :  { %5686 = vmatprep.subr.bf16.mxu0 %v6446_v24 }
 0x268   :  { %5659 = vmatmul.mubr.msk.bf16.gmra.mrb[12].mxu0 %vm674_vm0, %v6425_v49 }
 0x269   :  { %5662 = vmatprep.mubr.msk.bf16.mxu0 %vm674_vm0, %v6426_v10  ;;  %5687 = vmatpush3.bf16.msra.mxu0 %v6446_v24 }
 0x26a   :  { %5688 = vmatprep.subr.bf16.mxu0 %v6448_v25 }
 0x26d   :  { %5689 = vmatpush3.bf16.msra.mxu0 %v6448_v25 }
 0x26e   :  { %5690 = vmatprep.subr.bf16.mxu0 %v6450_v27 }
 0x270   :  { %5663 = vmatmul.mubr.msk.bf16.gmra.mrb[16].mxu0 %vm674_vm0, %v6427_v46 }
 0x271   :  { %5666 = vmatprep.mubr.msk.bf16.mxu0 %vm674_vm0, %v6428_v13  ;;  %5691 = vmatpush3.bf16.msra.mxu0 %v6450_v27  ;;  %v6461_v13 = vld [vmem:[#allocation5 + $0xc8] sm:$0xff]  }
 0x272   :  { %5692 = vmatprep.subr.bf16.mxu0 %v6452_v28 }
 0x275   :  { %5693 = vmatpush3.bf16.msra.mxu0 %v6452_v28 }
 0x276   :  { %5694 = vmatprep.subr.bf16.mxu0 %v6454_v31 }
 0x278   :  { %5667 = vmatmul.mubr.msk.bf16.gmra.mrb[20].mxu0 %vm674_vm0, %v6429_v17 }
 0x279   :  { %5670 = vmatprep.mubr.msk.bf16.mxu0 %vm674_vm0, %v6430_v18  ;;  %5695 = vmatpush3.bf16.msra.mxu0 %v6454_v31  ;;  %v6462_v18 = vld [vmem:[#allocation5 + $0xd0] sm:$0xff]  }
 0x27a   :  { %5696 = vmatprep.subr.bf16.mxu0 %v6456_v32 }
 0x27d   :  { %5697 = vmatpush3.bf16.msra.mxu0 %v6456_v32  ;;  %v6465_v32 = vld [vmem:[#allocation5 + $0xe8] sm:$0xff]  }
 0x280   :  { %5671 = vmatmul.mubr.msk.bf16.gmra.mrb[24].mxu0 %vm674_vm0, %v6431_v19 }
 0x281   :  { %5674 = vmatprep.mubr.msk.bf16.mxu0 %vm674_vm0, %v6432_v20 }
 0x288   :  { %5675 = vmatmul.mubr.msk.bf16.gmra.mrb[28].mxu0 %vm674_vm0, %v6433_v21 }
 0x289   :  { %5678 = vmatprep.mubr.msk.bf16.mxu0 %vm674_vm0, %v6434_v22 }
 0x290   :  { %5679 = vmatmul.mubr.msk.bf16.gmra.mrb[32].mxu0 %vm674_vm0, %v6435_v23 }
 0x333   :  { %v5656_v33 = vpop.f32.mrb[8].mxu0 }
 0x334   :  { %v751_v29 = vpop.f32.mrb[9].mxu0 }
 0x335   :  { %v5657_v35 = vpop.f32.mrb[10].mxu0 }
 0x336   :  { %v863_v36 = vpack.c.bf16 %v5657_v35, %v5656_v33  ;;  %v754_v30 = vpop.f32.mrb[11].mxu0  ;;  %v6466_v33 = vld [vmem:[#allocation5 + $0xf0] sm:$0xff]   ;;  %v6468_v35 = vld [vmem:[#allocation5 + $0x100] sm:$0xff]  }
 0x337   :  { %v862_v37 = vpack.c.bf16 %v754_v30, %v751_v29  ;;  %v6467_v29 = vld [vmem:[#allocation5 + $0xf8] sm:$0xff]   ;;  %v6470_v30 = vld [vmem:[#allocation5 + $0x110] sm:$0xff]  }
 0x339   :  { %5718 = vmatprep.mubr.bf16.mxu1 %v862_v37  ;;  %v6471_v37 = vld [vmem:[#allocation5 + $0x118] sm:$0xff]  }
 0x33a   :  { %5719 = vmatmul.mubr.bf16.vlgmr.msra.gmra.mrb[0].mxu1 %v863_v36  ;;  %v6469_v36 = vld [vmem:[#allocation5 + $0x108] sm:$0xff]  }
 0x33b   :  { %5723 = vmatpush3.bf16.msra.mxu1 %v6447_v26  ;;  %v5660_v43 = vpop.f32.mrb[12].mxu0 }
 0x33c   :  { %5724 = vmatprep.subr.bf16.mxu1 %v6449_v40  ;;  %v767_v59 = vpop.f32.mrb[13].mxu0 }
 0x33d   :  { %v5661_v45 = vpop.f32.mrb[14].mxu0 }
 0x33e   :  { %v865_v48 = vpack.c.bf16 %v5661_v45, %v5660_v43  ;;  %v770_v60 = vpop.f32.mrb[15].mxu0  ;;  %v6473_v43 = vld [vmem:[#allocation5 + $0x128] sm:$0xff]   ;;  %v6476_v45 = vld [vmem:[#allocation5 + $0x140] sm:$0xff]  }
 0x33f   :  { %5725 = vmatpush3.bf16.msra.mxu1 %v6449_v40  ;;  %v864_v51 = vpack.c.bf16 %v770_v60, %v767_v59  ;;  %v6472_v40 = vld [vmem:[#allocation5 + $0x120] sm:$0xff]   ;;  %v6475_v59 = vld [vmem:[#allocation5 + $0x138] sm:$0xff]   ;;  %v6478_v60 = vld [vmem:[#allocation5 + $0x150] sm:$0xff]  }
 0x340   :  { %5726 = vmatprep.subr.bf16.mxu1 %v6451_v44 }
 0x341   :  { %5698 = vmatprep.mubr.bf16.mxu0 %v864_v51  ;;  %v6479_v51 = vld [vmem:[#allocation5 + $0x158] sm:$0xff]  }
 0x342   :  { %5699 = vmatmul.mubr.bf16.vlgmr.msra.gmra.mrb[36].mxu0 %v865_v48  ;;  %v6477_v48 = vld [vmem:[#allocation5 + $0x148] sm:$0xff]  }
 0x343   :  { %5727 = vmatpush3.bf16.msra.mxu1 %v6451_v44  ;;  %v5664_v53 = vpop.f32.mrb[16].mxu0  ;;  %v6474_v44 = vld [vmem:[#allocation5 + $0x130] sm:$0xff]  }
 0x344   :  { %5728 = vmatprep.subr.bf16.mxu1 %v6453_v52  ;;  %v783_v56 = vpop.f32.mrb[17].mxu0 }
 0x345   :  { %v5665_v38 = vpop.f32.mrb[18].mxu0 }
 0x346   :  { %v867_v62 = vpack.c.bf16 %v5665_v38, %v5664_v53  ;;  %v786_v41 = vpop.f32.mrb[19].mxu0  ;;  %v6481_v53 = vld [vmem:[#allocation5 + $0x168] sm:$0xff]   ;;  %v6484_v38 = vld [vmem:[#allocation5 + $0x180] sm:$0xff]  }
 0x347   :  { %5729 = vmatpush3.bf16.msra.mxu1 %v6453_v52  ;;  %v866_v0 = vpack.c.bf16 %v786_v41, %v783_v56  ;;  %v6480_v52 = vld [vmem:[#allocation5 + $0x160] sm:$0xff]   ;;  %v6483_v56 = vld [vmem:[#allocation5 + $0x178] sm:$0xff]   ;;  %v6486_v41 = vld [vmem:[#allocation5 + $0x190] sm:$0xff]  }
 0x348   :  { %5730 = vmatprep.subr.bf16.mxu1 %v6455_v55 }
 0x349   :  { %5738 = vmatprep.mubr.bf16.mxu1 %v866_v0  ;;  %v6487_v0 = vld [vmem:[#allocation5 + $0x198] sm:$0xff]  }
 0x34b   :  { %5731 = vmatpush3.bf16.msra.mxu1 %v6455_v55  ;;  %v5668_v61 = vpop.f32.mrb[20].mxu0  ;;  %v6482_v55 = vld [vmem:[#allocation5 + $0x170] sm:$0xff]  }
 0x34c   :  { %5732 = vmatprep.subr.bf16.mxu1 %v6457_v58  ;;  %v799_v63 = vpop.f32.mrb[21].mxu0 }
 0x34d   :  { %v5669_v2 = vpop.f32.mrb[22].mxu0 }
 0x34e   :  { %v869_v3 = vpack.c.bf16 %v5669_v2, %v5668_v61  ;;  %v802_v12 = vpop.f32.mrb[23].mxu0  ;;  %v6489_v61 = vld [vmem:[#allocation5 + $0x1a8] sm:$0xff]  }
 0x34f   :  { %5733 = vmatpush3.bf16.msra.mxu1 %v6457_v58  ;;  %v868_v4 = vpack.c.bf16 %v802_v12, %v799_v63  ;;  %v6488_v58 = vld [vmem:[#allocation5 + $0x1a0] sm:$0xff]   ;;  %v6491_v63 = vld [vmem:[#allocation5 + $0x1b8] sm:$0xff]  }
 0x350   :  { %5734 = vmatprep.subr.bf16.mxu1 %v6458_v1 }
 0x353   :  { %5735 = vmatpush3.bf16.msra.mxu1 %v6458_v1  ;;  %v7152_v7 = vpop.f32.mrb[24].mxu0  ;;  %v6490_v1 = vld [vmem:[#allocation5 + $0x1b0] sm:$0xff]  }
 0x354   :  { %5736 = vmatprep.subr.bf16.mxu1 %v6459_v14  ;;  %v815_v9 = vpop.f32.mrb[25].mxu0 }
 0x355   :  { %v7154_v11 = vpop.f32.mrb[26].mxu0 }
 0x356   :  { %v871_v49 = vpack.c.bf16 %v7154_v11, %v7152_v7  ;;  %v818_v10 = vpop.f32.mrb[27].mxu0  ;;  %v5135_v7 = vld [vmem:[%s7729_s2 + $0x4] ss:$0 sm:$0xff] }
 0x357   :  { %5737 = vmatpush3.bf16.msra.mxu1 %v6459_v14  ;;  %v870_v46 = vpack.c.bf16 %v818_v10, %v815_v9 }
 0x358   :  { %5742 = vmatprep.subr.bf16.mxu1 %v6460_v8 }
 0x35a   :  { %5739 = vmatmul.mubr.bf16.vlgmr.msra.gmra.mrb[0].mxu1 %v867_v62  ;;  %v6485_v62 = vld [vmem:[#allocation5 + $0x188] sm:$0xff]  }
 0x35b   :  { %5743 = vmatpush3.bf16.msra.mxu1 %v6460_v8  ;;  %5758 = vmatprep.mubr.bf16.mxu1 %v868_v4  ;;  %v7158_v17 = vpop.f32.mrb[28].mxu0 }
 0x35c   :  { %5744 = vmatprep.subr.bf16.mxu1 %v6461_v13  ;;  %v831_v19 = vpop.f32.mrb[29].mxu0 }
 0x35d   :  { %v7160_v20 = vpop.f32.mrb[30].mxu0 }
 0x35e   :  { %v873_v21 = vpack.c.bf16 %v7160_v20, %v7158_v17  ;;  %v834_v22 = vpop.f32.mrb[31].mxu0 }
 0x35f   :  { %5745 = vmatpush3.bf16.msra.mxu1 %v6461_v13  ;;  %v872_v23 = vpack.c.bf16 %v834_v22, %v831_v19 }
 0x360   :  { %5746 = vmatprep.subr.bf16.mxu1 %v6462_v18 }
 0x363   :  { %5747 = vmatpush3.bf16.msra.mxu1 %v6462_v18  ;;  %v7164_v24 = vpop.f32.mrb[32].mxu0 }
 0x364   :  { %5748 = vmatprep.subr.bf16.mxu1 %v6463_v15  ;;  %v7166_v25 = vpop.f32.mrb[33].mxu0 }
 0x365   :  { %v7168_v26 = vpop.f32.mrb[34].mxu0 }
 0x366   :  { %v875_v27 = vpack.c.bf16 %v7168_v26, %v7164_v24  ;;  %v7172_v28 = vpop.f32.mrb[35].mxu0  ;;  %v6492_v24 = vld [vmem:[#allocation7] sm:$0xff]   ;;  %v6495_v26 = vld [vmem:[#allocation7 + $0x18] sm:$0xff]  }
 0x367   :  { %5749 = vmatpush3.bf16.msra.mxu1 %v6463_v15  ;;  %v874_v31 = vpack.c.bf16 %v7172_v28, %v7166_v25  ;;  %5822 = vmatprep.subr.bf16.mxu0 %v6492_v24  ;;  %v6494_v25 = vld [vmem:[#allocation7 + $0x10] sm:$0xff]   ;;  %v6497_v28 = vld [vmem:[#allocation7 + $0x28] sm:$0xff]  }
 0x368   :  { %5750 = vmatprep.subr.bf16.mxu1 %v6464_v16  ;;  %5823 = vmatpush3.bf16.msra.mxu0 %v6492_v24 }
 0x36b   :  { %5751 = vmatpush3.bf16.msra.mxu1 %v6464_v16  ;;  %v6493_v16 = vld [vmem:[#allocation7 + $0x8] sm:$0xff]  }
 0x36c   :  { %5752 = vmatprep.subr.bf16.mxu1 %v6465_v32  ;;  %5824 = vmatprep.subr.bf16.mxu0 %v6493_v16 }
 0x36d   :  { %5825 = vmatpush3.bf16.msra.mxu0 %v6493_v16 }
 0x36e   :  { %5826 = vmatprep.subr.bf16.mxu0 %v6494_v25 }
 0x36f   :  { %5753 = vmatpush3.bf16.msra.mxu1 %v6465_v32  ;;  %v6499_v32 = vld [vmem:[#allocation7 + $0x38] sm:$0xff]  }
 0x370   :  { %5754 = vmatprep.subr.bf16.mxu1 %v6466_v33 }
 0x371   :  { %5827 = vmatpush3.bf16.msra.mxu0 %v6494_v25 }
 0x372   :  { %5828 = vmatprep.subr.bf16.mxu0 %v6495_v26 }
 0x373   :  { %5755 = vmatpush3.bf16.msra.mxu1 %v6466_v33 }
 0x374   :  { %5756 = vmatprep.subr.bf16.mxu1 %v6467_v29 }
 0x375   :  { %5829 = vmatpush3.bf16.msra.mxu0 %v6495_v26 }
 0x377   :  { %5757 = vmatpush3.bf16.msra.mxu1 %v6467_v29 }
 0x378   :  { %5762 = vmatprep.subr.bf16.mxu1 %v6468_v35 }
 0x37a   :  { %5759 = vmatmul.mubr.bf16.vlgmr.msra.gmra.mrb[0].mxu1 %v869_v3 }
 0x37b   :  { %5763 = vmatpush3.bf16.msra.mxu1 %v6468_v35  ;;  %5778 = vmatprep.mubr.bf16.mxu1 %v870_v46 }
 0x37c   :  { %5764 = vmatprep.subr.bf16.mxu1 %v6469_v36 }
 0x37f   :  { %5765 = vmatpush3.bf16.msra.mxu1 %v6469_v36 }
 0x380   :  { %5766 = vmatprep.subr.bf16.mxu1 %v6470_v30 }
 0x383   :  { %5767 = vmatpush3.bf16.msra.mxu1 %v6470_v30 }
 0x384   :  { %5768 = vmatprep.subr.bf16.mxu1 %v6471_v37 }
 0x387   :  { %5769 = vmatpush3.bf16.msra.mxu1 %v6471_v37 }
 0x388   :  { %5770 = vmatprep.subr.bf16.mxu1 %v6472_v40 }
 0x38b   :  { %5771 = vmatpush3.bf16.msra.mxu1 %v6472_v40 }
 0x38c   :  { %5772 = vmatprep.subr.bf16.mxu1 %v6473_v43 }
 0x38f   :  { %5773 = vmatpush3.bf16.msra.mxu1 %v6473_v43 }
 0x390   :  { %5774 = vmatprep.subr.bf16.mxu1 %v6474_v44 }
 0x393   :  { %5775 = vmatpush3.bf16.msra.mxu1 %v6474_v44 }
 0x394   :  { %5776 = vmatprep.subr.bf16.mxu1 %v6475_v59 }
 0x397   :  { %5777 = vmatpush3.bf16.msra.mxu1 %v6475_v59 }
 0x398   :  { %5782 = vmatprep.subr.bf16.mxu1 %v6476_v45 }
 0x39a   :  { %5779 = vmatmul.mubr.bf16.vlgmr.msra.gmra.mrb[0].mxu1 %v871_v49 }
 0x39b   :  { %5783 = vmatpush3.bf16.msra.mxu1 %v6476_v45  ;;  %5798 = vmatprep.mubr.bf16.mxu1 %v872_v23 }
 0x39c   :  { %5784 = vmatprep.subr.bf16.mxu1 %v6477_v48 }
 0x39f   :  { %5785 = vmatpush3.bf16.msra.mxu1 %v6477_v48 }
 0x3a0   :  { %5786 = vmatprep.subr.bf16.mxu1 %v6478_v60 }
 0x3a3   :  { %5787 = vmatpush3.bf16.msra.mxu1 %v6478_v60 }
 0x3a4   :  { %5788 = vmatprep.subr.bf16.mxu1 %v6479_v51 }
 0x3a7   :  { %5789 = vmatpush3.bf16.msra.mxu1 %v6479_v51 }
 0x3a8   :  { %5790 = vmatprep.subr.bf16.mxu1 %v6480_v52 }
 0x3ab   :  { %5791 = vmatpush3.bf16.msra.mxu1 %v6480_v52 }
 0x3ac   :  { %5792 = vmatprep.subr.bf16.mxu1 %v6481_v53 }
 0x3af   :  { %5793 = vmatpush3.bf16.msra.mxu1 %v6481_v53 }
 0x3b0   :  { %5794 = vmatprep.subr.bf16.mxu1 %v6482_v55 }
 0x3b3   :  { %5795 = vmatpush3.bf16.msra.mxu1 %v6482_v55 }
 0x3b4   :  { %5796 = vmatprep.subr.bf16.mxu1 %v6483_v56 }
 0x3b7   :  { %5797 = vmatpush3.bf16.msra.mxu1 %v6483_v56 }
 0x3b8   :  { %5802 = vmatprep.subr.bf16.mxu1 %v6484_v38 }
 0x3ba   :  { %5799 = vmatmul.mubr.bf16.vlgmr.msra.gmra.mrb[0].mxu1 %v873_v21 }
 0x3bb   :  { %5803 = vmatpush3.bf16.msra.mxu1 %v6484_v38  ;;  %5818 = vmatprep.mubr.bf16.mxu1 %v874_v31  ;;  %v6498_v31 = vld [vmem:[#allocation7 + $0x30] sm:$0xff]  }
 0x3bc   :  { %5804 = vmatprep.subr.bf16.mxu1 %v6485_v62 }
 0x3bf   :  { %5805 = vmatpush3.bf16.msra.mxu1 %v6485_v62 }
 0x3c0   :  { %5806 = vmatprep.subr.bf16.mxu1 %v6486_v41 }
 0x3c3   :  { %5807 = vmatpush3.bf16.msra.mxu1 %v6486_v41 }
 0x3c4   :  { %5808 = vmatprep.subr.bf16.mxu1 %v6487_v0 }
 0x3c7   :  { %5809 = vmatpush3.bf16.msra.mxu1 %v6487_v0 }
 0x3c8   :  { %5810 = vmatprep.subr.bf16.mxu1 %v6488_v58 }
 0x3cb   :  { %5811 = vmatpush3.bf16.msra.mxu1 %v6488_v58 }
 0x3cc   :  { %5812 = vmatprep.subr.bf16.mxu1 %v6489_v61 }
 0x3cf   :  { %5813 = vmatpush3.bf16.msra.mxu1 %v6489_v61 }
 0x3d0   :  { %5814 = vmatprep.subr.bf16.mxu1 %v6490_v1 }
 0x3d3   :  { %5815 = vmatpush3.bf16.msra.mxu1 %v6490_v1 }
 0x3d4   :  { %5816 = vmatprep.subr.bf16.mxu1 %v6491_v63 }
 0x3d7   :  { %5817 = vmatpush3.bf16.msra.mxu1 %v6491_v63 }
 0x3da   :  { %5819 = vmatmul.mubr.bf16.vlgmr.msra.gmra.mrb[0].mxu1 %v875_v27  ;;  %v6496_v27 = vld [vmem:[#allocation7 + $0x20] sm:$0xff]  }
 0x3db   :  { %5830 = vmatprep.subr.bf16.mxu0 %v6496_v27 }
 0x3dc   :  { %5831 = vmatpush3.bf16.msra.mxu0 %v6496_v27 }
 0x3dd   :  { %5832 = vmatprep.subr.bf16.mxu0 %v6497_v28 }
 0x3e0   :  { %5833 = vmatpush3.bf16.msra.mxu0 %v6497_v28 }
 0x3e1   :  { %5834 = vmatprep.subr.bf16.mxu0 %v6498_v31 }
 0x3e4   :  { %5835 = vmatpush3.bf16.msra.mxu0 %v6498_v31 }
 0x3e5   :  { %5836 = vmatprep.subr.bf16.mxu0 %v6499_v32 }
 0x3e8   :  { %5837 = vmatpush3.bf16.msra.mxu0 %v6499_v32 }
 0x415   :  { %v5700_v2 = vpop.f32.mrb[36].mxu0 }
 0x416   :  { %v991_v3 = vpop.f32.mrb[37].mxu0 }
 0x417   :  { %v5701_v12 = vpop.f32.mrb[38].mxu0 }
 0x418   :  { %v994_v4 = vpop.f32.mrb[39].mxu0 }
 0x4ad   :  { %v5820_v14 = vpop.f32.mrb[0].mxu1 }
 0x4ae   :  { %v6286_v8 = vadd.f32 %v5820_v14, %v5700_v2  ;;  %v1674_v9 = vpop.f32.mrb[1].mxu1 }
 0x4af   :  { %v6287_v11 = vadd.f32 %v1674_v9, %v991_v3  ;;  %v5821_v49 = vpop.f32.mrb[2].mxu1 }
 0x4b0   :  { %v7191_v10 = vadd.f32 %v6286_v8, %v5135_v7  ;;  %v6288_v46 = vadd.f32 %v5821_v49, %v5701_v12  ;;  %v1677_v13 = vpop.f32.mrb[3].mxu1 }
 0x4b1   :  { %v6289_v17 = vadd.f32 %v1677_v13, %v994_v4  ;;  %v7196_v19 = vadd.f32 %v6287_v11, %v5135_v7 }
 0x4b2   :  { %v7193_v18 = vadd.f32 %v6288_v46, %v5135_v7  ;;  %1708 = vadd.xlane.f32.xlu0 %v7191_v10  ;;  %v1728_v23 = vmul.f32 %v7191_v10, %v7191_v10 }
 0x4b3   :  { %v7199_v20 = vadd.f32 %v6289_v17, %v5135_v7  ;;  %v1726_v21 = vmul.f32 %v7196_v19, %v7196_v19 }
 0x4b4   :  { %1710 = vadd.xlane.f32.xlu1 %v7193_v18  ;;  %v1729_v15 = vmul.f32 %v7193_v18, %v7193_v18 }
 0x4b5   :  { %v1727_v22 = vmul.f32 %v7199_v20, %v7199_v20 }
 0x4b6   :  { %1704 = vadd.xlane.f32.xlu0 %v7196_v19 }
 0x4b8   :  { %1706 = vadd.xlane.f32.xlu1 %v7199_v20 }
 0x4ba   :  { %1730 = vadd.xlane.f32.xlu0 %v1726_v21 }
 0x4bc   :  { %1732 = vadd.xlane.f32.xlu1 %v1727_v22 }
 0x4be   :  { %1734 = vadd.xlane.f32.xlu0 %v1728_v23 }
 0x4c0   :  { %1736 = vadd.xlane.f32.xlu1 %v1729_v15 }
 0x53f   :  { %v1709_v33 = vpop.xlane.xlu0 %1708 }
 0x541   :  { %v1711_v29 = vpop.xlane.xlu1 %1710 }
 0x542   :  { %v1719_v35 = vadd.f32 %v1711_v29, %v1709_v33  ;;  %v5136_v33 = vld [vmem:[%s7729_s2 + $0x5] ss:$0 sm:$0xff] }
 0x543   :  { %v1705_v36 = vpop.xlane.xlu0 %1704 }
 0x544   :  { %v1720_v30 = vrot.slane %v1719_v35, 4 }
 0x545   :  { %v1707_v37 = vpop.xlane.xlu1 %1706 }
 0x546   :  { %v1721_v40 = vadd.f32 %v1720_v30, %v1719_v35  ;;  %v1712_v43 = vadd.f32 %v1707_v37, %v1705_v36  ;;  %v5137_v36 = vld [vmem:[%s7729_s2 + $0x6] ss:$0 sm:$0xff] }
 0x547   :  { %v1731_v44 = vpop.xlane.xlu0 %1730 }
 0x548   :  { %v1713_v59 = vrot.slane %v1712_v43, 4  ;;  %v1722_v45 = vrot.slane %v1721_v40, 2 }
 0x549   :  { %v1733_v48 = vpop.xlane.xlu1 %1732 }
 0x54a   :  { %v1714_v60 = vadd.f32 %v1713_v59, %v1712_v43  ;;  %v1738_v51 = vadd.f32 %v1733_v48, %v1731_v44  ;;  %v1723_v55 = vadd.f32 %v1722_v45, %v1721_v40 }
 0x54b   :  { %v1735_v56 = vpop.xlane.xlu0 %1734 }
 0x54c   :  { %v1715_v52 = vrot.slane %v1714_v60, 2  ;;  %v1739_v53 = vrot.slane %v1738_v51, 4  ;;  %v1724_v63 = vrot.slane %v1723_v55, 1 }
 0x54d   :  { %v1737_v38 = vpop.xlane.xlu1 %1736 }
 0x54e   :  { %v1716_v62 = vadd.f32 %v1715_v52, %v1714_v60  ;;  %v1740_v41 = vadd.f32 %v1739_v53, %v1738_v51  ;;  %v1745_v0 = vadd.f32 %v1737_v38, %v1735_v56  ;;  %v1725_v7 = vadd.f32 %v1724_v63, %v1723_v55  ;;  %v6500_v56 = vld [vmem:[#allocation8] sm:$0xff]   ;;  %v6501_v38 = vld [vmem:[#allocation8 + $0x8] sm:$0xff]  }
 0x54f   :  { %5842 = vmatprep.subr.bf16.mxu0 %v6500_v56 }
 0x550   :  { %v1717_v58 = vrot.slane %v1716_v62, 1  ;;  %v1741_v61 = vrot.slane %v1740_v41, 2  ;;  %v1746_v1 = vrot.slane %v1745_v0, 4  ;;  %v1753_v13 = vmul.f32 0.00048828125, %v1725_v7 }
 0x552   :  { %v1718_v2 = vadd.f32 %v1717_v58, %v1716_v62  ;;  %v1742_v3 = vadd.f32 %v1741_v61, %v1740_v41  ;;  %v1747_v12 = vadd.f32 %v1746_v1, %v1745_v0  ;;  %v1757_v15 = vmul.f32 %v1753_v13, %v1753_v13  ;;  %v6504_v62 = vld [vmem:[#allocation8 + $0x20] sm:$0xff]   ;;  %v6505_v41 = vld [vmem:[#allocation8 + $0x28] sm:$0xff]   ;;  %v6506_v0 = vld [vmem:[#allocation8 + $0x30] sm:$0xff]  }
 0x553   :  { %v1768_v40 = vsub.f32 %v7191_v10, %v1753_v13  ;;  %v1769_v43 = vsub.f32 %v7193_v18, %v1753_v13  ;;  %v6502_v10 = vld [vmem:[#allocation8 + $0x10] sm:$0xff]   ;;  %v6503_v18 = vld [vmem:[#allocation8 + $0x18] sm:$0xff]  }
 0x554   :  { %v1752_v4 = vmul.f32 0.00048828125, %v1718_v2  ;;  %v1743_v14 = vrot.slane %v1742_v3, 1  ;;  %v1748_v8 = vrot.slane %v1747_v12, 2  ;;  %v6507_v58 = vld [vmem:[#allocation8 + $0x38] sm:$0xff]  }
 0x556   :  { %v1744_v9 = vadd.f32 %v1743_v14, %v1742_v3  ;;  %v1749_v11 = vadd.f32 %v1748_v8, %v1747_v12  ;;  %v1756_v49 = vmul.f32 %v1752_v4, %v1752_v4  ;;  %v1766_v28 = vsub.f32 %v7196_v19, %v1752_v4 }
 0x557   :  { %v1767_v31 = vsub.f32 %v7199_v20, %v1752_v4 }
 0x558   :  { %v1754_v46 = vmul.f32 0.00048828125, %v1744_v9  ;;  %v1750_v17 = vrot.slane %v1749_v11, 1 }
 0x55a   :  { %v1758_v21 = vsub.f32 %v1754_v46, %v1756_v49  ;;  %v1751_v22 = vadd.f32 %v1750_v17, %v1749_v11 }
 0x55c   :  { %v1760_v23 = vmax.f32 %v1758_v21, 0.0  ;;  %v1755_v24 = vmul.f32 0.00048828125, %v1751_v22 }
 0x55e   :  { %v1762_v16 = vadd.f32 1e-05, %v1760_v23  ;;  %v1759_v25 = vsub.f32 %v1755_v24, %v1757_v15 }
 0x560   :  { %6672 = vrsqrt.f32 %v1762_v16  ;;  %v1761_v26 = vmax.f32 %v1759_v25, 0.0 }
 0x562   :  { %v1763_v27 = vadd.f32 1e-05, %v1761_v26 }
 0x564   :  { %6674 = vrsqrt.f32 %v1763_v27 }
 0x56a   :  { %v6673_v32 = vpop.eup %6672 }
 0x56b   :  { %v1770_v29 = vmul.f32 %v6673_v32, %v1766_v28  ;;  %v1771_v35 = vmul.f32 %v6673_v32, %v1767_v31 }
 0x56d   :  { %v1778_v30 = vmul.f32 %v5136_v33, %v1770_v29  ;;  %v1779_v37 = vmul.f32 %v5136_v33, %v1771_v35 }
 0x56e   :  { %v6675_v19 = vpop.eup %6674 }
 0x56f   :  { %v1786_v44 = vadd.f32 %v5137_v36, %v1778_v30  ;;  %v1787_v20 = vadd.f32 %v5137_v36, %v1779_v37  ;;  %v1772_v59 = vmul.f32 %v6675_v19, %v1768_v40  ;;  %v1773_v45 = vmul.f32 %v6675_v19, %v1769_v43 }
 0x571   :  { %v1790_v48 = vpack.c.bf16 %v1787_v20, %v1786_v44  ;;  %v1780_v60 = vmul.f32 %v5136_v33, %v1772_v59  ;;  %v1781_v51 = vmul.f32 %v5136_v33, %v1773_v45 }
 0x573   :  { %5838 = vmatprep.mubr.bf16.mxu0 %v1790_v48  ;;  %v1788_v52 = vadd.f32 %v5137_v36, %v1780_v60  ;;  %v1789_v53 = vadd.f32 %v5137_v36, %v1781_v51 }
 0x575   :  { %v1791_v55 = vpack.c.bf16 %v1789_v53, %v1788_v52 }
 0x577   :  { %5839 = vmatmul.mubr.bf16.vlgmr.msra.gmra.mrb[40].mxu0 %v1791_v55 }
 0x578   :  { %5843 = vmatpush3.bf16.msra.mxu0 %v6500_v56 }
 0x579   :  { %5844 = vmatprep.subr.bf16.mxu0 %v6501_v38 }
 0x57c   :  { %5845 = vmatpush3.bf16.msra.mxu0 %v6501_v38 }
 0x57d   :  { %5846 = vmatprep.subr.bf16.mxu0 %v6502_v10 }
 0x580   :  { %5847 = vmatpush3.bf16.msra.mxu0 %v6502_v10 }
 0x581   :  { %5848 = vmatprep.subr.bf16.mxu0 %v6503_v18 }
 0x584   :  { %5849 = vmatpush3.bf16.msra.mxu0 %v6503_v18 }
 0x585   :  { %5850 = vmatprep.subr.bf16.mxu0 %v6504_v62 }
 0x588   :  { %5851 = vmatpush3.bf16.msra.mxu0 %v6504_v62 }
 0x589   :  { %5852 = vmatprep.subr.bf16.mxu0 %v6505_v41 }
 0x58c   :  { %5853 = vmatpush3.bf16.msra.mxu0 %v6505_v41 }
 0x58d   :  { %5854 = vmatprep.subr.bf16.mxu0 %v6506_v0 }
 0x590   :  { %5855 = vmatpush3.bf16.msra.mxu0 %v6506_v0 }
 0x591   :  { %5856 = vmatprep.subr.bf16.mxu0 %v6507_v58 }
 0x594   :  { %5857 = vmatpush3.bf16.msra.mxu0 %v6507_v58 }
 0x64a   :  { %v7221_v61 = vpop.f32.mrb[40].mxu0 }
 0x64b   :  { %v7224_v1 = vmul.f32 0.70710677, %v7221_v61  ;;  %v7226_v63 = vpop.f32.mrb[41].mxu0 }
 0x64c   :  { %v7229_v2 = vmul.f32 0.70710677, %v7226_v63  ;;  %v7231_v3 = vpop.f32.mrb[42].mxu0 }
 0x64d   :  { %v1923_v12 = vand.u32 2147483647, %v7224_v1  ;;  %v7235_v4 = vmul.f32 0.70710677, %v7231_v3  ;;  %v7238_v7 = vpop.f32.mrb[43].mxu0  ;;  %vm1915_vm5 = vcmp.ge.f32.partialorder %v7224_v1, 0.0 }
 0x64e   :  { %v1921_v14 = vand.u32 2147483647, %v7229_v2  ;;  %v7242_v46 = vmul.f32 0.70710677, %v7238_v7  ;;  %vm1913_vm6 = vcmp.ge.f32.partialorder %v7229_v2, 0.0 }
 0x64f   :  { %v1927_v8 = vmul.f32 0.3275911, %v1923_v12  ;;  %v1924_v11 = vand.u32 2147483647, %v7235_v4  ;;  %v1987_v26 = vsub.f32 0.0, %v1923_v12  ;;  %vm1916_vm7 = vcmp.ge.f32.partialorder %v7235_v4, 0.0 }
 0x650   :  { %v1925_v9 = vmul.f32 0.3275911, %v1921_v14  ;;  %v1922_v21 = vand.u32 2147483647, %v7242_v46  ;;  %v1985_v31 = vsub.f32 0.0, %v1921_v14  ;;  %v1917_v1 = vsel %vm1913_vm6, 1.0, %v6886_v34 }
 0x651   :  { %v1931_v49 = vadd.f32 1.0, %v1927_v8  ;;  %v1928_v17 = vmul.f32 0.3275911, %v1924_v11  ;;  %v1991_v30 = vmul.f32 %v1987_v26, %v1923_v12  ;;  %v1988_v40 = vsub.f32 0.0, %v1924_v11 }
 0x652   :  { %v1929_v13 = vadd.f32 1.0, %v1925_v9  ;;  %v1926_v23 = vmul.f32 0.3275911, %v1922_v21  ;;  %v1989_v19 = vmul.f32 %v1985_v31, %v1921_v14  ;;  %v1986_v45 = vsub.f32 0.0, %v1922_v21 }
 0x653   :  { %6676 = vrcp.f32 %v1931_v49  ;;  %v1932_v22 = vadd.f32 1.0, %v1928_v17  ;;  %v1997_v52 = vmul.f32 1.442695, %v1991_v30  ;;  %v1992_v55 = vmul.f32 %v1988_v40, %v1924_v11 }
 0x654   :  { %6678 = vrcp.f32 %v1929_v13  ;;  %v1930_v15 = vadd.f32 1.0, %v1926_v23  ;;  %v1993_v38 = vmul.f32 1.442695, %v1989_v19  ;;  %v1990_v41 = vmul.f32 %v1986_v45, %v1922_v21 }
 0x655   :  { %6680 = vrcp.f32 %v1932_v22  ;;  %v1999_v8 = vmul.f32 1.442695, %v1992_v55  ;;  %vm1914_vm8 = vcmp.ge.f32.partialorder %v7242_v46, 0.0  ;;  %v1920_v2 = vsel %vm1916_vm7, 1.0, %v6886_v34 }
 0x656   :  { %6682 = vrcp.f32 %v1930_v15  ;;  %v1906_v46 = vmul.f32 0.5, %v7238_v7 }
 0x657   :  { %6684 = vpow2.f32 %v1997_v52 }
 0x658   :  { %6686 = vpow2.f32 %v1993_v38 }
 0x659   :  { %6688 = vpow2.f32 %v1999_v8 }
 0x65d   :  { %v6677_v24 = vpop.eup %6676 }
 0x65e   :  { %v6679_v16 = vpop.eup %6678  ;;  %v1939_v25 = vmul.f32 %v6677_v24, %v1931_v49 }
 0x65f   :  { %v1937_v27 = vmul.f32 %v6679_v16, %v1929_v13  ;;  %v6681_v32 = vpop.eup %6680 }
 0x660   :  { %v1943_v28 = vsub.f32 2.0, %v1939_v25  ;;  %v1940_v35 = vmul.f32 %v6681_v32, %v1932_v22  ;;  %v6683_v36 = vpop.eup %6682  ;;  %v1995_v22 = vmul.f32 1.442695, %v1990_v41 }
 0x661   :  { %v1941_v33 = vsub.f32 2.0, %v1937_v27  ;;  %v1938_v20 = vmul.f32 %v6683_v36, %v1930_v15  ;;  %v6685_v30 = vpop.eup %6684 }
 0x662   :  { %v1947_v29 = vmul.f32 %v6677_v24, %v1943_v28  ;;  %v1944_v44 = vsub.f32 2.0, %v1940_v35  ;;  %6690 = vpow2.f32 %v1995_v22 }
 0x663   :  { %v1945_v37 = vmul.f32 %v6679_v16, %v1941_v33  ;;  %v1942_v51 = vsub.f32 2.0, %v1938_v20 }
 0x664   :  { %v1951_v43 = vmul.f32 1.0614054, %v1947_v29  ;;  %v1948_v60 = vmul.f32 %v6681_v32, %v1944_v44 }
 0x665   :  { %v1949_v59 = vmul.f32 1.0614054, %v1945_v37  ;;  %v1946_v18 = vmul.f32 %v6683_v36, %v1942_v51 }
 0x666   :  { %v1955_v48 = vadd.f32 -1.4531521, %v1951_v43  ;;  %v1952_v10 = vmul.f32 1.0614054, %v1948_v60  ;;  %v6687_v43 = vpop.eup %6686 }
 0x667   :  { %v1953_v53 = vadd.f32 -1.4531521, %v1949_v59  ;;  %v1950_v12 = vmul.f32 1.0614054, %v1946_v18  ;;  %v6689_v52 = vpop.eup %6688 }
 0x668   :  { %v1959_v56 = vmul.f32 %v1955_v48, %v1947_v29  ;;  %v1956_v58 = vadd.f32 -1.4531521, %v1952_v10 }
 0x669   :  { %v1957_v62 = vmul.f32 %v1953_v53, %v1945_v37  ;;  %v1954_v13 = vadd.f32 -1.4531521, %v1950_v12  ;;  %v1919_v53 = vsel %vm1915_vm5, 1.0, %v6886_v34  ;;  %v1907_v12 = vmul.f32 0.5, %v7221_v61  ;;  %v6732_v61 = vld [vmem:[%s7730_s3] sm:$0xff]  }
 0x66a   :  { %v1963_v0 = vadd.f32 1.4214138, %v1959_v56  ;;  %v1960_v49 = vmul.f32 %v1956_v58, %v1948_v60 }
 0x66b   :  { %v1961_v14 = vadd.f32 1.4214138, %v1957_v62  ;;  %v1958_v15 = vmul.f32 %v1954_v13, %v1946_v18 }
 0x66c   :  { %v1967_v9 = vmul.f32 %v1963_v0, %v1947_v29  ;;  %v1964_v11 = vadd.f32 1.4214138, %v1960_v49  ;;  %v6691_v38 = vpop.eup %6690  ;;  %v1905_v49 = vmul.f32 0.5, %v7226_v63  ;;  %v5048_v63 = vld [vmem:[%s7729_s2 + $0x3] ss:$0 sm:$0xff] }
 0x66d   :  { %v1965_v17 = vmul.f32 %v1961_v14, %v1945_v37  ;;  %v1962_v21 = vadd.f32 1.4214138, %v1958_v15  ;;  %v1918_v14 = vsel %vm1914_vm8, 1.0, %v6886_v34  ;;  %v368_v7 = vadd.f32 %v5048_v63, %v7026_v47 }
 0x66e   :  { %v1971_v23 = vadd.f32 -0.28449672, %v1967_v9  ;;  %v1968_v25 = vmul.f32 %v1964_v11, %v1948_v60 }
 0x66f   :  { %v1969_v24 = vadd.f32 -0.28449672, %v1965_v17  ;;  %v1966_v31 = vmul.f32 %v1962_v21, %v1946_v18  ;;  %v366_v21 = vadd.f32 %v5048_v63, %v7012_v39 }
 0x670   :  { %v1975_v16 = vmul.f32 %v1971_v23, %v1947_v29  ;;  %v1972_v28 = vadd.f32 -0.28449672, %v1968_v25 }
 0x671   :  { %v1973_v26 = vmul.f32 %v1969_v24, %v1945_v37  ;;  %v1970_v36 = vadd.f32 -0.28449672, %v1966_v31 }
 0x672   :  { %v1979_v27 = vadd.f32 0.2548296, %v1975_v16  ;;  %v1976_v35 = vmul.f32 %v1972_v28, %v1948_v60  ;;  %v369_v28 = vadd.f32 %v5048_v63, %v7031_v50 }
 0x673   :  { %v1977_v32 = vadd.f32 0.2548296, %v1973_v26  ;;  %v1974_v20 = vmul.f32 %v1970_v36, %v1946_v18 }
 0x674   :  { %v1983_v33 = vmul.f32 %v1979_v27, %v1947_v29  ;;  %v1980_v44 = vadd.f32 0.2548296, %v1976_v35  ;;  %v367_v35 = vadd.f32 %v5048_v63, %v7017_v42  ;;  %v6509_v42 = vld [vmem:[#allocation5 + $0x208] sm:$0xff]   ;;  %v6520_v63 = vld [vmem:[#allocation5 + $0x1e0] sm:$0xff]  }
 0x675   :  { %v1981_v40 = vmul.f32 %v1977_v32, %v1945_v37  ;;  %v1978_v51 = vadd.f32 0.2548296, %v1974_v20  ;;  %v6512_v20 = vld [vmem:[#allocation5 + $0x220] sm:$0xff]  }
 0x676   :  { %v2003_v19 = vmul.f32 %v6685_v30, %v1983_v33  ;;  %v1984_v48 = vmul.f32 %v1980_v44, %v1948_v60  ;;  %v6736_v44 = vld [vmem:[%s7730_s3 + $0x20] sm:$0xff]  }
 0x677   :  { %v2001_v59 = vmul.f32 %v6687_v43, %v1981_v40  ;;  %v1982_v56 = vmul.f32 %v1978_v51, %v1946_v18  ;;  %v1908_v18 = vmul.f32 0.5, %v7231_v3  ;;  %v6510_v40 = vld [vmem:[#allocation5 + $0x210] sm:$0xff]   ;;  %v6511_v43 = vld [vmem:[#allocation5 + $0x218] sm:$0xff]  }
 0x678   :  { %v2007_v45 = vsub.f32 1.0, %v2003_v19  ;;  %v2004_v37 = vmul.f32 %v6689_v52, %v1984_v48  ;;  %v6735_v19 = vld [vmem:[%s7730_s3 + $0x18] sm:$0xff]   ;;  %v6738_v48 = vld [vmem:[%s7730_s3 + $0x30] sm:$0xff]   ;;  %v6740_v52 = vld [vmem:[%s7730_s3 + $0x40] sm:$0xff]  }
 0x679   :  { %v2005_v29 = vsub.f32 1.0, %v2001_v59  ;;  %v2002_v41 = vmul.f32 %v6691_v38, %v1982_v56  ;;  %v6513_v59 = vld [vmem:[#allocation5 + $0x228] sm:$0xff]   ;;  %v6739_v51 = vld [vmem:[%s7730_s3 + $0x38] sm:$0xff]   ;;  %v6514_v38 = vld [vmem:[#allocation5 + $0x230] sm:$0xff]  }
 0x67a   :  { %v2011_v55 = vmul.f32 %v2007_v45, %v1919_v53  ;;  %v2008_v62 = vsub.f32 1.0, %v2004_v37  ;;  %v6737_v45 = vld [vmem:[%s7730_s3 + $0x28] sm:$0xff]   ;;  %v6744_v37 = vld [vmem:[%s7730_s3 + $0x60] sm:$0xff]  }
 0x67b   :  { %v2009_v10 = vmul.f32 %v2005_v29, %v1917_v1  ;;  %v2006_v58 = vsub.f32 1.0, %v2002_v41  ;;  %v6741_v53 = vld [vmem:[%s7730_s3 + $0x48] sm:$0xff]   ;;  %v6742_v29 = vld [vmem:[%s7730_s3 + $0x50] sm:$0xff]   ;;  %v6515_v1 = vld [vmem:[#allocation5 + $0x238] sm:$0xff]  }
 0x67c   :  { %v2015_v60 = vadd.f32 1.0, %v2011_v55  ;;  %v2012_v0 = vmul.f32 %v2008_v62, %v1920_v2  ;;  %v6743_v55 = vld [vmem:[%s7730_s3 + $0x58] sm:$0xff]   ;;  %v6745_v56 = vld [vmem:[%s7730_s3 + $0x68] sm:$0xff]  }
 0x67d   :  { %v2013_v4 = vadd.f32 1.0, %v2009_v10  ;;  %v2010_v9 = vmul.f32 %v2006_v58, %v1918_v14  ;;  %v6516_v10 = vld [vmem:[#allocation5 + $0x1c0] sm:$0xff]  }
 0x67e   :  { %v2016_v8 = vadd.f32 1.0, %v2012_v0  ;;  %v2019_v13 = vmul.f32 %v2015_v60, %v1907_v12 }
 0x67f   :  { %v2014_v22 = vadd.f32 1.0, %v2010_v9  ;;  %v2017_v23 = vmul.f32 %v2013_v4, %v1905_v49  ;;  %v6517_v49 = vld [vmem:[#allocation5 + $0x1c8] sm:$0xff]  }
 0x680   :  { %v2020_v17 = vmul.f32 %v2016_v8, %v1908_v18 }
 0x681   :  { %v2018_v15 = vmul.f32 %v2014_v22, %v1906_v46 }
 0x682   :  { %v2022_v11 = vpack.c.bf16 %v2020_v17, %v2019_v13  ;;  %v6518_v17 = vld [vmem:[#allocation5 + $0x1d0] sm:$0xff]  }
 0x683   :  { %v2021_v24 = vpack.c.bf16 %v2018_v15, %v2017_v23 }
 0x685   :  { %5858 = vmatprep.mubr.bf16.mxu0 %v2021_v24  ;;  %v6519_v24 = vld [vmem:[#allocation5 + $0x1d8] sm:$0xff]  }
 0x686   :  { %5859 = vmatmul.mubr.bf16.vlgmr.msra.gmra.mrb[44].mxu0 %v2022_v11 }
 0x687   :  { %5866 = vmatprep.mubr.msk.bf16.mxu0 %vm674_vm0, %v6732_v61 }
 0x759   :  { %v5860_v3 = vpop.f32.mrb[44].mxu0 }
 0x75a   :  { %v2130_v16 = vadd.f32 %v5860_v3, %v7094_v5  ;;  %v2121_v25 = vpop.f32.mrb[45].mxu0 }
 0x75b   :  { %v2122_v26 = vadd.f32 %v2121_v25, %v7082_v54  ;;  %v5861_v27 = vpop.f32.mrb[46].mxu0  ;;  %v6508_v54 = vld [vmem:[#allocation5 + $0x200] sm:$0xff]  }
 0x75c   :  { %v7269_v31 = vadd.f32 %v2130_v16, %v368_v7  ;;  %v2133_v32 = vadd.f32 %v5861_v27, %v7096_v6  ;;  %v2124_v33 = vpop.f32.mrb[47].mxu0  ;;  %v6734_v6 = vld [vmem:[%s7730_s3 + $0x10] sm:$0xff]  }
 0x75d   :  { %v7273_v36 = vadd.f32 %v2122_v26, %v366_v21  ;;  %v2125_v47 = vadd.f32 %v2124_v33, %v7084_v57  ;;  %v6733_v57 = vld [vmem:[%s7730_s3 + $0x8] sm:$0xff]  }
 0x75e   :  { %v7276_v5 = vadd.f32 %v2133_v32, %v369_v28  ;;  %v6521_v26 = vld [vmem:[#allocation5 + $0x1e8] sm:$0xff]   ;;  %v6522_v28 = vld [vmem:[#allocation5 + $0x1f0] sm:$0xff]  }
 0x75f   :  { %v7278_v30 = vadd.f32 %v2125_v47, %v367_v35 }
 0x760   :  { %v2141_v50 = vpack.c.bf16 %v7276_v5, %v7269_v31 }
 0x761   :  { %v2140_v39 = vpack.c.bf16 %v7278_v30, %v7273_v36 }
 0x763   :  { %5862 = vmatprep.subr.bf16.mxu0 %v2140_v39 }
 0x764   :  { %5863 = vmatpush3.bf16.msra.mxu0 %v2140_v39 }
 0x765   :  { %5864 = vmatprep.subr.bf16.mxu0 %v2141_v50 }
 0x768   :  { %5865 = vmatpush3.bf16.msra.mxu0 %v2141_v50  ;;  %v6523_v50 = vld [vmem:[#allocation5 + $0x1f8] sm:$0xff]  }
 0x769   :  { %5894 = vmatprep.subr.bf16.mxu0 %v6508_v54 }
 0x76b   :  { %5867 = vmatmul.mubr.msk.bf16.vlgmr.msra.gmra.mrb[48].mxu0 %vm674_vm0, %v6733_v57 }
 0x76c   :  { %5870 = vmatprep.mubr.msk.bf16.mxu0 %vm674_vm0, %v6734_v6  ;;  %5895 = vmatpush3.bf16.msra.mxu0 %v6508_v54 }
 0x76d   :  { %5896 = vmatprep.subr.bf16.mxu0 %v6509_v42 }
 0x770   :  { %5897 = vmatpush3.bf16.msra.mxu0 %v6509_v42  ;;  %v6524_v42 = vld [vmem:[#allocation5 + $0x240] sm:$0xff]  }
 0x771   :  { %5898 = vmatprep.subr.bf16.mxu0 %v6510_v40 }
 0x773   :  { %5871 = vmatmul.mubr.msk.bf16.gmra.mrb[52].mxu0 %vm674_vm0, %v6735_v19 }
 0x774   :  { %5874 = vmatprep.mubr.msk.bf16.mxu0 %vm674_vm0, %v6736_v44  ;;  %5899 = vmatpush3.bf16.msra.mxu0 %v6510_v40  ;;  %v6525_v44 = vld [vmem:[#allocation5 + $0x248] sm:$0xff]  }
 0x775   :  { %5900 = vmatprep.subr.bf16.mxu0 %v6511_v43 }
 0x778   :  { %5901 = vmatpush3.bf16.msra.mxu0 %v6511_v43 }
 0x779   :  { %5902 = vmatprep.subr.bf16.mxu0 %v6512_v20 }
 0x77b   :  { %5875 = vmatmul.mubr.msk.bf16.gmra.mrb[56].mxu0 %vm674_vm0, %v6737_v45  ;;  %v6528_v45 = vld [vmem:[#allocation5 + $0x260] sm:$0xff]  }
 0x77c   :  { %5878 = vmatprep.mubr.msk.bf16.mxu0 %vm674_vm0, %v6738_v48  ;;  %5903 = vmatpush3.bf16.msra.mxu0 %v6512_v20  ;;  %v6526_v20 = vld [vmem:[#allocation5 + $0x250] sm:$0xff]   ;;  %v6529_v48 = vld [vmem:[#allocation5 + $0x268] sm:$0xff]  }
 0x77d   :  { %5904 = vmatprep.subr.bf16.mxu0 %v6513_v59 }
 0x780   :  { %5905 = vmatpush3.bf16.msra.mxu0 %v6513_v59  ;;  %v6527_v59 = vld [vmem:[#allocation5 + $0x258] sm:$0xff]  }
 0x781   :  { %5906 = vmatprep.subr.bf16.mxu0 %v6514_v38 }
 0x783   :  { %5879 = vmatmul.mubr.msk.bf16.gmra.mrb[60].mxu0 %vm674_vm0, %v6739_v51  ;;  %v6530_v51 = vld [vmem:[#allocation5 + $0x270] sm:$0xff]  }
 0x784   :  { %5882 = vmatprep.mubr.msk.bf16.mxu0 %vm674_vm0, %v6740_v52  ;;  %5907 = vmatpush3.bf16.msra.mxu0 %v6514_v38  ;;  %v6531_v52 = vld [vmem:[#allocation5 + $0x278] sm:$0xff]   ;;  %v6532_v38 = vld [vmem:[#allocation5 + $0x280] sm:$0xff]  }
 0x785   :  { %5908 = vmatprep.subr.bf16.mxu0 %v6515_v1 }
 0x788   :  { %5909 = vmatpush3.bf16.msra.mxu0 %v6515_v1 }
 0x789   :  { %5914 = vmatprep.subr.bf16.mxu0 %v6516_v10 }
 0x78b   :  { %5883 = vmatmul.mubr.msk.bf16.gmra.mrb[64].mxu0 %vm674_vm0, %v6741_v53 }
 0x78c   :  { %5886 = vmatprep.mubr.msk.bf16.mxu0 %vm674_vm0, %v6742_v29 }
 0x793   :  { %5887 = vmatmul.mubr.msk.bf16.gmra.mrb[68].mxu0 %vm674_vm0, %v6743_v55 }
 0x794   :  { %5890 = vmatprep.mubr.msk.bf16.mxu0 %vm674_vm0, %v6744_v37 }
 0x79b   :  { %5891 = vmatmul.mubr.msk.bf16.gmra.mrb[72].mxu0 %vm674_vm0, %v6745_v56 }
 0x83e   :  { %v7336_v62 = vpop.f32.mrb[48].mxu0 }
 0x83f   :  { %v2176_v41 = vpop.f32.mrb[49].mxu0 }
 0x840   :  { %v5869_v2 = vpop.f32.mrb[50].mxu0 }
 0x841   :  { %v2288_v60 = vpack.c.bf16 %v5869_v2, %v7336_v62  ;;  %v2179_v0 = vpop.f32.mrb[51].mxu0  ;;  %v6534_v62 = vld [vmem:[#allocation5 + $0x290] sm:$0xff]   ;;  %v6536_v2 = vld [vmem:[#allocation5 + $0x2a0] sm:$0xff]  }
 0x842   :  { %v2287_v58 = vpack.c.bf16 %v2179_v0, %v2176_v41  ;;  %v6535_v41 = vld [vmem:[#allocation5 + $0x298] sm:$0xff]   ;;  %v6538_v0 = vld [vmem:[#allocation5 + $0x2b0] sm:$0xff]  }
 0x846   :  { %v5872_v12 = vpop.f32.mrb[52].mxu0 }
 0x847   :  { %v2192_v14 = vpop.f32.mrb[53].mxu0 }
 0x848   :  { %v5873_v4 = vpop.f32.mrb[54].mxu0 }
 0x849   :  { %v2290_v18 = vpack.c.bf16 %v5873_v4, %v5872_v12  ;;  %v2195_v8 = vpop.f32.mrb[55].mxu0  ;;  %v6540_v12 = vld [vmem:[#allocation5 + $0x2c0] sm:$0xff]   ;;  %v6542_v4 = vld [vmem:[#allocation5 + $0x2d0] sm:$0xff]  }
 0x84a   :  { %v2289_v9 = vpack.c.bf16 %v2195_v8, %v2192_v14  ;;  %v6541_v14 = vld [vmem:[#allocation5 + $0x2c8] sm:$0xff]   ;;  %v6544_v8 = vld [vmem:[#allocation5 + $0x2e0] sm:$0xff]  }
 0x84c   :  { %5910 = vmatprep.mubr.bf16.mxu0 %v2289_v9  ;;  %v6545_v9 = vld [vmem:[#allocation5 + $0x2e8] sm:$0xff]  }
 0x84d   :  { %5911 = vmatmul.mubr.bf16.vlgmr.msra.gmra.mrb[76].mxu0 %v2290_v18  ;;  %v6543_v18 = vld [vmem:[#allocation5 + $0x2d8] sm:$0xff]  }
 0x84e   :  { %5915 = vmatpush3.bf16.msra.mxu0 %v6516_v10  ;;  %5930 = vmatprep.mubr.bf16.mxu0 %v2287_v58  ;;  %v7339_v13 = vpop.f32.mrb[56].mxu0  ;;  %v6533_v10 = vld [vmem:[#allocation5 + $0x288] sm:$0xff]   ;;  %v6539_v58 = vld [vmem:[#allocation5 + $0x2b8] sm:$0xff]  }
 0x84f   :  { %5916 = vmatprep.subr.bf16.mxu0 %v6517_v49  ;;  %v2208_v46 = vpop.f32.mrb[57].mxu0 }
 0x850   :  { %v7341_v22 = vpop.f32.mrb[58].mxu0 }
 0x851   :  { %v2292_v23 = vpack.c.bf16 %v7341_v22, %v7339_v13  ;;  %v2211_v11 = vpop.f32.mrb[59].mxu0  ;;  %v6547_v13 = vld [vmem:[#allocation5 + $0x2f8] sm:$0xff]   ;;  %v6550_v22 = vld [vmem:[#allocation5 + $0x310] sm:$0xff]  }
 0x852   :  { %5917 = vmatpush3.bf16.msra.mxu0 %v6517_v49  ;;  %v2291_v15 = vpack.c.bf16 %v2211_v11, %v2208_v46  ;;  %v6546_v49 = vld [vmem:[#allocation5 + $0x2f0] sm:$0xff]   ;;  %v6549_v46 = vld [vmem:[#allocation5 + $0x308] sm:$0xff]   ;;  %v6552_v11 = vld [vmem:[#allocation5 + $0x320] sm:$0xff]  }
 0x853   :  { %5918 = vmatprep.subr.bf16.mxu0 %v6518_v17 }
 0x856   :  { %5919 = vmatpush3.bf16.msra.mxu0 %v6518_v17  ;;  %v7345_v61 = vpop.f32.mrb[60].mxu0  ;;  %v6548_v17 = vld [vmem:[#allocation5 + $0x300] sm:$0xff]  }
 0x857   :  { %5920 = vmatprep.subr.bf16.mxu0 %v6519_v24  ;;  %v7347_v3 = vpop.f32.mrb[61].mxu0 }
 0x858   :  { %v7349_v7 = vpop.f32.mrb[62].mxu0 }
 0x859   :  { %v2294_v16 = vpack.c.bf16 %v7349_v7, %v7345_v61  ;;  %v7353_v25 = vpop.f32.mrb[63].mxu0  ;;  %v6555_v61 = vld [vmem:[#allocation5 + $0x338] sm:$0xff]   ;;  %v6558_v7 = vld [vmem:[#allocation5 + $0x350] sm:$0xff]  }
 0x85a   :  { %5921 = vmatpush3.bf16.msra.mxu0 %v6519_v24  ;;  %v2293_v21 = vpack.c.bf16 %v7353_v25, %v7347_v3  ;;  %v6554_v24 = vld [vmem:[#allocation5 + $0x330] sm:$0xff]   ;;  %v6557_v3 = vld [vmem:[#allocation5 + $0x348] sm:$0xff]   ;;  %v6560_v25 = vld [vmem:[#allocation5 + $0x360] sm:$0xff]  }
 0x85b   :  { %5922 = vmatprep.subr.bf16.mxu0 %v6520_v63 }
 0x85e   :  { %5923 = vmatpush3.bf16.msra.mxu0 %v6520_v63  ;;  %v7357_v27 = vpop.f32.mrb[64].mxu0  ;;  %v6556_v63 = vld [vmem:[#allocation5 + $0x340] sm:$0xff]  }
 0x85f   :  { %5924 = vmatprep.subr.bf16.mxu0 %v6521_v26  ;;  %v7359_v32 = vpop.f32.mrb[65].mxu0 }
 0x860   :  { %v7361_v33 = vpop.f32.mrb[66].mxu0 }
 0x861   :  { %v2296_v35 = vpack.c.bf16 %v7361_v33, %v7357_v27  ;;  %v7365_v47 = vpop.f32.mrb[67].mxu0  ;;  %v6563_v27 = vld [vmem:[#allocation5 + $0x378] sm:$0xff]  }
 0x862   :  { %5925 = vmatpush3.bf16.msra.mxu0 %v6521_v26  ;;  %v2295_v39 = vpack.c.bf16 %v7365_v47, %v7359_v32  ;;  %v6562_v26 = vld [vmem:[#allocation5 + $0x370] sm:$0xff]  }
 0x863   :  { %5926 = vmatprep.subr.bf16.mxu0 %v6522_v28 }
 0x866   :  { %5927 = vmatpush3.bf16.msra.mxu0 %v6522_v28  ;;  %v7369_v54 = vpop.f32.mrb[68].mxu0  ;;  %v5224_v28 = vld [vmem:[%s7729_s2 + $0x7] ss:$0 sm:$0xff] }
 0x867   :  { %5928 = vmatprep.subr.bf16.mxu0 %v6523_v50  ;;  %v7371_v57 = vpop.f32.mrb[69].mxu0 }
 0x868   :  { %v7373_v6 = vpop.f32.mrb[70].mxu0 }
 0x869   :  { %v2298_v40 = vpack.c.bf16 %v7373_v6, %v7369_v54  ;;  %v7377_v43 = vpop.f32.mrb[71].mxu0 }
 0x86a   :  { %5929 = vmatpush3.bf16.msra.mxu0 %v6523_v50  ;;  %v2297_v19 = vpack.c.bf16 %v7377_v43, %v7371_v57 }
 0x86b   :  { %5934 = vmatprep.subr.bf16.mxu0 %v6524_v42 }
 0x86d   :  { %5931 = vmatmul.mubr.bf16.vlgmr.msra.gmra.mrb[76].mxu0 %v2288_v60  ;;  %v6537_v60 = vld [vmem:[#allocation5 + $0x2a8] sm:$0xff]  }
 0x86e   :  { %5935 = vmatpush3.bf16.msra.mxu0 %v6524_v42  ;;  %5950 = vmatprep.mubr.bf16.mxu0 %v2291_v15  ;;  %v7381_v53 = vpop.f32.mrb[72].mxu0  ;;  %v6553_v15 = vld [vmem:[#allocation5 + $0x328] sm:$0xff]  }
 0x86f   :  { %5936 = vmatprep.subr.bf16.mxu0 %v6525_v44  ;;  %v7383_v29 = vpop.f32.mrb[73].mxu0 }
 0x870   :  { %v7385_v55 = vpop.f32.mrb[74].mxu0 }
 0x871   :  { %v2300_v37 = vpack.c.bf16 %v7385_v55, %v7381_v53  ;;  %v7389_v56 = vpop.f32.mrb[75].mxu0 }
 0x872   :  { %5937 = vmatpush3.bf16.msra.mxu0 %v6525_v44  ;;  %v2299_v1 = vpack.c.bf16 %v7389_v56, %v7383_v29  ;;  %v6565_v44 = vld [vmem:[#allocation7 + $0x48] sm:$0xff]  }
 0x873   :  { %5938 = vmatprep.subr.bf16.mxu0 %v6526_v20 }
 0x876   :  { %5939 = vmatpush3.bf16.msra.mxu0 %v6526_v20  ;;  %v6566_v20 = vld [vmem:[#allocation7 + $0x50] sm:$0xff]  }
 0x877   :  { %5940 = vmatprep.subr.bf16.mxu0 %v6527_v59 }
 0x87a   :  { %5941 = vmatpush3.bf16.msra.mxu0 %v6527_v59  ;;  %v6567_v59 = vld [vmem:[#allocation7 + $0x58] sm:$0xff]  }
 0x87b   :  { %5942 = vmatprep.subr.bf16.mxu0 %v6528_v45 }
 0x87e   :  { %5943 = vmatpush3.bf16.msra.mxu0 %v6528_v45  ;;  %v6568_v45 = vld [vmem:[#allocation7 + $0x60] sm:$0xff]  }
 0x87f   :  { %5944 = vmatprep.subr.bf16.mxu0 %v6529_v48 }
 0x882   :  { %5945 = vmatpush3.bf16.msra.mxu0 %v6529_v48  ;;  %v6569_v48 = vld [vmem:[#allocation7 + $0x68] sm:$0xff]  }
 0x883   :  { %5946 = vmatprep.subr.bf16.mxu0 %v6530_v51 }
 0x886   :  { %5947 = vmatpush3.bf16.msra.mxu0 %v6530_v51  ;;  %v6570_v51 = vld [vmem:[#allocation7 + $0x70] sm:$0xff]  }
 0x887   :  { %5948 = vmatprep.subr.bf16.mxu0 %v6531_v52 }
 0x88a   :  { %5949 = vmatpush3.bf16.msra.mxu0 %v6531_v52  ;;  %v6571_v52 = vld [vmem:[#allocation7 + $0x78] sm:$0xff]  }
 0x88b   :  { %5954 = vmatprep.subr.bf16.mxu0 %v6532_v38 }
 0x88d   :  { %5951 = vmatmul.mubr.bf16.vlgmr.msra.gmra.mrb[76].mxu0 %v2292_v23  ;;  %v6551_v23 = vld [vmem:[#allocation5 + $0x318] sm:$0xff]  }
 0x88e   :  { %5955 = vmatpush3.bf16.msra.mxu0 %v6532_v38  ;;  %5970 = vmatprep.mubr.bf16.mxu0 %v2293_v21  ;;  %v6561_v21 = vld [vmem:[#allocation5 + $0x368] sm:$0xff]  }
 0x88f   :  { %5956 = vmatprep.subr.bf16.mxu0 %v6533_v10 }
 0x892   :  { %5957 = vmatpush3.bf16.msra.mxu0 %v6533_v10 }
 0x893   :  { %5958 = vmatprep.subr.bf16.mxu0 %v6534_v62 }
 0x896   :  { %5959 = vmatpush3.bf16.msra.mxu0 %v6534_v62 }
 0x897   :  { %5960 = vmatprep.subr.bf16.mxu0 %v6535_v41 }
 0x89a   :  { %5961 = vmatpush3.bf16.msra.mxu0 %v6535_v41 }
 0x89b   :  { %5962 = vmatprep.subr.bf16.mxu0 %v6536_v2 }
 0x89e   :  { %5963 = vmatpush3.bf16.msra.mxu0 %v6536_v2 }
 0x89f   :  { %5964 = vmatprep.subr.bf16.mxu0 %v6537_v60 }
 0x8a2   :  { %5965 = vmatpush3.bf16.msra.mxu0 %v6537_v60 }
 0x8a3   :  { %5966 = vmatprep.subr.bf16.mxu0 %v6538_v0 }
 0x8a6   :  { %5967 = vmatpush3.bf16.msra.mxu0 %v6538_v0 }
 0x8a7   :  { %5968 = vmatprep.subr.bf16.mxu0 %v6539_v58 }
 0x8aa   :  { %5969 = vmatpush3.bf16.msra.mxu0 %v6539_v58 }
 0x8ab   :  { %5974 = vmatprep.subr.bf16.mxu0 %v6540_v12 }
 0x8ad   :  { %5971 = vmatmul.mubr.bf16.vlgmr.msra.gmra.mrb[76].mxu0 %v2294_v16  ;;  %v6559_v16 = vld [vmem:[#allocation5 + $0x358] sm:$0xff]  }
 0x8ae   :  { %5975 = vmatpush3.bf16.msra.mxu0 %v6540_v12  ;;  %5990 = vmatprep.mubr.bf16.mxu0 %v2295_v39 }
 0x8af   :  { %5976 = vmatprep.subr.bf16.mxu0 %v6541_v14 }
 0x8b2   :  { %5977 = vmatpush3.bf16.msra.mxu0 %v6541_v14 }
 0x8b3   :  { %5978 = vmatprep.subr.bf16.mxu0 %v6542_v4 }
 0x8b6   :  { %5979 = vmatpush3.bf16.msra.mxu0 %v6542_v4 }
 0x8b7   :  { %5980 = vmatprep.subr.bf16.mxu0 %v6543_v18 }
 0x8ba   :  { %5981 = vmatpush3.bf16.msra.mxu0 %v6543_v18 }
 0x8bb   :  { %5982 = vmatprep.subr.bf16.mxu0 %v6544_v8 }
 0x8be   :  { %5983 = vmatpush3.bf16.msra.mxu0 %v6544_v8 }
 0x8bf   :  { %5984 = vmatprep.subr.bf16.mxu0 %v6545_v9 }
 0x8c2   :  { %5985 = vmatpush3.bf16.msra.mxu0 %v6545_v9 }
 0x8c3   :  { %5986 = vmatprep.subr.bf16.mxu0 %v6546_v49 }
 0x8c6   :  { %5987 = vmatpush3.bf16.msra.mxu0 %v6546_v49 }
 0x8c7   :  { %5988 = vmatprep.subr.bf16.mxu0 %v6547_v13 }
 0x8ca   :  { %5989 = vmatpush3.bf16.msra.mxu0 %v6547_v13 }
 0x8cb   :  { %5994 = vmatprep.subr.bf16.mxu0 %v6548_v17 }
 0x8cd   :  { %5991 = vmatmul.mubr.bf16.vlgmr.msra.gmra.mrb[76].mxu0 %v2296_v35 }
 0x8ce   :  { %5995 = vmatpush3.bf16.msra.mxu0 %v6548_v17  ;;  %6010 = vmatprep.mubr.bf16.mxu0 %v2297_v19  ;;  %v6564_v19 = vld [vmem:[#allocation7 + $0x40] sm:$0xff]  }
 0x8cf   :  { %5996 = vmatprep.subr.bf16.mxu0 %v6549_v46  ;;  %6034 = vmatprep.subr.bf16.mxu1 %v6564_v19 }
 0x8d0   :  { %6035 = vmatpush3.bf16.msra.mxu1 %v6564_v19 }
 0x8d1   :  { %6036 = vmatprep.subr.bf16.mxu1 %v6565_v44 }
 0x8d2   :  { %5997 = vmatpush3.bf16.msra.mxu0 %v6549_v46 }
 0x8d3   :  { %5998 = vmatprep.subr.bf16.mxu0 %v6550_v22 }
 0x8d4   :  { %6037 = vmatpush3.bf16.msra.mxu1 %v6565_v44 }
 0x8d5   :  { %6038 = vmatprep.subr.bf16.mxu1 %v6566_v20 }
 0x8d6   :  { %5999 = vmatpush3.bf16.msra.mxu0 %v6550_v22 }
 0x8d7   :  { %6000 = vmatprep.subr.bf16.mxu0 %v6551_v23 }
 0x8d8   :  { %6039 = vmatpush3.bf16.msra.mxu1 %v6566_v20 }
 0x8d9   :  { %6040 = vmatprep.subr.bf16.mxu1 %v6567_v59 }
 0x8da   :  { %6001 = vmatpush3.bf16.msra.mxu0 %v6551_v23 }
 0x8db   :  { %6002 = vmatprep.subr.bf16.mxu0 %v6552_v11 }
 0x8dc   :  { %6041 = vmatpush3.bf16.msra.mxu1 %v6567_v59 }
 0x8dd   :  { %6042 = vmatprep.subr.bf16.mxu1 %v6568_v45 }
 0x8de   :  { %6003 = vmatpush3.bf16.msra.mxu0 %v6552_v11 }
 0x8df   :  { %6004 = vmatprep.subr.bf16.mxu0 %v6553_v15 }
 0x8e0   :  { %6043 = vmatpush3.bf16.msra.mxu1 %v6568_v45  ;;  %v5225_v45 = vld [vmem:[%s7729_s2 + $0x8] ss:$0 sm:$0xff] }
 0x8e1   :  { %6044 = vmatprep.subr.bf16.mxu1 %v6569_v48 }
 0x8e2   :  { %6005 = vmatpush3.bf16.msra.mxu0 %v6553_v15 }
 0x8e3   :  { %6006 = vmatprep.subr.bf16.mxu0 %v6554_v24 }
 0x8e4   :  { %6045 = vmatpush3.bf16.msra.mxu1 %v6569_v48 }
 0x8e5   :  { %6046 = vmatprep.subr.bf16.mxu1 %v6570_v51 }
 0x8e6   :  { %6007 = vmatpush3.bf16.msra.mxu0 %v6554_v24 }
 0x8e7   :  { %6008 = vmatprep.subr.bf16.mxu0 %v6555_v61 }
 0x8e8   :  { %6047 = vmatpush3.bf16.msra.mxu1 %v6570_v51 }
 0x8e9   :  { %6048 = vmatprep.subr.bf16.mxu1 %v6571_v52 }
 0x8ea   :  { %6009 = vmatpush3.bf16.msra.mxu0 %v6555_v61 }
 0x8eb   :  { %6014 = vmatprep.subr.bf16.mxu0 %v6556_v63 }
 0x8ec   :  { %6049 = vmatpush3.bf16.msra.mxu1 %v6571_v52  ;;  %v5226_v52 = vld [vmem:[%s7729_s2 + $0x9] ss:$0 sm:$0xff] }
 0x8ed   :  { %6011 = vmatmul.mubr.bf16.vlgmr.msra.gmra.mrb[76].mxu0 %v2298_v40 }
 0x8ee   :  { %6015 = vmatpush3.bf16.msra.mxu0 %v6556_v63  ;;  %6030 = vmatprep.mubr.bf16.mxu0 %v2299_v1 }
 0x8ef   :  { %6016 = vmatprep.subr.bf16.mxu0 %v6557_v3 }
 0x8f2   :  { %6017 = vmatpush3.bf16.msra.mxu0 %v6557_v3 }
 0x8f3   :  { %6018 = vmatprep.subr.bf16.mxu0 %v6558_v7 }
 0x8f6   :  { %6019 = vmatpush3.bf16.msra.mxu0 %v6558_v7 }
 0x8f7   :  { %6020 = vmatprep.subr.bf16.mxu0 %v6559_v16 }
 0x8fa   :  { %6021 = vmatpush3.bf16.msra.mxu0 %v6559_v16 }
 0x8fb   :  { %6022 = vmatprep.subr.bf16.mxu0 %v6560_v25 }
 0x8fe   :  { %6023 = vmatpush3.bf16.msra.mxu0 %v6560_v25 }
 0x8ff   :  { %6024 = vmatprep.subr.bf16.mxu0 %v6561_v21 }
 0x902   :  { %6025 = vmatpush3.bf16.msra.mxu0 %v6561_v21 }
 0x903   :  { %6026 = vmatprep.subr.bf16.mxu0 %v6562_v26 }
 0x906   :  { %6027 = vmatpush3.bf16.msra.mxu0 %v6562_v26 }
 0x907   :  { %6028 = vmatprep.subr.bf16.mxu0 %v6563_v27 }
 0x90a   :  { %6029 = vmatpush3.bf16.msra.mxu0 %v6563_v27 }
 0x90d   :  { %6031 = vmatmul.mubr.bf16.vlgmr.msra.gmra.mrb[76].mxu0 %v2300_v37 }
 0x9e0   :  { %v6032_v32 = vpop.f32.mrb[76].mxu0 }
 0x9e1   :  { %v7420_v33 = vadd.f32 %v6032_v32, %v5224_v28  ;;  %v3100_v35 = vpop.f32.mrb[77].mxu0 }
 0x9e2   :  { %v6033_v47 = vpop.f32.mrb[78].mxu0  ;;  %v7425_v54 = vadd.f32 %v5224_v28, %v3100_v35 }
 0x9e3   :  { %v7422_v39 = vadd.f32 %v6033_v47, %v5224_v28  ;;  %3134 = vadd.xlane.f32.xlu0 %v7420_v33  ;;  %v3103_v50 = vpop.f32.mrb[79].mxu0  ;;  %v3154_v40 = vmul.f32 %v7420_v33, %v7420_v33 }
 0x9e4   :  { %v7428_v42 = vadd.f32 %v5224_v28, %v3103_v50  ;;  %v3152_v57 = vmul.f32 %v7425_v54, %v7425_v54 }
 0x9e5   :  { %3136 = vadd.xlane.f32.xlu1 %v7422_v39  ;;  %v3155_v43 = vmul.f32 %v7422_v39, %v7422_v39 }
 0x9e6   :  { %v3153_v6 = vmul.f32 %v7428_v42, %v7428_v42 }
 0x9e7   :  { %3130 = vadd.xlane.f32.xlu0 %v7425_v54 }
 0x9e9   :  { %3132 = vadd.xlane.f32.xlu1 %v7428_v42 }
 0x9eb   :  { %3156 = vadd.xlane.f32.xlu0 %v3152_v57 }
 0x9ed   :  { %3158 = vadd.xlane.f32.xlu1 %v3153_v6 }
 0x9ef   :  { %3160 = vadd.xlane.f32.xlu0 %v3154_v40 }
 0x9f1   :  { %3162 = vadd.xlane.f32.xlu1 %v3155_v43 }
 0xa70   :  { %v3135_v53 = vpop.xlane.xlu0 %3134 }
 0xa72   :  { %v3137_v29 = vpop.xlane.xlu1 %3136 }
 0xa73   :  { %v3145_v55 = vadd.f32 %v3137_v29, %v3135_v53 }
 0xa74   :  { %v3131_v37 = vpop.xlane.xlu0 %3130 }
 0xa75   :  { %v3146_v56 = vrot.slane %v3145_v55, 4 }
 0xa76   :  { %v3133_v38 = vpop.xlane.xlu1 %3132 }
 0xa77   :  { %v3147_v1 = vadd.f32 %v3146_v56, %v3145_v55  ;;  %v3138_v10 = vadd.f32 %v3133_v38, %v3131_v37 }
 0xa78   :  { %v3157_v62 = vpop.xlane.xlu0 %3156 }
 0xa79   :  { %v3139_v41 = vrot.slane %v3138_v10, 4  ;;  %v3148_v2 = vrot.slane %v3147_v1, 2 }
 0xa7a   :  { %v3159_v60 = vpop.xlane.xlu1 %3158 }
 0xa7b   :  { %v3140_v0 = vadd.f32 %v3139_v41, %v3138_v10  ;;  %v3164_v58 = vadd.f32 %v3159_v60, %v3157_v62  ;;  %v3149_v4 = vadd.f32 %v3148_v2, %v3147_v1 }
 0xa7c   :  { %v3161_v18 = vpop.xlane.xlu0 %3160 }
 0xa7d   :  { %v3141_v12 = vrot.slane %v3140_v0, 2  ;;  %v3165_v14 = vrot.slane %v3164_v58, 4  ;;  %v3150_v23 = vrot.slane %v3149_v4, 1 }
 0xa7e   :  { %v3163_v8 = vpop.xlane.xlu1 %3162 }
 0xa7f   :  { %v3142_v9 = vadd.f32 %v3141_v12, %v3140_v0  ;;  %v3166_v49 = vadd.f32 %v3165_v14, %v3164_v58  ;;  %v3171_v13 = vadd.f32 %v3163_v8, %v3161_v18  ;;  %v3151_v3 = vadd.f32 %v3150_v23, %v3149_v4  ;;  %v6572_v58 = vld [vmem:[#allocation8 + $0x40] sm:$0xff]   ;;  %v6573_v12 = vld [vmem:[#allocation8 + $0x48] sm:$0xff]   ;;  %v6578_v18 = vld [vmem:[#allocation8 + $0x70] sm:$0xff]  }
 0xa80   :  { %6054 = vmatprep.subr.bf16.mxu1 %v6572_v58  ;;  %v6576_v14 = vld [vmem:[#allocation8 + $0x60] sm:$0xff]   ;;  %v6577_v4 = vld [vmem:[#allocation8 + $0x68] sm:$0xff]   ;;  %v6579_v8 = vld [vmem:[#allocation8 + $0x78] sm:$0xff]  }
 0xa81   :  { %v3143_v17 = vrot.slane %v3142_v9, 1  ;;  %v3167_v46 = vrot.slane %v3166_v49, 2  ;;  %v3172_v22 = vrot.slane %v3171_v13, 4  ;;  %v3179_v27 = vmul.f32 0.00048828125, %v3151_v3 }
 0xa83   :  { %v3144_v11 = vadd.f32 %v3143_v17, %v3142_v9  ;;  %v3168_v15 = vadd.f32 %v3167_v46, %v3166_v49  ;;  %v3173_v24 = vadd.f32 %v3172_v22, %v3171_v13  ;;  %v3183_v50 = vmul.f32 %v3179_v27, %v3179_v27 }
 0xa84   :  { %v3194_v55 = vsub.f32 %v7420_v33, %v3179_v27  ;;  %v3195_v37 = vsub.f32 %v7422_v39, %v3179_v27  ;;  %v6574_v33 = vld [vmem:[#allocation8 + $0x50] sm:$0xff]   ;;  %v6575_v39 = vld [vmem:[#allocation8 + $0x58] sm:$0xff]  }
 0xa85   :  { %v3178_v61 = vmul.f32 0.00048828125, %v3144_v11  ;;  %v3169_v63 = vrot.slane %v3168_v15, 1  ;;  %v3174_v7 = vrot.slane %v3173_v24, 2 }
 0xa87   :  { %v3170_v16 = vadd.f32 %v3169_v63, %v3168_v15  ;;  %v3175_v25 = vadd.f32 %v3174_v7, %v3173_v24  ;;  %v3182_v21 = vmul.f32 %v3178_v61, %v3178_v61  ;;  %v3192_v44 = vsub.f32 %v7425_v54, %v3178_v61 }
 0xa88   :  { %v3193_v20 = vsub.f32 %v7428_v42, %v3178_v61 }
 0xa89   :  { %v3180_v26 = vmul.f32 0.00048828125, %v3170_v16  ;;  %v3176_v28 = vrot.slane %v3175_v25, 1 }
 0xa8b   :  { %v3184_v32 = vsub.f32 %v3180_v26, %v3182_v21  ;;  %v3177_v35 = vadd.f32 %v3176_v28, %v3175_v25 }
 0xa8d   :  { %v3186_v47 = vmax.f32 %v3184_v32, 0.0  ;;  %v3181_v57 = vmul.f32 0.00048828125, %v3177_v35 }
 0xa8f   :  { %v3188_v6 = vadd.f32 1e-05, %v3186_v47  ;;  %v3185_v40 = vsub.f32 %v3181_v57, %v3183_v50 }
 0xa91   :  { %6692 = vrsqrt.f32 %v3188_v6  ;;  %v3187_v43 = vmax.f32 %v3185_v40, 0.0 }
 0xa93   :  { %v3189_v19 = vadd.f32 1e-05, %v3187_v43 }
 0xa95   :  { %6694 = vrsqrt.f32 %v3189_v19 }
 0xa9b   :  { %v6693_v59 = vpop.eup %6692 }
 0xa9c   :  { %v3196_v48 = vmul.f32 %v6693_v59, %v3192_v44  ;;  %v3197_v51 = vmul.f32 %v6693_v59, %v3193_v20 }
 0xa9e   :  { %v3204_v53 = vmul.f32 %v5225_v45, %v3196_v48  ;;  %v3205_v29 = vmul.f32 %v5225_v45, %v3197_v51 }
 0xa9f   :  { %v6695_v54 = vpop.eup %6694 }
 0xaa0   :  { %v3212_v56 = vadd.f32 %v5226_v52, %v3204_v53  ;;  %v3213_v42 = vadd.f32 %v5226_v52, %v3205_v29  ;;  %v3198_v38 = vmul.f32 %v6695_v54, %v3194_v55  ;;  %v3199_v1 = vmul.f32 %v6695_v54, %v3195_v37 }
 0xaa2   :  { %v3216_v10 = vpack.c.bf16 %v3213_v42, %v3212_v56  ;;  %v3206_v62 = vmul.f32 %v5225_v45, %v3198_v38  ;;  %v3207_v41 = vmul.f32 %v5225_v45, %v3199_v1 }
 0xaa4   :  { %6050 = vmatprep.mubr.bf16.mxu1 %v3216_v10  ;;  %v3214_v2 = vadd.f32 %v5226_v52, %v3206_v62  ;;  %v3215_v60 = vadd.f32 %v5226_v52, %v3207_v41 }
 0xaa6   :  { %v3217_v0 = vpack.c.bf16 %v3215_v60, %v3214_v2 }
 0xaa8   :  { %6051 = vmatmul.mubr.bf16.vlgmr.msra.gmra.mrb[4].mxu1 %v3217_v0 }
 0xaa9   :  { %6055 = vmatpush3.bf16.msra.mxu1 %v6572_v58 }
 0xaaa   :  { %6056 = vmatprep.subr.bf16.mxu1 %v6573_v12 }
 0xaad   :  { %6057 = vmatpush3.bf16.msra.mxu1 %v6573_v12 }
 0xaae   :  { %6058 = vmatprep.subr.bf16.mxu1 %v6574_v33 }
 0xab1   :  { %6059 = vmatpush3.bf16.msra.mxu1 %v6574_v33 }
 0xab2   :  { %6060 = vmatprep.subr.bf16.mxu1 %v6575_v39 }
 0xab5   :  { %6061 = vmatpush3.bf16.msra.mxu1 %v6575_v39 }
 0xab6   :  { %6062 = vmatprep.subr.bf16.mxu1 %v6576_v14 }
 0xab9   :  { %6063 = vmatpush3.bf16.msra.mxu1 %v6576_v14 }
 0xaba   :  { %6064 = vmatprep.subr.bf16.mxu1 %v6577_v4 }
 0xabd   :  { %6065 = vmatpush3.bf16.msra.mxu1 %v6577_v4 }
 0xabe   :  { %6066 = vmatprep.subr.bf16.mxu1 %v6578_v18 }
 0xac1   :  { %6067 = vmatpush3.bf16.msra.mxu1 %v6578_v18 }
 0xac2   :  { %6068 = vmatprep.subr.bf16.mxu1 %v6579_v8 }
 0xac5   :  { %6069 = vmatpush3.bf16.msra.mxu1 %v6579_v8 }
 0xb7b   :  { %v7450_v9 = vpop.f32.mrb[4].mxu1 }
 0xb7c   :  { %v7453_v49 = vmul.f32 0.70710677, %v7450_v9  ;;  %v7455_v13 = vpop.f32.mrb[5].mxu1 }
 0xb7d   :  { %v7458_v17 = vmul.f32 0.70710677, %v7455_v13  ;;  %v7460_v46 = vpop.f32.mrb[6].mxu1 }
 0xb7e   :  { %v3350_v22 = vand.u32 2147483647, %v7453_v49  ;;  %v7464_v23 = vmul.f32 0.70710677, %v7460_v46  ;;  %v7467_v15 = vpop.f32.mrb[7].mxu1  ;;  %vm3342_vm9 = vcmp.ge.f32.partialorder %v7453_v49, 0.0 }
 0xb7f   :  { %v3348_v11 = vand.u32 2147483647, %v7458_v17  ;;  %v7471_v7 = vmul.f32 0.70710677, %v7467_v15  ;;  %vm3340_vm10 = vcmp.ge.f32.partialorder %v7458_v17, 0.0 }
 0xb80   :  { %v3354_v24 = vmul.f32 0.3275911, %v3350_v22  ;;  %v3351_v63 = vand.u32 2147483647, %v7464_v23  ;;  %v3414_v50 = vsub.f32 0.0, %v3350_v22  ;;  %vm3343_vm11 = vcmp.ge.f32.partialorder %v7464_v23, 0.0 }
 0xb81   :  { %v3352_v61 = vmul.f32 0.3275911, %v3348_v11  ;;  %v3349_v21 = vand.u32 2147483647, %v7471_v7  ;;  %v3412_v40 = vsub.f32 0.0, %v3348_v11  ;;  %v3344_v49 = vsel %vm3340_vm10, 1.0, %v6886_v34 }
 0xb82   :  { %v3358_v3 = vadd.f32 1.0, %v3354_v24  ;;  %v3355_v25 = vmul.f32 0.3275911, %v3351_v63  ;;  %v3418_v45 = vmul.f32 %v3414_v50, %v3350_v22  ;;  %v3415_v51 = vsub.f32 0.0, %v3351_v63 }
 0xb83   :  { %v3356_v16 = vadd.f32 1.0, %v3352_v61  ;;  %v3353_v27 = vmul.f32 0.3275911, %v3349_v21  ;;  %v3416_v53 = vmul.f32 %v3412_v40, %v3348_v11  ;;  %v3413_v54 = vsub.f32 0.0, %v3349_v21 }
 0xb84   :  { %6696 = vrcp.f32 %v3358_v3  ;;  %v3359_v26 = vadd.f32 1.0, %v3355_v25  ;;  %v3424_v1 = vmul.f32 1.442695, %v3418_v45  ;;  %v3419_v62 = vmul.f32 %v3415_v51, %v3351_v63 }
 0xb85   :  { %6698 = vrcp.f32 %v3356_v16  ;;  %v3357_v28 = vadd.f32 1.0, %v3353_v27  ;;  %v3420_v2 = vmul.f32 1.442695, %v3416_v53  ;;  %v3417_v12 = vmul.f32 %v3413_v54, %v3349_v21 }
 0xb86   :  { %6700 = vrcp.f32 %v3359_v26  ;;  %v3426_v18 = vmul.f32 1.442695, %v3419_v62  ;;  %v3346_v54 = vsel %vm3342_vm9, 1.0, %v6886_v34  ;;  %vm3341_vm12 = vcmp.ge.f32.partialorder %v7471_v7, 0.0 }
 0xb87   :  { %6702 = vrcp.f32 %v3357_v28  ;;  %v3422_v61 = vmul.f32 1.442695, %v3417_v12  ;;  %v3347_v17 = vsel %vm3343_vm11, 1.0, %v6886_v34  ;;  %v3345_v12 = vsel %vm3341_vm12, 1.0, %v6886_v34 }
 0xb88   :  { %6704 = vpow2.f32 %v3424_v1  ;;  %v3333_v7 = vmul.f32 0.5, %v7467_v15 }
 0xb89   :  { %6706 = vpow2.f32 %v3420_v2 }
 0xb8a   :  { %6708 = vpow2.f32 %v3426_v18 }
 0xb8b   :  { %6710 = vpow2.f32 %v3422_v61 }
 0xb8e   :  { %v6697_v32 = vpop.eup %6696 }
 0xb8f   :  { %v6699_v35 = vpop.eup %6698  ;;  %v3366_v47 = vmul.f32 %v6697_v32, %v3358_v3 }
 0xb90   :  { %v3364_v57 = vmul.f32 %v6699_v35, %v3356_v16  ;;  %v6701_v43 = vpop.eup %6700 }
 0xb91   :  { %v3370_v6 = vsub.f32 2.0, %v3366_v47  ;;  %v3367_v20 = vmul.f32 %v6701_v43, %v3359_v26  ;;  %v6703_v59 = vpop.eup %6702 }
 0xb92   :  { %v3368_v19 = vsub.f32 2.0, %v3364_v57  ;;  %v3365_v55 = vmul.f32 %v6703_v59, %v3357_v28 }
 0xb93   :  { %v3374_v44 = vmul.f32 %v6697_v32, %v3370_v6  ;;  %v3371_v29 = vsub.f32 2.0, %v3367_v20 }
 0xb94   :  { %v3372_v48 = vmul.f32 %v6699_v35, %v3368_v19  ;;  %v3369_v38 = vsub.f32 2.0, %v3365_v55 }
 0xb95   :  { %v3378_v52 = vmul.f32 1.0614054, %v3374_v44  ;;  %v3375_v42 = vmul.f32 %v6701_v43, %v3371_v29  ;;  %v6705_v43 = vpop.eup %6704 }
 0xb96   :  { %v3376_v37 = vmul.f32 1.0614054, %v3372_v48  ;;  %v3373_v0 = vmul.f32 %v6703_v59, %v3369_v38  ;;  %v6707_v20 = vpop.eup %6706 }
 0xb97   :  { %v3382_v56 = vadd.f32 -1.4531521, %v3378_v52  ;;  %v3379_v60 = vmul.f32 1.0614054, %v3375_v42 }
 0xb98   :  { %v3380_v10 = vadd.f32 -1.4531521, %v3376_v37  ;;  %v3377_v14 = vmul.f32 1.0614054, %v3373_v0  ;;  %v6709_v37 = vpop.eup %6708 }
 0xb99   :  { %v3386_v41 = vmul.f32 %v3382_v56, %v3374_v44  ;;  %v3383_v39 = vadd.f32 -1.4531521, %v3379_v60  ;;  %v6711_v1 = vpop.eup %6710 }
 0xb9a   :  { %v3384_v58 = vmul.f32 %v3380_v10, %v3372_v48  ;;  %v3381_v11 = vadd.f32 -1.4531521, %v3377_v14  ;;  %v3332_v14 = vmul.f32 0.5, %v7455_v13 }
 0xb9b   :  { %v3390_v33 = vadd.f32 1.4214138, %v3386_v41  ;;  %v3387_v22 = vmul.f32 %v3383_v39, %v3375_v42 }
 0xb9c   :  { %v3388_v4 = vadd.f32 1.4214138, %v3384_v58  ;;  %v3385_v16 = vmul.f32 %v3381_v11, %v3373_v0  ;;  %v3334_v58 = vmul.f32 0.5, %v7450_v9  ;;  %v6746_v9 = vld [vmem:[%s7730_s3] sm:$0xff]  }
 0xb9d   :  { %v3394_v8 = vmul.f32 %v3390_v33, %v3374_v44  ;;  %v3391_v63 = vadd.f32 1.4214138, %v3387_v22 }
 0xb9e   :  { %v3392_v24 = vmul.f32 %v3388_v4, %v3372_v48  ;;  %v3389_v21 = vadd.f32 1.4214138, %v3385_v16 }
 0xb9f   :  { %v3398_v3 = vadd.f32 -0.28449672, %v3394_v8  ;;  %v3395_v27 = vmul.f32 %v3391_v63, %v3375_v42 }
 0xba0   :  { %v3396_v25 = vadd.f32 -0.28449672, %v3392_v24  ;;  %v3393_v47 = vmul.f32 %v3389_v21, %v3373_v0 }
 0xba1   :  { %v3402_v26 = vmul.f32 %v3398_v3, %v3374_v44  ;;  %v3399_v35 = vadd.f32 -0.28449672, %v3395_v27 }
 0xba2   :  { %v3400_v28 = vmul.f32 %v3396_v25, %v3372_v48  ;;  %v3397_v40 = vadd.f32 -0.28449672, %v3393_v47  ;;  %v6750_v47 = vld [vmem:[%s7730_s3 + $0x20] sm:$0xff]  }
 0xba3   :  { %v3406_v32 = vadd.f32 0.2548296, %v3402_v26  ;;  %v3403_v6 = vmul.f32 %v3399_v35, %v3375_v42  ;;  %v6749_v35 = vld [vmem:[%s7730_s3 + $0x18] sm:$0xff]  }
 0xba4   :  { %v3404_v50 = vadd.f32 0.2548296, %v3400_v28  ;;  %v3401_v51 = vmul.f32 %v3397_v40, %v3373_v0  ;;  %v6582_v28 = vld [vmem:[#allocation5 + $0x3d0] sm:$0xff]  }
 0xba5   :  { %v3410_v57 = vmul.f32 %v3406_v32, %v3374_v44  ;;  %v3407_v45 = vadd.f32 0.2548296, %v3403_v6  ;;  %v6583_v32 = vld [vmem:[#allocation5 + $0x3d8] sm:$0xff]   ;;  %v6751_v6 = vld [vmem:[%s7730_s3 + $0x28] sm:$0xff]   ;;  %v6752_v40 = vld [vmem:[%s7730_s3 + $0x30] sm:$0xff]  }
 0xba6   :  { %v3408_v19 = vmul.f32 %v3404_v50, %v3372_v48  ;;  %v3405_v55 = vadd.f32 0.2548296, %v3401_v51  ;;  %v6584_v50 = vld [vmem:[#allocation5 + $0x3e0] sm:$0xff]  }
 0xba7   :  { %v3430_v59 = vmul.f32 %v6705_v43, %v3410_v57  ;;  %v3411_v29 = vmul.f32 %v3407_v45, %v3375_v42  ;;  %v6585_v57 = vld [vmem:[#allocation5 + $0x3e8] sm:$0xff]   ;;  %v6753_v43 = vld [vmem:[%s7730_s3 + $0x38] sm:$0xff]   ;;  %v6758_v51 = vld [vmem:[%s7730_s3 + $0x60] sm:$0xff]  }
 0xba8   :  { %v3428_v52 = vmul.f32 %v6707_v20, %v3408_v19  ;;  %v3409_v38 = vmul.f32 %v3405_v55, %v3373_v0  ;;  %v3335_v0 = vmul.f32 0.5, %v7460_v46  ;;  %v6754_v19 = vld [vmem:[%s7730_s3 + $0x40] sm:$0xff]   ;;  %v6755_v20 = vld [vmem:[%s7730_s3 + $0x48] sm:$0xff]   ;;  %v6757_v45 = vld [vmem:[%s7730_s3 + $0x58] sm:$0xff]  }
 0xba9   :  { %v3434_v53 = vsub.f32 1.0, %v3430_v59  ;;  %v3431_v48 = vmul.f32 %v6709_v37, %v3411_v29  ;;  %v6756_v59 = vld [vmem:[%s7730_s3 + $0x50] sm:$0xff]   ;;  %v6587_v29 = vld [vmem:[#allocation5 + $0x3f8] sm:$0xff]   ;;  %v6588_v55 = vld [vmem:[#allocation5 + $0x380] sm:$0xff]  }
 0xbaa   :  { %v3432_v44 = vsub.f32 1.0, %v3428_v52  ;;  %v3429_v41 = vmul.f32 %v6711_v1, %v3409_v38  ;;  %v6759_v52 = vld [vmem:[%s7730_s3 + $0x68] sm:$0xff]  }
 0xbab   :  { %v3438_v56 = vmul.f32 %v3434_v53, %v3346_v54  ;;  %v3435_v62 = vsub.f32 1.0, %v3431_v48  ;;  %v6586_v53 = vld [vmem:[#allocation5 + $0x3f0] sm:$0xff]  }
 0xbac   :  { %v3436_v10 = vmul.f32 %v3432_v44, %v3344_v49  ;;  %v3433_v60 = vsub.f32 1.0, %v3429_v41 }
 0xbad   :  { %v3442_v42 = vadd.f32 1.0, %v3438_v56  ;;  %v3439_v2 = vmul.f32 %v3435_v62, %v3347_v17 }
 0xbae   :  { %v3440_v23 = vadd.f32 1.0, %v3436_v10  ;;  %v3437_v39 = vmul.f32 %v3433_v60, %v3345_v12  ;;  %v6590_v60 = vld [vmem:[#allocation5 + $0x390] sm:$0xff]  }
 0xbaf   :  { %v3443_v33 = vadd.f32 1.0, %v3439_v2  ;;  %v3446_v4 = vmul.f32 %v3442_v42, %v3334_v58  ;;  %v6589_v42 = vld [vmem:[#allocation5 + $0x388] sm:$0xff]  }
 0xbb0   :  { %v3441_v8 = vadd.f32 1.0, %v3437_v39  ;;  %v3444_v22 = vmul.f32 %v3440_v23, %v3332_v14  ;;  %v6591_v39 = vld [vmem:[#allocation5 + $0x398] sm:$0xff]  }
 0xbb1   :  { %v3447_v18 = vmul.f32 %v3443_v33, %v3335_v0 }
 0xbb2   :  { %v3445_v24 = vmul.f32 %v3441_v8, %v3333_v7 }
 0xbb3   :  { %v3449_v11 = vpack.c.bf16 %v3447_v18, %v3446_v4  ;;  %v6592_v4 = vld [vmem:[#allocation5 + $0x3a0] sm:$0xff]  }
 0xbb4   :  { %v3448_v61 = vpack.c.bf16 %v3445_v24, %v3444_v22  ;;  %v6593_v24 = vld [vmem:[#allocation5 + $0x3a8] sm:$0xff]  }
 0xbb6   :  { %6070 = vmatprep.mubr.bf16.mxu1 %v3448_v61 }
 0xbb7   :  { %6071 = vmatmul.mubr.bf16.vlgmr.msra.gmra.mrb[8].mxu1 %v3449_v11 }
 0xbb8   :  { %6078 = vmatprep.mubr.msk.bf16.mxu1 %vm674_vm0, %v6746_v9  ;;  %v6594_v9 = vld [vmem:[#allocation5 + $0x3b0] sm:$0xff]  }
 0xc8a   :  { %v6072_v46 = vpop.f32.mrb[8].mxu1 }
 0xc8b   :  { %v3549_v3 = vpop.f32.mrb[9].mxu1  ;;  %v7500_v26 = vadd.f32 %v6072_v46, %v7269_v31  ;;  %v6748_v31 = vld [vmem:[%s7730_s3 + $0x10] sm:$0xff]  }
 0xc8c   :  { %v6073_v13 = vpop.f32.mrb[10].mxu1  ;;  %v7491_v16 = vadd.f32 %v3549_v3, %v7273_v36  ;;  %v6580_v36 = vld [vmem:[#allocation5 + $0x3c0] sm:$0xff]  }
 0xc8d   :  { %v3552_v63 = vpop.f32.mrb[11].mxu1  ;;  %v7494_v15 = vadd.f32 %v6073_v13, %v7276_v5  ;;  %v6581_v5 = vld [vmem:[#allocation5 + $0x3c8] sm:$0xff]  }
 0xc8e   :  { %v7497_v25 = vadd.f32 %v3552_v63, %v7278_v30  ;;  %v6747_v30 = vld [vmem:[%s7730_s3 + $0x8] sm:$0xff]  }
 0xc8f   :  { %v3565_v21 = vpack.c.bf16 %v7494_v15, %v7500_v26 }
 0xc90   :  { %v3564_v27 = vpack.c.bf16 %v7497_v25, %v7491_v16 }
 0xc92   :  { %6074 = vmatprep.subr.bf16.mxu1 %v3564_v27 }
 0xc93   :  { %6075 = vmatpush3.bf16.msra.mxu1 %v3564_v27 }
 0xc94   :  { %6076 = vmatprep.subr.bf16.mxu1 %v3565_v21 }
 0xc97   :  { %6077 = vmatpush3.bf16.msra.mxu1 %v3565_v21  ;;  %v6595_v21 = vld [vmem:[#allocation5 + $0x3b8] sm:$0xff]  }
 0xc98   :  { %6106 = vmatprep.subr.bf16.mxu1 %v6580_v36 }
 0xc9a   :  { %6079 = vmatmul.mubr.msk.bf16.vlgmr.msra.gmra.mrb[12].mxu1 %vm674_vm0, %v6747_v30 }
 0xc9b   :  { %6082 = vmatprep.mubr.msk.bf16.mxu1 %vm674_vm0, %v6748_v31  ;;  %6107 = vmatpush3.bf16.msra.mxu1 %v6580_v36 }
 0xc9c   :  { %6108 = vmatprep.subr.bf16.mxu1 %v6581_v5 }
 0xc9f   :  { %6109 = vmatpush3.bf16.msra.mxu1 %v6581_v5  ;;  %v6596_v5 = vld [vmem:[#allocation5 + $0x400] sm:$0xff]  }
 0xca0   :  { %6110 = vmatprep.subr.bf16.mxu1 %v6582_v28 }
 0xca2   :  { %6083 = vmatmul.mubr.msk.bf16.gmra.mrb[16].mxu1 %vm674_vm0, %v6749_v35 }
 0xca3   :  { %6086 = vmatprep.mubr.msk.bf16.mxu1 %vm674_vm0, %v6750_v47  ;;  %6111 = vmatpush3.bf16.msra.mxu1 %v6582_v28  ;;  %v6597_v47 = vld [vmem:[#allocation5 + $0x408] sm:$0xff]  }
 0xca4   :  { %6112 = vmatprep.subr.bf16.mxu1 %v6583_v32 }
 0xca7   :  { %6113 = vmatpush3.bf16.msra.mxu1 %v6583_v32 }
 0xca8   :  { %6114 = vmatprep.subr.bf16.mxu1 %v6584_v50 }
 0xcaa   :  { %6087 = vmatmul.mubr.msk.bf16.gmra.mrb[20].mxu1 %vm674_vm0, %v6751_v6  ;;  %v6600_v6 = vld [vmem:[#allocation5 + $0x420] sm:$0xff]  }
 0xcab   :  { %6090 = vmatprep.mubr.msk.bf16.mxu1 %vm674_vm0, %v6752_v40  ;;  %6115 = vmatpush3.bf16.msra.mxu1 %v6584_v50  ;;  %v6598_v50 = vld [vmem:[#allocation5 + $0x410] sm:$0xff]   ;;  %v6601_v40 = vld [vmem:[#allocation5 + $0x428] sm:$0xff]  }
 0xcac   :  { %6116 = vmatprep.subr.bf16.mxu1 %v6585_v57 }
 0xcaf   :  { %6117 = vmatpush3.bf16.msra.mxu1 %v6585_v57  ;;  %v6599_v57 = vld [vmem:[#allocation5 + $0x418] sm:$0xff]  }
 0xcb0   :  { %6118 = vmatprep.subr.bf16.mxu1 %v6586_v53 }
 0xcb2   :  { %6091 = vmatmul.mubr.msk.bf16.gmra.mrb[24].mxu1 %vm674_vm0, %v6753_v43  ;;  %v6602_v43 = vld [vmem:[#allocation5 + $0x430] sm:$0xff]  }
 0xcb3   :  { %6094 = vmatprep.mubr.msk.bf16.mxu1 %vm674_vm0, %v6754_v19  ;;  %6119 = vmatpush3.bf16.msra.mxu1 %v6586_v53  ;;  %v6603_v19 = vld [vmem:[#allocation5 + $0x438] sm:$0xff]   ;;  %v6604_v53 = vld [vmem:[#allocation5 + $0x440] sm:$0xff]  }
 0xcb4   :  { %6120 = vmatprep.subr.bf16.mxu1 %v6587_v29 }
 0xcb7   :  { %6121 = vmatpush3.bf16.msra.mxu1 %v6587_v29 }
 0xcb8   :  { %6126 = vmatprep.subr.bf16.mxu1 %v6588_v55 }
 0xcba   :  { %6095 = vmatmul.mubr.msk.bf16.gmra.mrb[28].mxu1 %vm674_vm0, %v6755_v20 }
 0xcbb   :  { %6098 = vmatprep.mubr.msk.bf16.mxu1 %vm674_vm0, %v6756_v59 }
 0xcc2   :  { %6099 = vmatmul.mubr.msk.bf16.gmra.mrb[32].mxu1 %vm674_vm0, %v6757_v45 }
 0xcc3   :  { %6102 = vmatprep.mubr.msk.bf16.mxu1 %vm674_vm0, %v6758_v51 }
 0xcca   :  { %6103 = vmatmul.mubr.msk.bf16.gmra.mrb[36].mxu1 %vm674_vm0, %v6759_v52 }
 0xd6d   :  { %v7558_v37 = vpop.f32.mrb[12].mxu1 }
 0xd6e   :  { %v3600_v54 = vpop.f32.mrb[13].mxu1 }
 0xd6f   :  { %v6081_v44 = vpop.f32.mrb[14].mxu1 }
 0xd70   :  { %v3712_v56 = vpack.c.bf16 %v6081_v44, %v7558_v37  ;;  %v3603_v48 = vpop.f32.mrb[15].mxu1  ;;  %v6606_v37 = vld [vmem:[#allocation5 + $0x450] sm:$0xff]   ;;  %v6608_v44 = vld [vmem:[#allocation5 + $0x460] sm:$0xff]  }
 0xd71   :  { %v3711_v38 = vpack.c.bf16 %v3603_v48, %v3600_v54  ;;  %v6607_v54 = vld [vmem:[#allocation5 + $0x458] sm:$0xff]   ;;  %v6610_v48 = vld [vmem:[#allocation5 + $0x470] sm:$0xff]  }
 0xd75   :  { %v6084_v1 = vpop.f32.mrb[16].mxu1 }
 0xd76   :  { %v3616_v49 = vpop.f32.mrb[17].mxu1 }
 0xd77   :  { %v6085_v10 = vpop.f32.mrb[18].mxu1 }
 0xd78   :  { %v3714_v62 = vpack.c.bf16 %v6085_v10, %v6084_v1  ;;  %v3619_v41 = vpop.f32.mrb[19].mxu1  ;;  %v6612_v1 = vld [vmem:[#allocation5 + $0x480] sm:$0xff]   ;;  %v6614_v10 = vld [vmem:[#allocation5 + $0x490] sm:$0xff]  }
 0xd79   :  { %v3713_v17 = vpack.c.bf16 %v3619_v41, %v3616_v49  ;;  %v6613_v49 = vld [vmem:[#allocation5 + $0x488] sm:$0xff]   ;;  %v6616_v41 = vld [vmem:[#allocation5 + $0x4a0] sm:$0xff]  }
 0xd7b   :  { %6122 = vmatprep.mubr.bf16.mxu1 %v3713_v17  ;;  %v6617_v17 = vld [vmem:[#allocation5 + $0x4a8] sm:$0xff]  }
 0xd7c   :  { %6123 = vmatmul.mubr.bf16.vlgmr.msra.gmra.mrb[40].mxu1 %v3714_v62  ;;  %v6615_v62 = vld [vmem:[#allocation5 + $0x498] sm:$0xff]  }
 0xd7d   :  { %6127 = vmatpush3.bf16.msra.mxu1 %v6588_v55  ;;  %6142 = vmatprep.mubr.bf16.mxu1 %v3711_v38  ;;  %v7561_v2 = vpop.f32.mrb[20].mxu1  ;;  %v6605_v55 = vld [vmem:[#allocation5 + $0x448] sm:$0xff]   ;;  %v6611_v38 = vld [vmem:[#allocation5 + $0x478] sm:$0xff]  }
 0xd7e   :  { %6128 = vmatprep.subr.bf16.mxu1 %v6589_v42  ;;  %v3632_v58 = vpop.f32.mrb[21].mxu1 }
 0xd7f   :  { %v7563_v12 = vpop.f32.mrb[22].mxu1 }
 0xd80   :  { %v3716_v23 = vpack.c.bf16 %v7563_v12, %v7561_v2  ;;  %v3635_v0 = vpop.f32.mrb[23].mxu1  ;;  %v6619_v2 = vld [vmem:[#allocation5 + $0x4b8] sm:$0xff]   ;;  %v6622_v12 = vld [vmem:[#allocation5 + $0x4d0] sm:$0xff]  }
 0xd81   :  { %6129 = vmatpush3.bf16.msra.mxu1 %v6589_v42  ;;  %v3715_v33 = vpack.c.bf16 %v3635_v0, %v3632_v58  ;;  %v6618_v42 = vld [vmem:[#allocation5 + $0x4b0] sm:$0xff]   ;;  %v6621_v58 = vld [vmem:[#allocation5 + $0x4c8] sm:$0xff]   ;;  %v6624_v0 = vld [vmem:[#allocation5 + $0x4e0] sm:$0xff]  }
 0xd82   :  { %6130 = vmatprep.subr.bf16.mxu1 %v6590_v60 }
 0xd85   :  { %6131 = vmatpush3.bf16.msra.mxu1 %v6590_v60  ;;  %v7567_v14 = vpop.f32.mrb[24].mxu1  ;;  %v6620_v60 = vld [vmem:[#allocation5 + $0x4c0] sm:$0xff]  }
 0xd86   :  { %6132 = vmatprep.subr.bf16.mxu1 %v6591_v39  ;;  %v7569_v18 = vpop.f32.mrb[25].mxu1 }
 0xd87   :  { %v7571_v7 = vpop.f32.mrb[26].mxu1 }
 0xd88   :  { %v3718_v8 = vpack.c.bf16 %v7571_v7, %v7567_v14  ;;  %v7575_v22 = vpop.f32.mrb[27].mxu1  ;;  %v6627_v14 = vld [vmem:[#allocation5 + $0x4f8] sm:$0xff]   ;;  %v6630_v7 = vld [vmem:[#allocation5 + $0x510] sm:$0xff]  }
 0xd89   :  { %6133 = vmatpush3.bf16.msra.mxu1 %v6591_v39  ;;  %v3717_v11 = vpack.c.bf16 %v7575_v22, %v7569_v18  ;;  %v6626_v39 = vld [vmem:[#allocation5 + $0x4f0] sm:$0xff]   ;;  %v6629_v18 = vld [vmem:[#allocation5 + $0x508] sm:$0xff]   ;;  %v6632_v22 = vld [vmem:[#allocation5 + $0x520] sm:$0xff]  }
 0xd8a   :  { %6134 = vmatprep.subr.bf16.mxu1 %v6592_v4 }
 0xd8d   :  { %6135 = vmatpush3.bf16.msra.mxu1 %v6592_v4  ;;  %v7579_v61 = vpop.f32.mrb[28].mxu1  ;;  %v6628_v4 = vld [vmem:[#allocation5 + $0x500] sm:$0xff]  }
 0xd8e   :  { %6136 = vmatprep.subr.bf16.mxu1 %v6593_v24  ;;  %v7581_v46 = vpop.f32.mrb[29].mxu1 }
 0xd8f   :  { %v7583_v3 = vpop.f32.mrb[30].mxu1 }
 0xd90   :  { %v3720_v13 = vpack.c.bf16 %v7583_v3, %v7579_v61  ;;  %v7587_v63 = vpop.f32.mrb[31].mxu1  ;;  %v6635_v61 = vld [vmem:[#allocation5 + $0x538] sm:$0xff]  }
 0xd91   :  { %6137 = vmatpush3.bf16.msra.mxu1 %v6593_v24  ;;  %v3719_v27 = vpack.c.bf16 %v7587_v63, %v7581_v46  ;;  %v6634_v24 = vld [vmem:[#allocation5 + $0x530] sm:$0xff]  }
 0xd92   :  { %6138 = vmatprep.subr.bf16.mxu1 %v6594_v9 }
 0xd95   :  { %6139 = vmatpush3.bf16.msra.mxu1 %v6594_v9  ;;  %v7591_v36 = vpop.f32.mrb[32].mxu1  ;;  %v5313_v9 = vld [vmem:[%s7729_s2 + $0xa] ss:$0 sm:$0xff] }
 0xd96   :  { %6140 = vmatprep.subr.bf16.mxu1 %v6595_v21  ;;  %v7593_v30 = vpop.f32.mrb[33].mxu1 }
 0xd97   :  { %v7595_v31 = vpop.f32.mrb[34].mxu1 }
 0xd98   :  { %v3722_v28 = vpack.c.bf16 %v7595_v31, %v7591_v36  ;;  %v7599_v32 = vpop.f32.mrb[35].mxu1 }
 0xd99   :  { %6141 = vmatpush3.bf16.msra.mxu1 %v6595_v21  ;;  %v3721_v35 = vpack.c.bf16 %v7599_v32, %v7593_v30 }
 0xd9a   :  { %6146 = vmatprep.subr.bf16.mxu1 %v6596_v5 }
 0xd9c   :  { %6143 = vmatmul.mubr.bf16.vlgmr.msra.gmra.mrb[40].mxu1 %v3712_v56  ;;  %v6609_v56 = vld [vmem:[#allocation5 + $0x468] sm:$0xff]  }
 0xd9d   :  { %6147 = vmatpush3.bf16.msra.mxu1 %v6596_v5  ;;  %6162 = vmatprep.mubr.bf16.mxu1 %v3715_v33  ;;  %v7603_v20 = vpop.f32.mrb[36].mxu1  ;;  %v6625_v33 = vld [vmem:[#allocation5 + $0x4e8] sm:$0xff]  }
 0xd9e   :  { %6148 = vmatprep.subr.bf16.mxu1 %v6597_v47  ;;  %v7605_v59 = vpop.f32.mrb[37].mxu1 }
 0xd9f   :  { %v7607_v45 = vpop.f32.mrb[38].mxu1 }
 0xda0   :  { %v3724_v51 = vpack.c.bf16 %v7607_v45, %v7603_v20  ;;  %v7611_v52 = vpop.f32.mrb[39].mxu1 }
 0xda1   :  { %6149 = vmatpush3.bf16.msra.mxu1 %v6597_v47  ;;  %v3723_v29 = vpack.c.bf16 %v7611_v52, %v7605_v59  ;;  %v6637_v47 = vld [vmem:[#allocation7 + $0x88] sm:$0xff]  }
 0xda2   :  { %6150 = vmatprep.subr.bf16.mxu1 %v6598_v50 }
 0xda5   :  { %6151 = vmatpush3.bf16.msra.mxu1 %v6598_v50  ;;  %v6638_v50 = vld [vmem:[#allocation7 + $0x90] sm:$0xff]  }
 0xda6   :  { %6152 = vmatprep.subr.bf16.mxu1 %v6599_v57 }
 0xda9   :  { %6153 = vmatpush3.bf16.msra.mxu1 %v6599_v57  ;;  %v6639_v57 = vld [vmem:[#allocation7 + $0x98] sm:$0xff]  }
 0xdaa   :  { %6154 = vmatprep.subr.bf16.mxu1 %v6600_v6 }
 0xdad   :  { %6155 = vmatpush3.bf16.msra.mxu1 %v6600_v6  ;;  %v6640_v6 = vld [vmem:[#allocation7 + $0xa0] sm:$0xff]  }
 0xdae   :  { %6156 = vmatprep.subr.bf16.mxu1 %v6601_v40 }
 0xdb1   :  { %6157 = vmatpush3.bf16.msra.mxu1 %v6601_v40  ;;  %v6641_v40 = vld [vmem:[#allocation7 + $0xa8] sm:$0xff]  }
 0xdb2   :  { %6158 = vmatprep.subr.bf16.mxu1 %v6602_v43 }
 0xdb5   :  { %6159 = vmatpush3.bf16.msra.mxu1 %v6602_v43  ;;  %v6642_v43 = vld [vmem:[#allocation7 + $0xb0] sm:$0xff]  }
 0xdb6   :  { %6160 = vmatprep.subr.bf16.mxu1 %v6603_v19 }
 0xdb9   :  { %6161 = vmatpush3.bf16.msra.mxu1 %v6603_v19  ;;  %v6643_v19 = vld [vmem:[#allocation7 + $0xb8] sm:$0xff]  }
 0xdba   :  { %6166 = vmatprep.subr.bf16.mxu1 %v6604_v53 }
 0xdbc   :  { %6163 = vmatmul.mubr.bf16.vlgmr.msra.gmra.mrb[40].mxu1 %v3716_v23  ;;  %v6623_v23 = vld [vmem:[#allocation5 + $0x4d8] sm:$0xff]  }
 0xdbd   :  { %6167 = vmatpush3.bf16.msra.mxu1 %v6604_v53  ;;  %6182 = vmatprep.mubr.bf16.mxu1 %v3717_v11  ;;  %v6633_v11 = vld [vmem:[#allocation5 + $0x528] sm:$0xff]  }
 0xdbe   :  { %6168 = vmatprep.subr.bf16.mxu1 %v6605_v55 }
 0xdc1   :  { %6169 = vmatpush3.bf16.msra.mxu1 %v6605_v55 }
 0xdc2   :  { %6170 = vmatprep.subr.bf16.mxu1 %v6606_v37 }
 0xdc5   :  { %6171 = vmatpush3.bf16.msra.mxu1 %v6606_v37 }
 0xdc6   :  { %6172 = vmatprep.subr.bf16.mxu1 %v6607_v54 }
 0xdc9   :  { %6173 = vmatpush3.bf16.msra.mxu1 %v6607_v54 }
 0xdca   :  { %6174 = vmatprep.subr.bf16.mxu1 %v6608_v44 }
 0xdcd   :  { %6175 = vmatpush3.bf16.msra.mxu1 %v6608_v44 }
 0xdce   :  { %6176 = vmatprep.subr.bf16.mxu1 %v6609_v56 }
 0xdd1   :  { %6177 = vmatpush3.bf16.msra.mxu1 %v6609_v56 }
 0xdd2   :  { %6178 = vmatprep.subr.bf16.mxu1 %v6610_v48 }
 0xdd5   :  { %6179 = vmatpush3.bf16.msra.mxu1 %v6610_v48 }
 0xdd6   :  { %6180 = vmatprep.subr.bf16.mxu1 %v6611_v38 }
 0xdd9   :  { %6181 = vmatpush3.bf16.msra.mxu1 %v6611_v38 }
 0xdda   :  { %6186 = vmatprep.subr.bf16.mxu1 %v6612_v1 }
 0xddc   :  { %6183 = vmatmul.mubr.bf16.vlgmr.msra.gmra.mrb[40].mxu1 %v3718_v8  ;;  %v6631_v8 = vld [vmem:[#allocation5 + $0x518] sm:$0xff]  }
 0xddd   :  { %6187 = vmatpush3.bf16.msra.mxu1 %v6612_v1  ;;  %6202 = vmatprep.mubr.bf16.mxu1 %v3719_v27 }
 0xdde   :  { %6188 = vmatprep.subr.bf16.mxu1 %v6613_v49 }
 0xde1   :  { %6189 = vmatpush3.bf16.msra.mxu1 %v6613_v49 }
 0xde2   :  { %6190 = vmatprep.subr.bf16.mxu1 %v6614_v10 }
 0xde5   :  { %6191 = vmatpush3.bf16.msra.mxu1 %v6614_v10 }
 0xde6   :  { %6192 = vmatprep.subr.bf16.mxu1 %v6615_v62 }
 0xde9   :  { %6193 = vmatpush3.bf16.msra.mxu1 %v6615_v62 }
 0xdea   :  { %6194 = vmatprep.subr.bf16.mxu1 %v6616_v41 }
 0xded   :  { %6195 = vmatpush3.bf16.msra.mxu1 %v6616_v41 }
 0xdee   :  { %6196 = vmatprep.subr.bf16.mxu1 %v6617_v17 }
 0xdf1   :  { %6197 = vmatpush3.bf16.msra.mxu1 %v6617_v17 }
 0xdf2   :  { %6198 = vmatprep.subr.bf16.mxu1 %v6618_v42 }
 0xdf5   :  { %6199 = vmatpush3.bf16.msra.mxu1 %v6618_v42 }
 0xdf6   :  { %6200 = vmatprep.subr.bf16.mxu1 %v6619_v2 }
 0xdf9   :  { %6201 = vmatpush3.bf16.msra.mxu1 %v6619_v2 }
 0xdfa   :  { %6206 = vmatprep.subr.bf16.mxu1 %v6620_v60 }
 0xdfc   :  { %6203 = vmatmul.mubr.bf16.vlgmr.msra.gmra.mrb[40].mxu1 %v3720_v13 }
 0xdfd   :  { %6207 = vmatpush3.bf16.msra.mxu1 %v6620_v60  ;;  %6222 = vmatprep.mubr.bf16.mxu1 %v3721_v35  ;;  %v6636_v35 = vld [vmem:[#allocation7 + $0x80] sm:$0xff]  }
 0xdfe   :  { %6208 = vmatprep.subr.bf16.mxu1 %v6621_v58  ;;  %6246 = vmatprep.subr.bf16.mxu0 %v6636_v35 }
 0xdff   :  { %6247 = vmatpush3.bf16.msra.mxu0 %v6636_v35 }
 0xe00   :  { %6248 = vmatprep.subr.bf16.mxu0 %v6637_v47 }
 0xe01   :  { %6209 = vmatpush3.bf16.msra.mxu1 %v6621_v58 }
 0xe02   :  { %6210 = vmatprep.subr.bf16.mxu1 %v6622_v12 }
 0xe03   :  { %6249 = vmatpush3.bf16.msra.mxu0 %v6637_v47 }
 0xe04   :  { %6250 = vmatprep.subr.bf16.mxu0 %v6638_v50 }
 0xe05   :  { %6211 = vmatpush3.bf16.msra.mxu1 %v6622_v12 }
 0xe06   :  { %6212 = vmatprep.subr.bf16.mxu1 %v6623_v23 }
 0xe07   :  { %6251 = vmatpush3.bf16.msra.mxu0 %v6638_v50 }
 0xe08   :  { %6252 = vmatprep.subr.bf16.mxu0 %v6639_v57 }
 0xe09   :  { %6213 = vmatpush3.bf16.msra.mxu1 %v6623_v23 }
 0xe0a   :  { %6214 = vmatprep.subr.bf16.mxu1 %v6624_v0 }
 0xe0b   :  { %6253 = vmatpush3.bf16.msra.mxu0 %v6639_v57 }
 0xe0c   :  { %6254 = vmatprep.subr.bf16.mxu0 %v6640_v6 }
 0xe0d   :  { %6215 = vmatpush3.bf16.msra.mxu1 %v6624_v0 }
 0xe0e   :  { %6216 = vmatprep.subr.bf16.mxu1 %v6625_v33 }
 0xe0f   :  { %6255 = vmatpush3.bf16.msra.mxu0 %v6640_v6  ;;  %v5314_v6 = vld [vmem:[%s7729_s2 + $0xb] ss:$0 sm:$0xff] }
 0xe10   :  { %6256 = vmatprep.subr.bf16.mxu0 %v6641_v40 }
 0xe11   :  { %6217 = vmatpush3.bf16.msra.mxu1 %v6625_v33 }
 0xe12   :  { %6218 = vmatprep.subr.bf16.mxu1 %v6626_v39 }
 0xe13   :  { %6257 = vmatpush3.bf16.msra.mxu0 %v6641_v40 }
 0xe14   :  { %6258 = vmatprep.subr.bf16.mxu0 %v6642_v43 }
 0xe15   :  { %6219 = vmatpush3.bf16.msra.mxu1 %v6626_v39 }
 0xe16   :  { %6220 = vmatprep.subr.bf16.mxu1 %v6627_v14 }
 0xe17   :  { %6259 = vmatpush3.bf16.msra.mxu0 %v6642_v43 }
 0xe18   :  { %6260 = vmatprep.subr.bf16.mxu0 %v6643_v19 }
 0xe19   :  { %6221 = vmatpush3.bf16.msra.mxu1 %v6627_v14 }
 0xe1a   :  { %6226 = vmatprep.subr.bf16.mxu1 %v6628_v4 }
 0xe1b   :  { %6261 = vmatpush3.bf16.msra.mxu0 %v6643_v19  ;;  %v5315_v19 = vld [vmem:[%s7729_s2 + $0xc] ss:$0 sm:$0xff]  ;;  %s6887_s2 = smov [#allocation10]  }
 0xe1c   :  { %6223 = vmatmul.mubr.bf16.vlgmr.msra.gmra.mrb[40].mxu1 %v3722_v28  ;;  %s4997_s1 = sshll.u32 %s6887_s2, 4  ;;  %s4998_s1 = int_to_ptr.vmem [resolvable:$true] %s4997_s1 }
 0xe1d   :  { %6227 = vmatpush3.bf16.msra.mxu1 %v6628_v4  ;;  %6242 = vmatprep.mubr.bf16.mxu1 %v3723_v29  ;;  %s6848_s16 = scalar_lea.vmem %s4998_s1, 512  ;;  %p6853_p5 = scmp.lt.s32.totalorder %s4998_s1, %s4998_s1 }
 0xe1e   :  { %6228 = vmatprep.subr.bf16.mxu1 %v6629_v18  ;;  %p6849_p4 = scmp.ne.s32.totalorder %s4998_s1, %s6848_s16  ;;  %p6854_p6 = scmp.lt.s32.totalorder %s6848_s16, %s6848_s16 }
 0xe20   :  { %p6855_p7 = por %p6854_p6, %p6853_p5 }
 0xe21   :  { %6229 = vmatpush3.bf16.msra.mxu1 %v6629_v18 }
 0xe22   :  { %6230 = vmatprep.subr.bf16.mxu1 %v6630_v7  ;;  %p6856_p8 = pnand %p6855_p7, %p6849_p4 }
 0xe25   :  { %6231 = vmatpush3.bf16.msra.mxu1 %v6630_v7 }
 0xe26   :  { %6232 = vmatprep.subr.bf16.mxu1 %v6631_v8 }
 0xe29   :  { %6233 = vmatpush3.bf16.msra.mxu1 %v6631_v8 }
 0xe2a   :  { %6234 = vmatprep.subr.bf16.mxu1 %v6632_v22 }
 0xe2d   :  { %6235 = vmatpush3.bf16.msra.mxu1 %v6632_v22 }
 0xe2e   :  { %6236 = vmatprep.subr.bf16.mxu1 %v6633_v11 }
 0xe31   :  { %6237 = vmatpush3.bf16.msra.mxu1 %v6633_v11 }
 0xe32   :  { %6238 = vmatprep.subr.bf16.mxu1 %v6634_v24 }
 0xe35   :  { %6239 = vmatpush3.bf16.msra.mxu1 %v6634_v24 }
 0xe36   :  { %6240 = vmatprep.subr.bf16.mxu1 %v6635_v61 }
 0xe39   :  { %6241 = vmatpush3.bf16.msra.mxu1 %v6635_v61 }
 0xe3c   :  { %6243 = vmatmul.mubr.bf16.vlgmr.msra.gmra.mrb[40].mxu1 %v3724_v51 }
 0xf0f   :  { %v6244_v46 = vpop.f32.mrb[40].mxu1 }
 0xf10   :  { %v7642_v3 = vadd.f32 %v6244_v46, %v5313_v9  ;;  %v4524_v13 = vpop.f32.mrb[41].mxu1 }
 0xf11   :  { %v6245_v63 = vpop.f32.mrb[42].mxu1  ;;  %v7647_v36 = vadd.f32 %v5313_v9, %v4524_v13 }
 0xf12   :  { %v7644_v27 = vadd.f32 %v6245_v63, %v5313_v9  ;;  %4558 = vadd.xlane.f32.xlu0 %v7642_v3  ;;  %v4527_v21 = vpop.f32.mrb[43].mxu1  ;;  %v4578_v28 = vmul.f32 %v7642_v3, %v7642_v3 }
 0xf13   :  { %v7650_v5 = vadd.f32 %v5313_v9, %v4527_v21  ;;  %v4576_v30 = vmul.f32 %v7647_v36, %v7647_v36 }
 0xf14   :  { %4560 = vadd.xlane.f32.xlu1 %v7644_v27  ;;  %v4579_v32 = vmul.f32 %v7644_v27, %v7644_v27 }
 0xf15   :  { %v4577_v31 = vmul.f32 %v7650_v5, %v7650_v5 }
 0xf16   :  { %4554 = vadd.xlane.f32.xlu0 %v7647_v36 }
 0xf18   :  { %4556 = vadd.xlane.f32.xlu1 %v7650_v5 }
 0xf1a   :  { %4580 = vadd.xlane.f32.xlu0 %v4576_v30 }
 0xf1c   :  { %4582 = vadd.xlane.f32.xlu1 %v4577_v31 }
 0xf1e   :  { %4584 = vadd.xlane.f32.xlu0 %v4578_v28 }
 0xf20   :  { %4586 = vadd.xlane.f32.xlu1 %v4579_v32 }
 0xf9f   :  { %v4559_v20 = vpop.xlane.xlu0 %4558 }
 0xfa1   :  { %v4561_v59 = vpop.xlane.xlu1 %4560 }
 0xfa2   :  { %v4569_v45 = vadd.f32 %v4561_v59, %v4559_v20 }
 0xfa3   :  { %v4555_v51 = vpop.xlane.xlu0 %4554 }
 0xfa4   :  { %v4570_v52 = vrot.slane %v4569_v45, 4 }
 0xfa5   :  { %v4557_v53 = vpop.xlane.xlu1 %4556 }
 0xfa6   :  { %v4571_v29 = vadd.f32 %v4570_v52, %v4569_v45  ;;  %v4562_v55 = vadd.f32 %v4557_v53, %v4555_v51 }
 0xfa7   :  { %v4581_v37 = vpop.xlane.xlu0 %4580 }
 0xfa8   :  { %v4563_v54 = vrot.slane %v4562_v55, 4  ;;  %v4572_v44 = vrot.slane %v4571_v29, 2 }
 0xfa9   :  { %v4583_v56 = vpop.xlane.xlu1 %4582 }
 0xfaa   :  { %v4564_v48 = vadd.f32 %v4563_v54, %v4562_v55  ;;  %v4588_v38 = vadd.f32 %v4583_v56, %v4581_v37  ;;  %v4573_v10 = vadd.f32 %v4572_v44, %v4571_v29 }
 0xfab   :  { %v4585_v62 = vpop.xlane.xlu0 %4584 }
 0xfac   :  { %v4565_v1 = vrot.slane %v4564_v48, 2  ;;  %v4589_v49 = vrot.slane %v4588_v38, 4  ;;  %v4574_v23 = vrot.slane %v4573_v10, 1 }
 0xfad   :  { %v4587_v41 = vpop.xlane.xlu1 %4586 }
 0xfae   :  { %v4566_v17 = vadd.f32 %v4565_v1, %v4564_v48  ;;  %v4590_v42 = vadd.f32 %v4589_v49, %v4588_v38  ;;  %v4595_v2 = vadd.f32 %v4587_v41, %v4585_v62  ;;  %v4575_v18 = vadd.f32 %v4574_v23, %v4573_v10  ;;  %v6644_v38 = vld [vmem:[#allocation8 + $0x80] sm:$0xff]   ;;  %v6645_v1 = vld [vmem:[#allocation8 + $0x88] sm:$0xff]   ;;  %v6650_v62 = vld [vmem:[#allocation8 + $0xb0] sm:$0xff]  }
 0xfaf   :  { %6266 = vmatprep.subr.bf16.mxu0 %v6644_v38  ;;  %v6648_v49 = vld [vmem:[#allocation8 + $0xa0] sm:$0xff]   ;;  %v6649_v10 = vld [vmem:[#allocation8 + $0xa8] sm:$0xff]   ;;  %v6651_v41 = vld [vmem:[#allocation8 + $0xb8] sm:$0xff]  }
 0xfb0   :  { %v4567_v60 = vrot.slane %v4566_v17, 1  ;;  %v4591_v58 = vrot.slane %v4590_v42, 2  ;;  %v4596_v12 = vrot.slane %v4595_v2, 4  ;;  %v4603_v61 = vmul.f32 0.00048828125, %v4575_v18 }
 0xfb2   :  { %v4568_v0 = vadd.f32 %v4567_v60, %v4566_v17  ;;  %v4592_v33 = vadd.f32 %v4591_v58, %v4590_v42  ;;  %v4597_v39 = vadd.f32 %v4596_v12, %v4595_v2  ;;  %v4607_v21 = vmul.f32 %v4603_v61, %v4603_v61 }
 0xfb3   :  { %v4618_v45 = vsub.f32 %v7642_v3, %v4603_v61  ;;  %v4619_v51 = vsub.f32 %v7644_v27, %v4603_v61  ;;  %v6646_v3 = vld [vmem:[#allocation8 + $0x90] sm:$0xff]   ;;  %v6647_v27 = vld [vmem:[#allocation8 + $0x98] sm:$0xff]  }
 0xfb4   :  { %v4602_v14 = vmul.f32 0.00048828125, %v4568_v0  ;;  %v4593_v4 = vrot.slane %v4592_v33, 1  ;;  %v4598_v7 = vrot.slane %v4597_v39, 2 }
 0xfb6   :  { %v4594_v8 = vadd.f32 %v4593_v4, %v4592_v33  ;;  %v4599_v22 = vadd.f32 %v4598_v7, %v4597_v39  ;;  %v4606_v11 = vmul.f32 %v4602_v14, %v4602_v14  ;;  %v4616_v47 = vsub.f32 %v7647_v36, %v4602_v14 }
 0xfb7   :  { %v4617_v50 = vsub.f32 %v7650_v5, %v4602_v14 }
 0xfb8   :  { %v4604_v24 = vmul.f32 0.00048828125, %v4594_v8  ;;  %v4600_v9 = vrot.slane %v4599_v22, 1 }
 0xfba   :  { %v4608_v46 = vsub.f32 %v4604_v24, %v4606_v11  ;;  %v4601_v13 = vadd.f32 %v4600_v9, %v4599_v22 }
 0xfbc   :  { %v4610_v63 = vmax.f32 %v4608_v46, 0.0  ;;  %v4605_v30 = vmul.f32 0.00048828125, %v4601_v13 }
 0xfbe   :  { %v4612_v31 = vadd.f32 1e-05, %v4610_v63  ;;  %v4609_v28 = vsub.f32 %v4605_v30, %v4607_v21 }
 0xfc0   :  { %6712 = vrsqrt.f32 %v4612_v31  ;;  %v4611_v32 = vmax.f32 %v4609_v28, 0.0 }
 0xfc2   :  { %v4613_v35 = vadd.f32 1e-05, %v4611_v32 }
 0xfc4   :  { %6714 = vrsqrt.f32 %v4613_v35 }
 0xfca   :  { %v6713_v57 = vpop.eup %6712 }
 0xfcb   :  { %v4620_v40 = vmul.f32 %v6713_v57, %v4616_v47  ;;  %v4621_v43 = vmul.f32 %v6713_v57, %v4617_v50 }
 0xfcd   :  { %v4628_v20 = vmul.f32 %v5314_v6, %v4620_v40  ;;  %v4629_v59 = vmul.f32 %v5314_v6, %v4621_v43 }
 0xfce   :  { %v6715_v36 = vpop.eup %6714 }
 0xfcf   :  { %v4636_v52 = vadd.f32 %v5315_v19, %v4628_v20  ;;  %v4637_v5 = vadd.f32 %v5315_v19, %v4629_v59  ;;  %v4622_v53 = vmul.f32 %v6715_v36, %v4618_v45  ;;  %v4623_v29 = vmul.f32 %v6715_v36, %v4619_v51 }
 0xfd1   :  { %v4640_v55 = vpack.c.bf16 %v4637_v5, %v4636_v52  ;;  %v4630_v37 = vmul.f32 %v5314_v6, %v4622_v53  ;;  %v4631_v54 = vmul.f32 %v5314_v6, %v4623_v29 }
 0xfd3   :  { %6262 = vmatprep.mubr.bf16.mxu0 %v4640_v55  ;;  %v4638_v44 = vadd.f32 %v5315_v19, %v4630_v37  ;;  %v4639_v56 = vadd.f32 %v5315_v19, %v4631_v54 }
 0xfd5   :  { %v4641_v48 = vpack.c.bf16 %v4639_v56, %v4638_v44 }
 0xfd7   :  { %6263 = vmatmul.mubr.bf16.vlgmr.msra.gmra.mrb[80].mxu0 %v4641_v48 }
 0xfd8   :  { %6267 = vmatpush3.bf16.msra.mxu0 %v6644_v38 }
 0xfd9   :  { %6268 = vmatprep.subr.bf16.mxu0 %v6645_v1 }
 0xfdc   :  { %6269 = vmatpush3.bf16.msra.mxu0 %v6645_v1 }
 0xfdd   :  { %6270 = vmatprep.subr.bf16.mxu0 %v6646_v3 }
 0xfe0   :  { %6271 = vmatpush3.bf16.msra.mxu0 %v6646_v3 }
 0xfe1   :  { %6272 = vmatprep.subr.bf16.mxu0 %v6647_v27 }
 0xfe4   :  { %6273 = vmatpush3.bf16.msra.mxu0 %v6647_v27 }
 0xfe5   :  { %6274 = vmatprep.subr.bf16.mxu0 %v6648_v49 }
 0xfe8   :  { %6275 = vmatpush3.bf16.msra.mxu0 %v6648_v49 }
 0xfe9   :  { %6276 = vmatprep.subr.bf16.mxu0 %v6649_v10 }
 0xfec   :  { %6277 = vmatpush3.bf16.msra.mxu0 %v6649_v10 }
 0xfed   :  { %6278 = vmatprep.subr.bf16.mxu0 %v6650_v62 }
 0xff0   :  { %6279 = vmatpush3.bf16.msra.mxu0 %v6650_v62 }
 0xff1   :  { %6280 = vmatprep.subr.bf16.mxu0 %v6651_v41 }
 0xff4   :  { %6281 = vmatpush3.bf16.msra.mxu0 %v6651_v41 }
0x10aa   :  { %v7672_v17 = vpop.f32.mrb[80].mxu0 }
0x10ab   :  { %v7675_v42 = vmul.f32 0.70710677, %v7672_v17  ;;  %v7677_v2 = vpop.f32.mrb[81].mxu0 }
0x10ac   :  { %v7680_v60 = vmul.f32 0.70710677, %v7677_v2  ;;  %v7682_v58 = vpop.f32.mrb[82].mxu0 }
0x10ad   :  { %v4774_v12 = vand.u32 2147483647, %v7675_v42  ;;  %v7686_v23 = vmul.f32 0.70710677, %v7682_v58  ;;  %v7689_v33 = vpop.f32.mrb[83].mxu0  ;;  %vm4766_vm13 = vcmp.ge.f32.partialorder %v7675_v42, 0.0 }
0x10ae   :  { %v4772_v0 = vand.u32 2147483647, %v7680_v60  ;;  %v7693_v7 = vmul.f32 0.70710677, %v7689_v33  ;;  %vm4764_vm14 = vcmp.ge.f32.partialorder %v7680_v60, 0.0 }
0x10af   :  { %v4778_v39 = vmul.f32 0.3275911, %v4774_v12  ;;  %v4775_v4 = vand.u32 2147483647, %v7686_v23  ;;  %v4838_v21 = vsub.f32 0.0, %v4774_v12  ;;  %vm4767_vm15 = vcmp.ge.f32.partialorder %v7686_v23, 0.0 }
0x10b0   :  { %v4776_v14 = vmul.f32 0.3275911, %v4772_v0  ;;  %v4773_v11 = vand.u32 2147483647, %v7693_v7  ;;  %v4836_v28 = vsub.f32 0.0, %v4772_v0  ;;  %v4768_v42 = vsel %vm4764_vm14, 1.0, %v6886_v34 }
0x10b1   :  { %v4782_v18 = vadd.f32 1.0, %v4778_v39  ;;  %v4779_v22 = vmul.f32 0.3275911, %v4775_v4  ;;  %v4842_v6 = vmul.f32 %v4838_v21, %v4774_v12  ;;  %v4839_v43 = vsub.f32 0.0, %v4775_v4 }
0x10b2   :  { %v4780_v8 = vadd.f32 1.0, %v4776_v14  ;;  %v4777_v61 = vmul.f32 0.3275911, %v4773_v11  ;;  %v4840_v20 = vmul.f32 %v4836_v28, %v4772_v0  ;;  %v4837_v36 = vsub.f32 0.0, %v4773_v11 }
0x10b3   :  { %6716 = vrcp.f32 %v4782_v18  ;;  %v4783_v24 = vadd.f32 1.0, %v4779_v22  ;;  %v4848_v29 = vmul.f32 1.442695, %v4842_v6  ;;  %v4843_v37 = vmul.f32 %v4839_v43, %v4775_v4 }
0x10b4   :  { %6718 = vrcp.f32 %v4780_v8  ;;  %v4781_v9 = vadd.f32 1.0, %v4777_v61  ;;  %v4844_v44 = vmul.f32 1.442695, %v4840_v20  ;;  %v4841_v1 = vmul.f32 %v4837_v36, %v4773_v11 }
0x10b5   :  { %6720 = vrcp.f32 %v4783_v24  ;;  %v4850_v62 = vmul.f32 1.442695, %v4843_v37  ;;  %v4770_v36 = vsel %vm4766_vm13, 1.0, %v6886_v34  ;;  %vm4765_vm0 = vcmp.ge.f32.partialorder %v7693_v7, 0.0 }
0x10b6   :  { %6722 = vrcp.f32 %v4781_v9  ;;  %v4846_v14 = vmul.f32 1.442695, %v4841_v1  ;;  %v4771_v60 = vsel %vm4767_vm15, 1.0, %v6886_v34  ;;  %v4769_v1 = vsel %vm4765_vm0, 1.0, %v6886_v34 }
0x10b7   :  { %6724 = vpow2.f32 %v4848_v29  ;;  %v4757_v7 = vmul.f32 0.5, %v7689_v33 }
0x10b8   :  { %6726 = vpow2.f32 %v4844_v44 }
0x10b9   :  { %6728 = vpow2.f32 %v4850_v62 }
0x10ba   :  { %6730 = vpow2.f32 %v4846_v14 }
0x10bd   :  { %v6717_v46 = vpop.eup %6716 }
0x10be   :  { %v6719_v13 = vpop.eup %6718  ;;  %v4790_v63 = vmul.f32 %v6717_v46, %v4782_v18 }
0x10bf   :  { %v4788_v30 = vmul.f32 %v6719_v13, %v4780_v8  ;;  %v6721_v32 = vpop.eup %6720 }
0x10c0   :  { %v4794_v31 = vsub.f32 2.0, %v4790_v63  ;;  %v4791_v50 = vmul.f32 %v6721_v32, %v4783_v24  ;;  %v6723_v57 = vpop.eup %6722 }
0x10c1   :  { %v4792_v35 = vsub.f32 2.0, %v4788_v30  ;;  %v4789_v45 = vmul.f32 %v6723_v57, %v4781_v9 }
0x10c2   :  { %v4798_v47 = vmul.f32 %v6717_v46, %v4794_v31  ;;  %v4795_v59 = vsub.f32 2.0, %v4791_v50 }
0x10c3   :  { %v4796_v40 = vmul.f32 %v6719_v13, %v4792_v35  ;;  %v4793_v53 = vsub.f32 2.0, %v4789_v45 }
0x10c4   :  { %v4802_v19 = vmul.f32 1.0614054, %v4798_v47  ;;  %v4799_v5 = vmul.f32 %v6721_v32, %v4795_v59  ;;  %v6725_v32 = vpop.eup %6724 }
0x10c5   :  { %v4800_v51 = vmul.f32 1.0614054, %v4796_v40  ;;  %v4797_v48 = vmul.f32 %v6723_v57, %v4793_v53  ;;  %v6727_v50 = vpop.eup %6726 }
0x10c6   :  { %v4806_v52 = vadd.f32 -1.4531521, %v4802_v19  ;;  %v4803_v56 = vmul.f32 1.0614054, %v4799_v5 }
0x10c7   :  { %v4804_v55 = vadd.f32 -1.4531521, %v4800_v51  ;;  %v4801_v49 = vmul.f32 1.0614054, %v4797_v48  ;;  %v6729_v51 = vpop.eup %6728 }
0x10c8   :  { %v4810_v54 = vmul.f32 %v4806_v52, %v4798_v47  ;;  %v4807_v27 = vadd.f32 -1.4531521, %v4803_v56  ;;  %v6731_v29 = vpop.eup %6730 }
0x10c9   :  { %v4808_v38 = vmul.f32 %v4804_v55, %v4796_v40  ;;  %v4805_v0 = vadd.f32 -1.4531521, %v4801_v49  ;;  %v4756_v49 = vmul.f32 0.5, %v7677_v2 }
0x10ca   :  { %v4814_v3 = vadd.f32 1.4214138, %v4810_v54  ;;  %v4811_v12 = vmul.f32 %v4807_v27, %v4799_v5 }
0x10cb   :  { %v4812_v10 = vadd.f32 1.4214138, %v4808_v38  ;;  %v4809_v8 = vmul.f32 %v4805_v0, %v4797_v48  ;;  %v4758_v38 = vmul.f32 0.5, %v7672_v17 }
0x10cc   :  { %v4818_v41 = vmul.f32 %v4814_v3, %v4798_v47  ;;  %v4815_v4 = vadd.f32 1.4214138, %v4811_v12 }
0x10cd   :  { %v4816_v39 = vmul.f32 %v4812_v10, %v4796_v40  ;;  %v4813_v11 = vadd.f32 1.4214138, %v4809_v8 }
0x10ce   :  { %v4822_v18 = vadd.f32 -0.28449672, %v4818_v41  ;;  %v4819_v61 = vmul.f32 %v4815_v4, %v4799_v5 }
0x10cf   :  { %v4820_v22 = vadd.f32 -0.28449672, %v4816_v39  ;;  %v4817_v63 = vmul.f32 %v4813_v11, %v4797_v48 }
0x10d0   :  { %v4826_v24 = vmul.f32 %v4822_v18, %v4798_v47  ;;  %v4823_v13 = vadd.f32 -0.28449672, %v4819_v61 }
0x10d1   :  { %v4824_v9 = vmul.f32 %v4820_v22, %v4796_v40  ;;  %v4821_v28 = vadd.f32 -0.28449672, %v4817_v63 }
0x10d2   :  { %v4830_v46 = vadd.f32 0.2548296, %v4826_v24  ;;  %v4827_v31 = vmul.f32 %v4823_v13, %v4799_v5 }
0x10d3   :  { %v4828_v21 = vadd.f32 0.2548296, %v4824_v9  ;;  %v4825_v43 = vmul.f32 %v4821_v28, %v4797_v48 }
0x10d4   :  { %v4834_v30 = vmul.f32 %v4830_v46, %v4798_v47  ;;  %v4831_v6 = vadd.f32 0.2548296, %v4827_v31 }
0x10d5   :  { %v4832_v35 = vmul.f32 %v4828_v21, %v4796_v40  ;;  %v4829_v45 = vadd.f32 0.2548296, %v4825_v43 }
0x10d6   :  { %v4854_v57 = vmul.f32 %v6725_v32, %v4834_v30  ;;  %v4835_v59 = vmul.f32 %v4831_v6, %v4799_v5 }
0x10d7   :  { %v4852_v19 = vmul.f32 %v6727_v50, %v4832_v35  ;;  %v4833_v53 = vmul.f32 %v4829_v45, %v4797_v48  ;;  %v4759_v48 = vmul.f32 0.5, %v7682_v58 }
0x10d8   :  { %v4858_v20 = vsub.f32 1.0, %v4854_v57  ;;  %v4855_v40 = vmul.f32 %v6729_v51, %v4835_v59 }
0x10d9   :  { %v4856_v47 = vsub.f32 1.0, %v4852_v19  ;;  %v4853_v54 = vmul.f32 %v6731_v29, %v4833_v53 }
0x10da   :  { %v4862_v52 = vmul.f32 %v4858_v20, %v4770_v36  ;;  %v4859_v37 = vsub.f32 1.0, %v4855_v40 }
0x10db   :  { %v4860_v55 = vmul.f32 %v4856_v47, %v4768_v42  ;;  %v4857_v56 = vsub.f32 1.0, %v4853_v54 }
0x10dc   :  { %v4866_v5 = vadd.f32 1.0, %v4862_v52  ;;  %v4863_v44 = vmul.f32 %v4859_v37, %v4771_v60 }
0x10dd   :  { %v4864_v23 = vadd.f32 1.0, %v4860_v55  ;;  %v4861_v27 = vmul.f32 %v4857_v56, %v4769_v1 }
0x10de   :  { %v4867_v3 = vadd.f32 1.0, %v4863_v44  ;;  %v4870_v10 = vmul.f32 %v4866_v5, %v4758_v38 }
0x10df   :  { %v4865_v41 = vadd.f32 1.0, %v4861_v27  ;;  %v4868_v12 = vmul.f32 %v4864_v23, %v4756_v49 }
0x10e0   :  { %v4871_v62 = vmul.f32 %v4867_v3, %v4759_v48 }
0x10e1   :  { %v4869_v39 = vmul.f32 %v4865_v41, %v4757_v7 }
0x10e2   :  { %v4873_v0 = vpack.c.bf16 %v4871_v62, %v4870_v10 }
0x10e3   :  { %v4872_v14 = vpack.c.bf16 %v4869_v39, %v4868_v12 }
0x10e5   :  { %6282 = vmatprep.mubr.bf16.mxu0 %v4872_v14 }
0x10e6   :  { %6283 = vmatmul.mubr.bf16.vlgmr.msra.gmra.mrb[84].mxu0 %v4873_v0 }
0x11b9   :  { %v6284_v17 = vpop.f32.mrb[84].mxu0 }
0x11ba   :  { %v4982_v34 = vadd.f32 %v6284_v17, %v7500_v26  ;;  %v4973_v18 = vpop.f32.mrb[85].mxu0 }
0x11bb   :  { %v4974_v58 = vadd.f32 %v4973_v18, %v7491_v16  ;;  %v6285_v2 = vpop.f32.mrb[86].mxu0 }
0x11bc   :  { %4990 = vst [vmem:[#allocation10 + $0x10] sm:$0xff] %v4982_v34  ;;  %v4985_v4 = vadd.f32 %v6285_v2, %v7494_v15  ;;  %v4976_v33 = vpop.f32.mrb[87].mxu0 }
0x11bd   :  { %4988 = vst [vmem:[#allocation10] sm:$0xff] %v4974_v58  ;;  %v4977_v8 = vadd.f32 %v4976_v33, %v7497_v25 }
0x11be   :  { %4991 = vst [vmem:[#allocation10 + $0x18] sm:$0xff] %v4985_v4 }
0x11bf   :  { %4989 = vst [vmem:[#allocation10 + $0x8] sm:$0xff] %v4977_v8 }
0x11c0   :  { %6859 = shalt.err (!%p6856_p8)
}
0x11c1   :  { %s6860_s21 = scalar_lea.hbm %s7734_s7, 512 }
0x11c2   :  { %p6861_p9 = scmp.ne.s32.totalorder %s7734_s7, %s6860_s21  ;;  %p6864_p10 = scmp.lt.u32.totalorder %s6860_s21, %s7734_s7 }
0x11c4   :  { %p6866_p11 = pnand %p6864_p10, %p6861_p9 }
0x11c6   :  { %6869 = shalt.err (!%p6866_p11)
}
0x11c7   :  { %5003 = dma.vmem_to_hbm [thread:$0]  %s4998_s1, 512, %s7734_s7, [#allocation4], %s6882_s4, %s6882_s4, %s6883_s25  }
0x11c8   :  { %6876 = dma.done.wait [#allocation4], 512  }
0x11c9   :  { %6877 = vsyncadd [#allocation4], 4294966784 }
0x11ca   :  { %5007 = vsyncpa [#allocation3], 1 }
0x11cb   :  { %5008 = vsyncpa [#allocation6], 1 }
0x11cc   :  { %5009 = vsyncpa [#allocation9], 1 }
0x11cd   :  { %5010 = vsyncpa [#allocation4], 1 }

</bundles_post_ra>
